<compile_context>
chip_gen: v7x
topology: tpu7x:2x2x1
jax: 0.10.0
libtpu: 0.0.40
codegen_flags: <defaults>
</compile_context>

<pallas_src>
import functools

import jax
import jax.numpy as jnp
from jax import lax
from jax.experimental import pallas as pl
from jax.experimental.pallas import tpu as pltpu


def _fusion_kernel(cat_ref, wq_ref, bq_ref, wk_ref, bk_ref, wf_ref, bf_ref,
                   fused_ref, views_ref, *, num_graphs, num_nodes, emb_dim,
                   alpha):
    """Fused FusionModule forward.

    cat_ref   : (G*N, D)   stacked views, view g in rows [g*N, (g+1)*N)
    wq_ref    : (D, G*D)   packed self_q weights (block i in cols [i*D,(i+1)*D))
    bq_ref    : (1, G*D)   packed self_q biases
    wk_ref    : (D, G*D)   packed self_k weights
    bk_ref    : (1, G*D)   packed self_k biases
    wf_ref    : (D, D)     fusion_linear weight
    bf_ref    : (1, D)     fusion_linear bias
    fused_ref : (N, D)     fused_outputs
    views_ref : (G*N, D)   (views[g] + fused_outputs) / 2, stacked
    """
    g_num, n, d = num_graphs, num_nodes, emb_dim
    cat = cat_ref[...]                                              # (G*N, D)

    # Packed Q / K projections for all G attention modules at once (lane-dense).
    q_all = jnp.dot(cat, wq_ref[...],
                    preferred_element_type=jnp.float32) + bq_ref[...]   # (G*N, G*D)
    k_all = jnp.dot(cat, wk_ref[...],
                    preferred_element_type=jnp.float32) + bk_ref[...]   # (G*N, G*D)

    scale = 1.0 / (float(d) ** 0.5)
    inv_g = 1.0 / float(g_num)

    new_rows = []
    for g in range(g_num):                       # static unroll over stacked views
        cat_g = cat[g * n:(g + 1) * n, :]                            # (N, D)
        acc = jnp.zeros((n, d), jnp.float32)
        for i in range(g_num):                   # static unroll over attn modules
            q = q_all[g * n:(g + 1) * n, i * d:(i + 1) * d]          # (N, D)
            k = k_all[g * n:(g + 1) * n, i * d:(i + 1) * d]          # (N, D)
            # scores[n, m] = <q_n, k_m> / sqrt(D)   (no explicit transpose)
            s = lax.dot_general(q, k, (((1,), (1,)), ((), ())),
                                preferred_element_type=jnp.float32) * scale
            s = s - jnp.max(s, axis=-1, keepdims=True)
            p = jnp.exp(s)
            attn = p / jnp.sum(p, axis=-1, keepdims=True)
            acc = acc + jnp.dot(attn, cat_g,
                                preferred_element_type=jnp.float32)
        sa_g = acc * inv_g
        new_rows.append(alpha * sa_g + (1.0 - alpha) * cat_g)

    new_views = jnp.concatenate(new_rows, axis=0)                    # (G*N, D)

    # Shared fusion linear + sigmoid gate, applied to all views in one matmul.
    z = jnp.dot(new_views, wf_ref[...],
                preferred_element_type=jnp.float32) + bf_ref[...]
    gate = 1.0 / (1.0 + jnp.exp(-z))
    mv = gate * new_views                                            # (G*N, D)

    fused = mv[0:n, :]
    for g in range(1, g_num):
        fused = fused + mv[g * n:(g + 1) * n, :]

    fused_ref[...] = fused
    views_ref[...] = (new_views + jnp.concatenate([fused] * g_num, axis=0)) * 0.5


def fusion_module_forward(params, views, alpha):
    """FusionModule.forward.  views: list of G arrays (N, D). Returns
    (fused_outputs (N, D), list of G updated views (N, D))."""
    g_num = len(views)
    n, d = views[0].shape

    cat = jnp.concatenate(views, axis=0)                             # (G*N, D)
    wq_all = jnp.concatenate(params["Wq"], axis=1)                   # (D, G*D)
    bq_all = jnp.concatenate(params["bq"], axis=0).reshape(1, g_num * d)
    wk_all = jnp.concatenate(params["Wk"], axis=1)                   # (D, G*D)
    bk_all = jnp.concatenate(params["bk"], axis=0).reshape(1, g_num * d)
    wf = params["Wf"]                                                # (D, D)
    bf = params["bf"].reshape(1, d)                                  # (1, D)

    kernel = functools.partial(_fusion_kernel, num_graphs=g_num,
                               num_nodes=n, emb_dim=d, alpha=float(alpha))
    vmem = pl.BlockSpec(memory_space=pltpu.MemorySpace.VMEM)

    flops = (4 * (g_num * n) * d * (g_num * d)        # packed Q/K projections
             + g_num * g_num * (4 * n * n * d)        # scores + attn @ cat
             + 2 * (g_num * n) * d * d)               # fusion linear
    transcendentals = g_num * g_num * n * n + g_num * n * d
    bytes_accessed = 4 * ((g_num * n) * d            # cat in
                          + 2 * d * (g_num * d) + 2 * (g_num * d)   # Wq/Wk + biases
                          + d * d + d                # Wf + bf
                          + n * d + (g_num * n) * d)  # outputs

    fused, views_flat = pl.pallas_call(
        kernel,
        out_shape=(jax.ShapeDtypeStruct((n, d), jnp.float32),
                   jax.ShapeDtypeStruct((g_num * n, d), jnp.float32)),
        in_specs=[vmem] * 7,
        out_specs=(vmem, vmem),
        compiler_params=pltpu.CompilerParams(
            vmem_limit_bytes=32 * 1024 * 1024),
        cost_estimate=pl.CostEstimate(flops=flops,
                                      transcendentals=transcendentals,
                                      bytes_accessed=bytes_accessed),
    )(cat, wq_all, bq_all, wk_all, bk_all, wf, bf)

    views_out = views_flat.reshape(g_num, n, d)
    return fused, [views_out[i] for i in range(g_num)]


def init_fusion_params(key, num_graphs, emb_dim):
    """Synthetic FusionModule parameters (stored in x @ W + b convention)."""
    wq, bq, wk, bk = [], [], [], []
    for _ in range(num_graphs):
        key, k1, k2, k3, k4 = jax.random.split(key, 5)
        wq.append(jax.random.normal(k1, (emb_dim, emb_dim), jnp.float32) * 0.1)
        bq.append(jax.random.normal(k2, (emb_dim,), jnp.float32) * 0.1)
        wk.append(jax.random.normal(k3, (emb_dim, emb_dim), jnp.float32) * 0.1)
        bk.append(jax.random.normal(k4, (emb_dim,), jnp.float32) * 0.1)
    key, k5, k6 = jax.random.split(key, 3)
    wf = jax.random.normal(k5, (emb_dim, emb_dim), jnp.float32) * 0.1
    bf = jax.random.normal(k6, (emb_dim,), jnp.float32) * 0.1
    return dict(Wq=wq, bq=bq, Wk=wk, bk=bk, Wf=wf, bf=bf)


def fusion_module_reference(params, views, alpha):
    """Pure-JAX reference mirroring the PyTorch forward."""
    g_num = len(views)
    cat = jnp.stack(views, axis=0)                                   # (G, N, D)
    d = cat.shape[-1]
    sa_sum = jnp.zeros_like(cat)
    for i in range(g_num):
        q = cat @ params["Wq"][i] + params["bq"][i]
        k = cat @ params["Wk"][i] + params["bk"][i]
        attn = jax.nn.softmax(
            jnp.einsum('gnd,gmd->gnm', q, k) / jnp.sqrt(float(d)), axis=-1)
        sa_sum = sa_sum + jnp.einsum('gnm,gmd->gnd', attn, cat)
    sa = sa_sum / g_num
    new_views = alpha * sa + (1.0 - alpha) * cat
    gate = jax.nn.sigmoid(new_views @ params["Wf"] + params["bf"])
    mv = gate * new_views
    fused = mv.sum(axis=0)
    outs = (new_views + fused[None]) * 0.5
    return fused, [outs[i] for i in range(g_num)]


if __name__ == "__main__":
    num_graphs = 3
    num_nodes = 64
    emb_dim = 64
    alpha = 0.4

    root = jax.random.PRNGKey(0)
    k_views, k_par = jax.random.split(root)
    vkeys = jax.random.split(k_views, num_graphs)
    views = [jax.random.normal(vkeys[i], (num_nodes, emb_dim), jnp.float32)
             for i in range(num_graphs)]

    params = init_fusion_params(k_par, num_graphs, emb_dim)

    fused, out_views = fusion_module_forward(params, views, alpha)
    fused = jax.block_until_ready(fused)
    out_views = [jax.block_until_ready(v) for v in out_views]

    # Correctness vs. pure-JAX reference.
    fused_ref, views_ref = fusion_module_reference(params, views, alpha)
    assert fused.shape == (num_nodes, emb_dim)
    assert len(out_views) == num_graphs
    assert bool(jnp.all(jnp.isfinite(fused)))
    assert bool(jnp.allclose(fused, fused_ref, atol=2e-4, rtol=2e-4)), \
        float(jnp.max(jnp.abs(fused - fused_ref)))
    for v, vr in zip(out_views, views_ref):
        assert v.shape == (num_nodes, emb_dim)
        assert bool(jnp.all(jnp.isfinite(v)))
        assert bool(jnp.allclose(v, vr, atol=2e-4, rtol=2e-4)), \
            float(jnp.max(jnp.abs(v - vr)))

    print("KERNEL_OK")
</pallas_src>

<mosaic_0001>
module attributes {stable_mosaic.version = 11 : i64} {
  func.func @_fusion_kernel(%arg0: memref<192x64xf32, #tpu.memory_space<vmem>>, %arg1: memref<64x192xf32, #tpu.memory_space<vmem>>, %arg2: memref<1x192xf32, #tpu.memory_space<vmem>>, %arg3: memref<64x192xf32, #tpu.memory_space<vmem>>, %arg4: memref<1x192xf32, #tpu.memory_space<vmem>>, %arg5: memref<64x64xf32, #tpu.memory_space<vmem>>, %arg6: memref<1x64xf32, #tpu.memory_space<vmem>>, %arg7: memref<64x64xf32, #tpu.memory_space<vmem>>, %arg8: memref<192x64xf32, #tpu.memory_space<vmem>>) attributes {dimension_semantics = [], scalar_prefetch = 0 : i64, scratch_operands = 0 : i64, tpu.core_type = #tpu.core_type<tc>} {
    %c0 = arith.constant 0 : index
    %c0_0 = arith.constant 0 : index
    %0 = vector.load %arg0[%c0, %c0_0] : memref<192x64xf32, #tpu.memory_space<vmem>>, vector<192x64xf32>
    %c0_1 = arith.constant 0 : index
    %c0_2 = arith.constant 0 : index
    %1 = vector.load %arg1[%c0_1, %c0_2] : memref<64x192xf32, #tpu.memory_space<vmem>>, vector<64x192xf32>
    %cst = arith.constant dense<0.000000e+00> : vector<192x192xf32>
    %2 = tpu.matmul %0, %1, %cst {dimension_numbers = #tpu.dot_dimension_numbers<[1], [0], [0], [1], [0, 0, 1, 1], [], []>} : vector<192x64xf32>, vector<64x192xf32>, vector<192x192xf32> -> vector<192x192xf32>
    %c0_3 = arith.constant 0 : index
    %c0_4 = arith.constant 0 : index
    %3 = vector.load %arg2[%c0_3, %c0_4] : memref<1x192xf32, #tpu.memory_space<vmem>>, vector<1x192xf32>
    %4 = vector.broadcast %3 : vector<1x192xf32> to vector<192x192xf32>
    %5 = arith.addf %2, %4 : vector<192x192xf32>
    %c0_5 = arith.constant 0 : index
    %c0_6 = arith.constant 0 : index
    %6 = vector.load %arg3[%c0_5, %c0_6] : memref<64x192xf32, #tpu.memory_space<vmem>>, vector<64x192xf32>
    %cst_7 = arith.constant dense<0.000000e+00> : vector<192x192xf32>
    %7 = tpu.matmul %0, %6, %cst_7 {dimension_numbers = #tpu.dot_dimension_numbers<[1], [0], [0], [1], [0, 0, 1, 1], [], []>} : vector<192x64xf32>, vector<64x192xf32>, vector<192x192xf32> -> vector<192x192xf32>
    %c0_8 = arith.constant 0 : index
    %c0_9 = arith.constant 0 : index
    %8 = vector.load %arg4[%c0_8, %c0_9] : memref<1x192xf32, #tpu.memory_space<vmem>>, vector<1x192xf32>
    %9 = vector.broadcast %8 : vector<1x192xf32> to vector<192x192xf32>
    %10 = arith.addf %7, %9 : vector<192x192xf32>
    %11 = vector.extract_strided_slice %0 {offsets = [0, 0], sizes = [64, 64], strides = [1, 1]} : vector<192x64xf32> to vector<64x64xf32>
    %cst_10 = arith.constant 0.000000e+00 : f32
    %12 = vector.broadcast %cst_10 : f32 to vector<64x64xf32>
    %13 = vector.extract_strided_slice %5 {offsets = [0, 0], sizes = [64, 64], strides = [1, 1]} : vector<192x192xf32> to vector<64x64xf32>
    %14 = vector.extract_strided_slice %10 {offsets = [0, 0], sizes = [64, 64], strides = [1, 1]} : vector<192x192xf32> to vector<64x64xf32>
    %cst_11 = arith.constant dense<0.000000e+00> : vector<64x64xf32>
    %15 = tpu.matmul %13, %14, %cst_11 {dimension_numbers = #tpu.dot_dimension_numbers<[1], [1], [0], [0], [0, 0, 1, 0], [], []>} : vector<64x64xf32>, vector<64x64xf32>, vector<64x64xf32> -> vector<64x64xf32>
    %cst_12 = arith.constant 1.250000e-01 : f32
    %16 = vector.broadcast %cst_12 : f32 to vector<64x64xf32>
    %17 = arith.mulf %15, %16 : vector<64x64xf32>
    %cst_13 = arith.constant dense<0xFF800000> : vector<64xf32>
    %18 = vector.multi_reduction <maximumf>, %17, %cst_13 [1] : vector<64x64xf32> to vector<64xf32>
    %19 = vector.shape_cast %18 : vector<64xf32> to vector<64x1xf32>
    %20 = vector.broadcast %19 : vector<64x1xf32> to vector<64x64xf32>
    %21 = arith.subf %17, %20 : vector<64x64xf32>
    %22 = math.exp %21 : vector<64x64xf32>
    %cst_14 = arith.constant dense<0.000000e+00> : vector<64xf32>
    %23 = vector.multi_reduction <add>, %22, %cst_14 [1] : vector<64x64xf32> to vector<64xf32>
    %24 = vector.shape_cast %23 : vector<64xf32> to vector<64x1xf32>
    %25 = vector.broadcast %24 : vector<64x1xf32> to vector<64x64xf32>
    %26 = arith.divf %22, %25 : vector<64x64xf32>
    %cst_15 = arith.constant dense<0.000000e+00> : vector<64x64xf32>
    %27 = tpu.matmul %26, %11, %cst_15 {dimension_numbers = #tpu.dot_dimension_numbers<[1], [0], [0], [1], [0, 0, 1, 1], [], []>} : vector<64x64xf32>, vector<64x64xf32>, vector<64x64xf32> -> vector<64x64xf32>
    %28 = arith.addf %12, %27 : vector<64x64xf32>
    %29 = vector.extract_strided_slice %5 {offsets = [0, 64], sizes = [64, 64], strides = [1, 1]} : vector<192x192xf32> to vector<64x64xf32>
    %30 = vector.extract_strided_slice %10 {offsets = [0, 64], sizes = [64, 64], strides = [1, 1]} : vector<192x192xf32> to vector<64x64xf32>
    %cst_16 = arith.constant dense<0.000000e+00> : vector<64x64xf32>
    %31 = tpu.matmul %29, %30, %cst_16 {dimension_numbers = #tpu.dot_dimension_numbers<[1], [1], [0], [0], [0, 0, 1, 0], [], []>} : vector<64x64xf32>, vector<64x64xf32>, vector<64x64xf32> -> vector<64x64xf32>
    %cst_17 = arith.constant 1.250000e-01 : f32
    %32 = vector.broadcast %cst_17 : f32 to vector<64x64xf32>
    %33 = arith.mulf %31, %32 : vector<64x64xf32>
    %cst_18 = arith.constant dense<0xFF800000> : vector<64xf32>
    %34 = vector.multi_reduction <maximumf>, %33, %cst_18 [1] : vector<64x64xf32> to vector<64xf32>
    %35 = vector.shape_cast %34 : vector<64xf32> to vector<64x1xf32>
    %36 = vector.broadcast %35 : vector<64x1xf32> to vector<64x64xf32>
    %37 = arith.subf %33, %36 : vector<64x64xf32>
    %38 = math.exp %37 : vector<64x64xf32>
    %cst_19 = arith.constant dense<0.000000e+00> : vector<64xf32>
    %39 = vector.multi_reduction <add>, %38, %cst_19 [1] : vector<64x64xf32> to vector<64xf32>
    %40 = vector.shape_cast %39 : vector<64xf32> to vector<64x1xf32>
    %41 = vector.broadcast %40 : vector<64x1xf32> to vector<64x64xf32>
    %42 = arith.divf %38, %41 : vector<64x64xf32>
    %cst_20 = arith.constant dense<0.000000e+00> : vector<64x64xf32>
    %43 = tpu.matmul %42, %11, %cst_20 {dimension_numbers = #tpu.dot_dimension_numbers<[1], [0], [0], [1], [0, 0, 1, 1], [], []>} : vector<64x64xf32>, vector<64x64xf32>, vector<64x64xf32> -> vector<64x64xf32>
    %44 = arith.addf %28, %43 : vector<64x64xf32>
    %45 = vector.extract_strided_slice %5 {offsets = [0, 128], sizes = [64, 64], strides = [1, 1]} : vector<192x192xf32> to vector<64x64xf32>
    %46 = vector.extract_strided_slice %10 {offsets = [0, 128], sizes = [64, 64], strides = [1, 1]} : vector<192x192xf32> to vector<64x64xf32>
    %cst_21 = arith.constant dense<0.000000e+00> : vector<64x64xf32>
    %47 = tpu.matmul %45, %46, %cst_21 {dimension_numbers = #tpu.dot_dimension_numbers<[1], [1], [0], [0], [0, 0, 1, 0], [], []>} : vector<64x64xf32>, vector<64x64xf32>, vector<64x64xf32> -> vector<64x64xf32>
    %cst_22 = arith.constant 1.250000e-01 : f32
    %48 = vector.broadcast %cst_22 : f32 to vector<64x64xf32>
    %49 = arith.mulf %47, %48 : vector<64x64xf32>
    %cst_23 = arith.constant dense<0xFF800000> : vector<64xf32>
    %50 = vector.multi_reduction <maximumf>, %49, %cst_23 [1] : vector<64x64xf32> to vector<64xf32>
    %51 = vector.shape_cast %50 : vector<64xf32> to vector<64x1xf32>
    %52 = vector.broadcast %51 : vector<64x1xf32> to vector<64x64xf32>
    %53 = arith.subf %49, %52 : vector<64x64xf32>
    %54 = math.exp %53 : vector<64x64xf32>
    %cst_24 = arith.constant dense<0.000000e+00> : vector<64xf32>
    %55 = vector.multi_reduction <add>, %54, %cst_24 [1] : vector<64x64xf32> to vector<64xf32>
    %56 = vector.shape_cast %55 : vector<64xf32> to vector<64x1xf32>
    %57 = vector.broadcast %56 : vector<64x1xf32> to vector<64x64xf32>
    %58 = arith.divf %54, %57 : vector<64x64xf32>
    %cst_25 = arith.constant dense<0.000000e+00> : vector<64x64xf32>
    %59 = tpu.matmul %58, %11, %cst_25 {dimension_numbers = #tpu.dot_dimension_numbers<[1], [0], [0], [1], [0, 0, 1, 1], [], []>} : vector<64x64xf32>, vector<64x64xf32>, vector<64x64xf32> -> vector<64x64xf32>
    %60 = arith.addf %44, %59 : vector<64x64xf32>
    %cst_26 = arith.constant 0.333333343 : f32
    %61 = vector.broadcast %cst_26 : f32 to vector<64x64xf32>
    %62 = arith.mulf %60, %61 : vector<64x64xf32>
    %cst_27 = arith.constant 4.000000e-01 : f32
    %63 = vector.broadcast %cst_27 : f32 to vector<64x64xf32>
    %64 = arith.mulf %63, %62 : vector<64x64xf32>
    %cst_28 = arith.constant 6.000000e-01 : f32
    %65 = vector.broadcast %cst_28 : f32 to vector<64x64xf32>
    %66 = arith.mulf %65, %11 : vector<64x64xf32>
    %67 = arith.addf %64, %66 : vector<64x64xf32>
    %68 = vector.extract_strided_slice %0 {offsets = [64, 0], sizes = [64, 64], strides = [1, 1]} : vector<192x64xf32> to vector<64x64xf32>
    %cst_29 = arith.constant 0.000000e+00 : f32
    %69 = vector.broadcast %cst_29 : f32 to vector<64x64xf32>
    %70 = vector.extract_strided_slice %5 {offsets = [64, 0], sizes = [64, 64], strides = [1, 1]} : vector<192x192xf32> to vector<64x64xf32>
    %71 = vector.extract_strided_slice %10 {offsets = [64, 0], sizes = [64, 64], strides = [1, 1]} : vector<192x192xf32> to vector<64x64xf32>
    %cst_30 = arith.constant dense<0.000000e+00> : vector<64x64xf32>
    %72 = tpu.matmul %70, %71, %cst_30 {dimension_numbers = #tpu.dot_dimension_numbers<[1], [1], [0], [0], [0, 0, 1, 0], [], []>} : vector<64x64xf32>, vector<64x64xf32>, vector<64x64xf32> -> vector<64x64xf32>
    %cst_31 = arith.constant 1.250000e-01 : f32
    %73 = vector.broadcast %cst_31 : f32 to vector<64x64xf32>
    %74 = arith.mulf %72, %73 : vector<64x64xf32>
    %cst_32 = arith.constant dense<0xFF800000> : vector<64xf32>
    %75 = vector.multi_reduction <maximumf>, %74, %cst_32 [1] : vector<64x64xf32> to vector<64xf32>
    %76 = vector.shape_cast %75 : vector<64xf32> to vector<64x1xf32>
    %77 = vector.broadcast %76 : vector<64x1xf32> to vector<64x64xf32>
    %78 = arith.subf %74, %77 : vector<64x64xf32>
    %79 = math.exp %78 : vector<64x64xf32>
    %cst_33 = arith.constant dense<0.000000e+00> : vector<64xf32>
    %80 = vector.multi_reduction <add>, %79, %cst_33 [1] : vector<64x64xf32> to vector<64xf32>
    %81 = vector.shape_cast %80 : vector<64xf32> to vector<64x1xf32>
    %82 = vector.broadcast %81 : vector<64x1xf32> to vector<64x64xf32>
    %83 = arith.divf %79, %82 : vector<64x64xf32>
    %cst_34 = arith.constant dense<0.000000e+00> : vector<64x64xf32>
    %84 = tpu.matmul %83, %68, %cst_34 {dimension_numbers = #tpu.dot_dimension_numbers<[1], [0], [0], [1], [0, 0, 1, 1], [], []>} : vector<64x64xf32>, vector<64x64xf32>, vector<64x64xf32> -> vector<64x64xf32>
    %85 = arith.addf %69, %84 : vector<64x64xf32>
    %86 = vector.extract_strided_slice %5 {offsets = [64, 64], sizes = [64, 64], strides = [1, 1]} : vector<192x192xf32> to vector<64x64xf32>
    %87 = vector.extract_strided_slice %10 {offsets = [64, 64], sizes = [64, 64], strides = [1, 1]} : vector<192x192xf32> to vector<64x64xf32>
    %cst_35 = arith.constant dense<0.000000e+00> : vector<64x64xf32>
    %88 = tpu.matmul %86, %87, %cst_35 {dimension_numbers = #tpu.dot_dimension_numbers<[1], [1], [0], [0], [0, 0, 1, 0], [], []>} : vector<64x64xf32>, vector<64x64xf32>, vector<64x64xf32> -> vector<64x64xf32>
    %cst_36 = arith.constant 1.250000e-01 : f32
    %89 = vector.broadcast %cst_36 : f32 to vector<64x64xf32>
    %90 = arith.mulf %88, %89 : vector<64x64xf32>
    %cst_37 = arith.constant dense<0xFF800000> : vector<64xf32>
    %91 = vector.multi_reduction <maximumf>, %90, %cst_37 [1] : vector<64x64xf32> to vector<64xf32>
    %92 = vector.shape_cast %91 : vector<64xf32> to vector<64x1xf32>
    %93 = vector.broadcast %92 : vector<64x1xf32> to vector<64x64xf32>
    %94 = arith.subf %90, %93 : vector<64x64xf32>
    %95 = math.exp %94 : vector<64x64xf32>
    %cst_38 = arith.constant dense<0.000000e+00> : vector<64xf32>
    %96 = vector.multi_reduction <add>, %95, %cst_38 [1] : vector<64x64xf32> to vector<64xf32>
    %97 = vector.shape_cast %96 : vector<64xf32> to vector<64x1xf32>
    %98 = vector.broadcast %97 : vector<64x1xf32> to vector<64x64xf32>
    %99 = arith.divf %95, %98 : vector<64x64xf32>
    %cst_39 = arith.constant dense<0.000000e+00> : vector<64x64xf32>
    %100 = tpu.matmul %99, %68, %cst_39 {dimension_numbers = #tpu.dot_dimension_numbers<[1], [0], [0], [1], [0, 0, 1, 1], [], []>} : vector<64x64xf32>, vector<64x64xf32>, vector<64x64xf32> -> vector<64x64xf32>
    %101 = arith.addf %85, %100 : vector<64x64xf32>
    %102 = vector.extract_strided_slice %5 {offsets = [64, 128], sizes = [64, 64], strides = [1, 1]} : vector<192x192xf32> to vector<64x64xf32>
    %103 = vector.extract_strided_slice %10 {offsets = [64, 128], sizes = [64, 64], strides = [1, 1]} : vector<192x192xf32> to vector<64x64xf32>
    %cst_40 = arith.constant dense<0.000000e+00> : vector<64x64xf32>
    %104 = tpu.matmul %102, %103, %cst_40 {dimension_numbers = #tpu.dot_dimension_numbers<[1], [1], [0], [0], [0, 0, 1, 0], [], []>} : vector<64x64xf32>, vector<64x64xf32>, vector<64x64xf32> -> vector<64x64xf32>
    %cst_41 = arith.constant 1.250000e-01 : f32
    %105 = vector.broadcast %cst_41 : f32 to vector<64x64xf32>
    %106 = arith.mulf %104, %105 : vector<64x64xf32>
    %cst_42 = arith.constant dense<0xFF800000> : vector<64xf32>
    %107 = vector.multi_reduction <maximumf>, %106, %cst_42 [1] : vector<64x64xf32> to vector<64xf32>
    %108 = vector.shape_cast %107 : vector<64xf32> to vector<64x1xf32>
    %109 = vector.broadcast %108 : vector<64x1xf32> to vector<64x64xf32>
    %110 = arith.subf %106, %109 : vector<64x64xf32>
    %111 = math.exp %110 : vector<64x64xf32>
    %cst_43 = arith.constant dense<0.000000e+00> : vector<64xf32>
    %112 = vector.multi_reduction <add>, %111, %cst_43 [1] : vector<64x64xf32> to vector<64xf32>
    %113 = vector.shape_cast %112 : vector<64xf32> to vector<64x1xf32>
    %114 = vector.broadcast %113 : vector<64x1xf32> to vector<64x64xf32>
    %115 = arith.divf %111, %114 : vector<64x64xf32>
    %cst_44 = arith.constant dense<0.000000e+00> : vector<64x64xf32>
    %116 = tpu.matmul %115, %68, %cst_44 {dimension_numbers = #tpu.dot_dimension_numbers<[1], [0], [0], [1], [0, 0, 1, 1], [], []>} : vector<64x64xf32>, vector<64x64xf32>, vector<64x64xf32> -> vector<64x64xf32>
    %117 = arith.addf %101, %116 : vector<64x64xf32>
    %cst_45 = arith.constant 0.333333343 : f32
    %118 = vector.broadcast %cst_45 : f32 to vector<64x64xf32>
    %119 = arith.mulf %117, %118 : vector<64x64xf32>
    %cst_46 = arith.constant 4.000000e-01 : f32
    %120 = vector.broadcast %cst_46 : f32 to vector<64x64xf32>
    %121 = arith.mulf %120, %119 : vector<64x64xf32>
    %cst_47 = arith.constant 6.000000e-01 : f32
    %122 = vector.broadcast %cst_47 : f32 to vector<64x64xf32>
    %123 = arith.mulf %122, %68 : vector<64x64xf32>
    %124 = arith.addf %121, %123 : vector<64x64xf32>
    %125 = vector.extract_strided_slice %0 {offsets = [128, 0], sizes = [64, 64], strides = [1, 1]} : vector<192x64xf32> to vector<64x64xf32>
    %cst_48 = arith.constant 0.000000e+00 : f32
    %126 = vector.broadcast %cst_48 : f32 to vector<64x64xf32>
    %127 = vector.extract_strided_slice %5 {offsets = [128, 0], sizes = [64, 64], strides = [1, 1]} : vector<192x192xf32> to vector<64x64xf32>
    %128 = vector.extract_strided_slice %10 {offsets = [128, 0], sizes = [64, 64], strides = [1, 1]} : vector<192x192xf32> to vector<64x64xf32>
    %cst_49 = arith.constant dense<0.000000e+00> : vector<64x64xf32>
    %129 = tpu.matmul %127, %128, %cst_49 {dimension_numbers = #tpu.dot_dimension_numbers<[1], [1], [0], [0], [0, 0, 1, 0], [], []>} : vector<64x64xf32>, vector<64x64xf32>, vector<64x64xf32> -> vector<64x64xf32>
    %cst_50 = arith.constant 1.250000e-01 : f32
    %130 = vector.broadcast %cst_50 : f32 to vector<64x64xf32>
    %131 = arith.mulf %129, %130 : vector<64x64xf32>
    %cst_51 = arith.constant dense<0xFF800000> : vector<64xf32>
    %132 = vector.multi_reduction <maximumf>, %131, %cst_51 [1] : vector<64x64xf32> to vector<64xf32>
    %133 = vector.shape_cast %132 : vector<64xf32> to vector<64x1xf32>
    %134 = vector.broadcast %133 : vector<64x1xf32> to vector<64x64xf32>
    %135 = arith.subf %131, %134 : vector<64x64xf32>
    %136 = math.exp %135 : vector<64x64xf32>
    %cst_52 = arith.constant dense<0.000000e+00> : vector<64xf32>
    %137 = vector.multi_reduction <add>, %136, %cst_52 [1] : vector<64x64xf32> to vector<64xf32>
    %138 = vector.shape_cast %137 : vector<64xf32> to vector<64x1xf32>
    %139 = vector.broadcast %138 : vector<64x1xf32> to vector<64x64xf32>
    %140 = arith.divf %136, %139 : vector<64x64xf32>
    %cst_53 = arith.constant dense<0.000000e+00> : vector<64x64xf32>
    %141 = tpu.matmul %140, %125, %cst_53 {dimension_numbers = #tpu.dot_dimension_numbers<[1], [0], [0], [1], [0, 0, 1, 1], [], []>} : vector<64x64xf32>, vector<64x64xf32>, vector<64x64xf32> -> vector<64x64xf32>
    %142 = arith.addf %126, %141 : vector<64x64xf32>
    %143 = vector.extract_strided_slice %5 {offsets = [128, 64], sizes = [64, 64], strides = [1, 1]} : vector<192x192xf32> to vector<64x64xf32>
    %144 = vector.extract_strided_slice %10 {offsets = [128, 64], sizes = [64, 64], strides = [1, 1]} : vector<192x192xf32> to vector<64x64xf32>
    %cst_54 = arith.constant dense<0.000000e+00> : vector<64x64xf32>
    %145 = tpu.matmul %143, %144, %cst_54 {dimension_numbers = #tpu.dot_dimension_numbers<[1], [1], [0], [0], [0, 0, 1, 0], [], []>} : vector<64x64xf32>, vector<64x64xf32>, vector<64x64xf32> -> vector<64x64xf32>
    %cst_55 = arith.constant 1.250000e-01 : f32
    %146 = vector.broadcast %cst_55 : f32 to vector<64x64xf32>
    %147 = arith.mulf %145, %146 : vector<64x64xf32>
    %cst_56 = arith.constant dense<0xFF800000> : vector<64xf32>
    %148 = vector.multi_reduction <maximumf>, %147, %cst_56 [1] : vector<64x64xf32> to vector<64xf32>
    %149 = vector.shape_cast %148 : vector<64xf32> to vector<64x1xf32>
    %150 = vector.broadcast %149 : vector<64x1xf32> to vector<64x64xf32>
    %151 = arith.subf %147, %150 : vector<64x64xf32>
    %152 = math.exp %151 : vector<64x64xf32>
    %cst_57 = arith.constant dense<0.000000e+00> : vector<64xf32>
    %153 = vector.multi_reduction <add>, %152, %cst_57 [1] : vector<64x64xf32> to vector<64xf32>
    %154 = vector.shape_cast %153 : vector<64xf32> to vector<64x1xf32>
    %155 = vector.broadcast %154 : vector<64x1xf32> to vector<64x64xf32>
    %156 = arith.divf %152, %155 : vector<64x64xf32>
    %cst_58 = arith.constant dense<0.000000e+00> : vector<64x64xf32>
    %157 = tpu.matmul %156, %125, %cst_58 {dimension_numbers = #tpu.dot_dimension_numbers<[1], [0], [0], [1], [0, 0, 1, 1], [], []>} : vector<64x64xf32>, vector<64x64xf32>, vector<64x64xf32> -> vector<64x64xf32>
    %158 = arith.addf %142, %157 : vector<64x64xf32>
    %159 = vector.extract_strided_slice %5 {offsets = [128, 128], sizes = [64, 64], strides = [1, 1]} : vector<192x192xf32> to vector<64x64xf32>
    %160 = vector.extract_strided_slice %10 {offsets = [128, 128], sizes = [64, 64], strides = [1, 1]} : vector<192x192xf32> to vector<64x64xf32>
    %cst_59 = arith.constant dense<0.000000e+00> : vector<64x64xf32>
    %161 = tpu.matmul %159, %160, %cst_59 {dimension_numbers = #tpu.dot_dimension_numbers<[1], [1], [0], [0], [0, 0, 1, 0], [], []>} : vector<64x64xf32>, vector<64x64xf32>, vector<64x64xf32> -> vector<64x64xf32>
    %cst_60 = arith.constant 1.250000e-01 : f32
    %162 = vector.broadcast %cst_60 : f32 to vector<64x64xf32>
    %163 = arith.mulf %161, %162 : vector<64x64xf32>
    %cst_61 = arith.constant dense<0xFF800000> : vector<64xf32>
    %164 = vector.multi_reduction <maximumf>, %163, %cst_61 [1] : vector<64x64xf32> to vector<64xf32>
    %165 = vector.shape_cast %164 : vector<64xf32> to vector<64x1xf32>
    %166 = vector.broadcast %165 : vector<64x1xf32> to vector<64x64xf32>
    %167 = arith.subf %163, %166 : vector<64x64xf32>
    %168 = math.exp %167 : vector<64x64xf32>
    %cst_62 = arith.constant dense<0.000000e+00> : vector<64xf32>
    %169 = vector.multi_reduction <add>, %168, %cst_62 [1] : vector<64x64xf32> to vector<64xf32>
    %170 = vector.shape_cast %169 : vector<64xf32> to vector<64x1xf32>
    %171 = vector.broadcast %170 : vector<64x1xf32> to vector<64x64xf32>
    %172 = arith.divf %168, %171 : vector<64x64xf32>
    %cst_63 = arith.constant dense<0.000000e+00> : vector<64x64xf32>
    %173 = tpu.matmul %172, %125, %cst_63 {dimension_numbers = #tpu.dot_dimension_numbers<[1], [0], [0], [1], [0, 0, 1, 1], [], []>} : vector<64x64xf32>, vector<64x64xf32>, vector<64x64xf32> -> vector<64x64xf32>
    %174 = arith.addf %158, %173 : vector<64x64xf32>
    %cst_64 = arith.constant 0.333333343 : f32
    %175 = vector.broadcast %cst_64 : f32 to vector<64x64xf32>
    %176 = arith.mulf %174, %175 : vector<64x64xf32>
    %cst_65 = arith.constant 4.000000e-01 : f32
    %177 = vector.broadcast %cst_65 : f32 to vector<64x64xf32>
    %178 = arith.mulf %177, %176 : vector<64x64xf32>
    %cst_66 = arith.constant 6.000000e-01 : f32
    %179 = vector.broadcast %cst_66 : f32 to vector<64x64xf32>
    %180 = arith.mulf %179, %125 : vector<64x64xf32>
    %181 = arith.addf %178, %180 : vector<64x64xf32>
    %182 = tpu.concatenate %67, %124, %181 in 0 : vector<64x64xf32>, vector<64x64xf32>, vector<64x64xf32> -> vector<192x64xf32>
    %c0_67 = arith.constant 0 : index
    %c0_68 = arith.constant 0 : index
    %183 = vector.load %arg5[%c0_67, %c0_68] : memref<64x64xf32, #tpu.memory_space<vmem>>, vector<64x64xf32>
    %cst_69 = arith.constant dense<0.000000e+00> : vector<192x64xf32>
    %184 = tpu.matmul %182, %183, %cst_69 {dimension_numbers = #tpu.dot_dimension_numbers<[1], [0], [0], [1], [0, 0, 1, 1], [], []>} : vector<192x64xf32>, vector<64x64xf32>, vector<192x64xf32> -> vector<192x64xf32>
    %c0_70 = arith.constant 0 : index
    %c0_71 = arith.constant 0 : index
    %185 = vector.load %arg6[%c0_70, %c0_71] : memref<1x64xf32, #tpu.memory_space<vmem>>, vector<1x64xf32>
    %186 = vector.broadcast %185 : vector<1x64xf32> to vector<192x64xf32>
    %187 = arith.addf %184, %186 : vector<192x64xf32>
    %cst_72 = arith.constant 0.000000e+00 : f32
    %188 = vector.broadcast %cst_72 : f32 to vector<192x64xf32>
    %189 = arith.subf %188, %187 : vector<192x64xf32>
    %190 = math.exp %189 : vector<192x64xf32>
    %cst_73 = arith.constant 1.000000e+00 : f32
    %191 = vector.broadcast %cst_73 : f32 to vector<192x64xf32>
    %192 = arith.addf %191, %190 : vector<192x64xf32>
    %cst_74 = arith.constant 1.000000e+00 : f32
    %193 = vector.broadcast %cst_74 : f32 to vector<192x64xf32>
    %194 = arith.divf %193, %192 : vector<192x64xf32>
    %195 = arith.mulf %194, %182 : vector<192x64xf32>
    %196 = vector.extract_strided_slice %195 {offsets = [0, 0], sizes = [64, 64], strides = [1, 1]} : vector<192x64xf32> to vector<64x64xf32>
    %197 = vector.extract_strided_slice %195 {offsets = [64, 0], sizes = [64, 64], strides = [1, 1]} : vector<192x64xf32> to vector<64x64xf32>
    %198 = arith.addf %196, %197 : vector<64x64xf32>
    %199 = vector.extract_strided_slice %195 {offsets = [128, 0], sizes = [64, 64], strides = [1, 1]} : vector<192x64xf32> to vector<64x64xf32>
    %200 = arith.addf %198, %199 : vector<64x64xf32>
    %c0_75 = arith.constant 0 : index
    %c0_76 = arith.constant 0 : index
    %201 = vector.load %arg7[%c0_75, %c0_76] : memref<64x64xf32, #tpu.memory_space<vmem>>, vector<64x64xf32>
    tpu.vector_store %arg7[%c0_75, %c0_76], %200 {strides = array<i32>} : memref<64x64xf32, #tpu.memory_space<vmem>>, vector<64x64xf32>,
    %202 = tpu.concatenate %200, %200, %200 in 0 : vector<64x64xf32>, vector<64x64xf32>, vector<64x64xf32> -> vector<192x64xf32>
    %203 = arith.addf %182, %202 : vector<192x64xf32>
    %cst_77 = arith.constant 5.000000e-01 : f32
    %204 = vector.broadcast %cst_77 : f32 to vector<192x64xf32>
    %205 = arith.mulf %203, %204 : vector<192x64xf32>
    %c0_78 = arith.constant 0 : index
    %c0_79 = arith.constant 0 : index
    %206 = vector.load %arg8[%c0_78, %c0_79] : memref<192x64xf32, #tpu.memory_space<vmem>>, vector<192x64xf32>
    tpu.vector_store %arg8[%c0_78, %c0_79], %205 {strides = array<i32>} : memref<192x64xf32, #tpu.memory_space<vmem>>, vector<192x64xf32>,
    return
  }
}

</mosaic_0001>

<bundles_post_ra>
// kernel: tpu_custom_call.1
= control target key start
LH: loop header
LB: loop body
LE: loop exit
PB: predicated region body
PF: predicated region fallthrough
CT: control target
= control target key end

     0   :  { %v6853_v7 = vmov 0.0   ;;  %s9400_s0 = inlined_call_operand.vmem [shape: f32[192,64], index: 0, kind: input, shape index: {}]   ;;  %s9401_s1 = inlined_call_operand.vmem [shape: f32[64,192], index: 1, kind: input, shape index: {}]   ;;  %s9402_s2 = inlined_call_operand.vmem [shape: f32[1,192], index: 2, kind: input, shape index: {}]   ;;  %s9403_s3 = inlined_call_operand.vmem [shape: f32[64,192], index: 3, kind: input, shape index: {}]   ;;  %s9404_s4 = inlined_call_operand.vmem [shape: f32[1,192], index: 4, kind: input, shape index: {}]   ;;  %s9405_s5 = inlined_call_operand.vmem [shape: f32[64,64], index: 5, kind: input, shape index: {}]   ;;  %s9406_s6 = inlined_call_operand.vmem [shape: f32[1,64], index: 6, kind: input, shape index: {}]   ;;  %s9407_s7 = inlined_call_operand.hbm [shape: f32[64,64], index: 7, kind: output, shape index: {0}]   ;;  %s9408_s8 = inlined_call_operand.vmem [shape: f32[192,64], index: 8, kind: output, shape index: {1}]  }
   0x1   :  { %v364_v0 = vld [vmem:[%s9403_s3 + $0x8] sm:$0xff]  ;;  %v366_v1 = vld [vmem:[%s9403_s3 + $0x18] sm:$0xff]  ;;  %v363_v2 = vld [vmem:[%s9403_s3] sm:$0xff]  ;;  %455 = vmatprep.mubr.f32.mxu1 %v6853_v7  ;;  %218 = vmatprep.mubr.f32.mxu0 %v6853_v7 }
   0x2   :  { %v5907_v3 = vpack.c.bf16 %v366_v1, %v364_v0  ;;  %v365_v4 = vld [vmem:[%s9403_s3 + $0x10] sm:$0xff]  ;;  %v368_v5 = vld [vmem:[%s9403_s3 + $0x28] sm:$0xff]  ;;  %v370_v6 = vld [vmem:[%s9403_s3 + $0x38] sm:$0xff] }
   0x3   :  { %v5909_v8 = vpack.c.bf16 %v365_v4, %v363_v2  ;;  %v5911_v9 = vpack.c.bf16 %v370_v6, %v368_v5  ;;  %v367_v10 = vld [vmem:[%s9403_s3 + $0x20] sm:$0xff]  ;;  %v369_v11 = vld [vmem:[%s9403_s3 + $0x30] sm:$0xff]  ;;  %v372_v12 = vld [vmem:[%s9403_s3 + $0x48] sm:$0xff] }
   0x4   :  { %5908 = vmatprep.subr.bf16.mxu1 %v5907_v3  ;;  %v374_v13 = vld [vmem:[%s9403_s3 + $0x58] sm:$0xff]  ;;  %v5913_v14 = vpack.c.bf16 %v369_v11, %v367_v10  ;;  %v371_v16 = vld [vmem:[%s9403_s3 + $0x40] sm:$0xff]  ;;  %v373_v17 = vld [vmem:[%s9403_s3 + $0x50] sm:$0xff] }
   0x5   :  { %5910 = vmatpush1.bf16.msra.mxu1 %v5909_v8  ;;  %v5915_v15 = vpack.c.bf16 %v374_v13, %v372_v12  ;;  %v376_v18 = vld [vmem:[%s9403_s3 + $0x68] sm:$0xff]  ;;  %v378_v19 = vld [vmem:[%s9403_s3 + $0x78] sm:$0xff]  ;;  %v375_v22 = vld [vmem:[%s9403_s3 + $0x60] sm:$0xff]  ;;  %v5917_v26 = vpack.c.bf16 %v373_v17, %v371_v16 }
   0x6   :  { %5912 = vmatprep.subr.bf16.mxu1 %v5911_v9  ;;  %v54_v20 = vld [vmem:[%s9401_s1 + $0x8] sm:$0xff]  ;;  %v56_v21 = vld [vmem:[%s9401_s1 + $0x18] sm:$0xff]  ;;  %v53_v24 = vld [vmem:[%s9401_s1] sm:$0xff]  ;;  %v5919_v31 = vpack.c.bf16 %v378_v19, %v376_v18 }
   0x7   :  { %v5891_v23 = vpack.c.bf16 %v56_v21, %v54_v20  ;;  %v55_v25 = vld [vmem:[%s9401_s1 + $0x10] sm:$0xff]  ;;  %v58_v28 = vld [vmem:[%s9401_s1 + $0x28] sm:$0xff]  ;;  %v60_v29 = vld [vmem:[%s9401_s1 + $0x38] sm:$0xff] }
   0x8   :  { %v5893_v27 = vpack.c.bf16 %v55_v25, %v53_v24  ;;  %v57_v30 = vld [vmem:[%s9401_s1 + $0x20] sm:$0xff]  ;;  %v377_v32 = vld [vmem:[%s9403_s3 + $0x70] sm:$0xff]  ;;  %v5895_v33 = vpack.c.bf16 %v60_v29, %v58_v28  ;;  %v62_v35 = vld [vmem:[%s9401_s1 + $0x48] sm:$0xff] }
   0x9   :  { %5914 = vmatpush1.bf16.msra.mxu1 %v5913_v14  ;;  %5892 = vmatprep.subr.bf16.mxu0 %v5891_v23  ;;  %v59_v34 = vld [vmem:[%s9401_s1 + $0x30] sm:$0xff]  ;;  %v64_v37 = vld [vmem:[%s9401_s1 + $0x58] sm:$0xff]  ;;  %v61_v39 = vld [vmem:[%s9401_s1 + $0x40] sm:$0xff]  ;;  %v5921_v41 = vpack.c.bf16 %v377_v32, %v375_v22 }
   0xa   :  { %5916 = vmatprep.subr.bf16.mxu1 %v5915_v15  ;;  %5894 = vmatpush1.bf16.msra.mxu0 %v5893_v27  ;;  %v5897_v36 = vpack.c.bf16 %v59_v34, %v57_v30  ;;  %v5899_v38 = vpack.c.bf16 %v64_v37, %v62_v35  ;;  %v63_v40 = vld [vmem:[%s9401_s1 + $0x50] sm:$0xff]  ;;  %v66_v42 = vld [vmem:[%s9401_s1 + $0x68] sm:$0xff]  ;;  %v68_v43 = vld [vmem:[%s9401_s1 + $0x78] sm:$0xff] }
   0xb   :  { %5896 = vmatprep.subr.bf16.mxu0 %v5895_v33 }
   0xd   :  { %5918 = vmatpush1.bf16.msra.mxu1 %v5917_v26 }
   0xe   :  { %5920 = vmatprep.subr.bf16.mxu1 %v5919_v31 }
   0xf   :  { %14 = vsyncpa [#allocation3], 0  ;;  %5898 = vmatpush1.bf16.msra.mxu0 %v5897_v36  ;;  %v5901_v44 = vpack.c.bf16 %v63_v40, %v61_v39  ;;  %v5903_v45 = vpack.c.bf16 %v68_v43, %v66_v42  ;;  %v65_v46 = vld [vmem:[%s9401_s1 + $0x60] sm:$0xff]  ;;  %v67_v47 = vld [vmem:[%s9401_s1 + $0x70] sm:$0xff]  ;;  %vm81_vm0 = vcmask 523264   ;;  %v71_v10 = vlaneseq  ;;  %s6855_s29 = smov [#allocation2]  }
  0x10   :  { %5900 = vmatprep.subr.bf16.mxu0 %v5899_v38  ;;  %v7004_v48 = vld [vmem:[%s9400_s0] sm:$0xff]  ;;  %v5905_v49 = vpack.c.bf16 %v67_v47, %v65_v46  ;;  %v7012_v50 = vld [vmem:[%s9400_s0 + $0x8] sm:$0xff]  ;;  %v7020_v51 = vld [vmem:[%s9400_s0 + $0x10] sm:$0xff]  ;;  %s4711_s30 = sshll.u32 %s6855_s29, 4  ;;  %s9352_s30 = int_to_ptr.vmem [resolvable:$true] %s4711_s30 }
  0x11   :  { %5922 = vmatpush1.bf16.msra.mxu1 %v5921_v41  ;;  %v7031_v52 = vld [vmem:[%s9400_s0 + $0x18] sm:$0xff]  ;;  %v7042_v53 = vld [vmem:[%s9400_s0 + $0x20] sm:$0xff]  ;;  %v7053_v54 = vld [vmem:[%s9400_s0 + $0x28] sm:$0xff]  ;;  %v7231_v11 = vshrl.u32 %v71_v10, 7  ;;  %s6829_s19 = scalar_lea.vmem %s9352_s30, 1024  ;;  %p6834_p1 = scmp.lt.s32.totalorder %s9352_s30, %s9352_s30 }
  0x12   :  { %v7064_v55 = vld [vmem:[%s9400_s0 + $0x30] sm:$0xff]  ;;  %v7075_v56 = vld [vmem:[%s9400_s0 + $0x38] sm:$0xff]  ;;  %v7092_v57 = vld [vmem:[%s9400_s0 + $0x40] sm:$0xff]  ;;  %p6830_p0 = scmp.ne.s32.totalorder %s9352_s30, %s6829_s19  ;;  %p6835_p2 = scmp.lt.s32.totalorder %s6829_s19, %s6829_s19 }
  0x13   :  { %5902 = vmatpush1.bf16.msra.mxu0 %v5901_v44  ;;  %v7103_v58 = vld [vmem:[%s9400_s0 + $0x48] sm:$0xff]  ;;  %v7114_v59 = vld [vmem:[%s9400_s0 + $0x50] sm:$0xff]  ;;  %v7125_v60 = vld [vmem:[%s9400_s0 + $0x58] sm:$0xff]  ;;  %v73_v12 = vsub.s32 0, %v7231_v11  ;;  %v9409_v14 = vsub.s32 1, %v7231_v11 }
  0x14   :  { %4750 = vmatmul.mubr.msk.f32.vlgmr.msra.gmra.mrb[0].mxu1 %vm81_vm0, %v7004_v48  ;;  %5904 = vmatprep.subr.bf16.mxu0 %v5903_v45  ;;  %v7136_v61 = vld [vmem:[%s9400_s0 + $0x60] sm:$0xff]  ;;  %v7147_v62 = vld [vmem:[%s9400_s0 + $0x68] sm:$0xff]  ;;  %v7158_v63 = vld [vmem:[%s9400_s0 + $0x70] sm:$0xff]  ;;  %p6836_p3 = por %p6835_p2, %p6834_p1 }
  0x15   :  { %461 = vmatprep.mubr.f32.mxu1 %v6853_v7  ;;  %v7169_v0 = vld [vmem:[%s9400_s0 + $0x78] sm:$0xff]  ;;  %v45_v1 = vld [vmem:[%s9400_s0 + $0x80] sm:$0xff]  ;;  %v46_v2 = vld [vmem:[%s9400_s0 + $0x88] sm:$0xff] }
  0x16   :  { %v47_v3 = vld [vmem:[%s9400_s0 + $0x90] sm:$0xff]  ;;  %v48_v4 = vld [vmem:[%s9400_s0 + $0x98] sm:$0xff]  ;;  %v49_v5 = vld [vmem:[%s9400_s0 + $0xa0] sm:$0xff]  ;;  %p6837_p4 = pnand %p6836_p3, %p6830_p0 }
  0x17   :  { %5906 = vmatpush1.bf16.msra.mxu0 %v5905_v49  ;;  %v50_v6 = vld [vmem:[%s9400_s0 + $0xa8] sm:$0xff]  ;;  %v51_v8 = vld [vmem:[%s9400_s0 + $0xb0] sm:$0xff]  ;;  %v52_v9 = vld [vmem:[%s9400_s0 + $0xb8] sm:$0xff] }
  0x18   :  { %4751 = vmatmul.mubr.msk.f32.gmra.mrb[2].mxu1 %vm81_vm0, %v7012_v50  ;;  %v379_v13 = vld [vmem:[%s9404_s4] sm:$0x3]  ;;  %vm7258_vm1 = vmpackc.low %vm81_vm0, %vm81_vm0 }
  0x19   :  { %467 = vmatprep.mubr.f32.mxu1 %v6853_v7  ;;  %v7241_v15 = vld [vmem:[%s9402_s2] sm:$0x3]  ;;  %v7243_v16 = vrot.slane %v379_v13, %v73_v12  ;;  %v7247_v18 = vrot.slane %v379_v13, %v9409_v14  ;;  %s6854_s2 = smov 64  }
  0x1a   :  { %4726 = vmatmul.mubr.msk.f32.vlgmr.msra.gmra.mrb[0].mxu0 %vm81_vm0, %v7004_v48  ;;  %v7250_v19 = vrot.slane %v7241_v15, %v73_v12  ;;  %v4174_v26 = vld [vmem:[%s9405_s5 + $0x20] sm:$0xff] }
  0x1b   :  { %224 = vmatprep.mubr.f32.mxu0 %v6853_v7 }
  0x1c   :  { %4752 = vmatmul.mubr.msk.f32.gmra.mrb[4].mxu1 %vm81_vm0, %v7020_v51  ;;  %9452 = vst [vmem:[#allocation5_spill] sm:$0xff] %v7250_v19 }
  0x1d   :  { %473 = vmatprep.mubr.f32.mxu1 %v6853_v7 }
  0x1e   :  { %4727 = vmatmul.mubr.msk.f32.gmra.mrb[2].mxu0 %vm81_vm0, %v7012_v50 }
  0x1f   :  { %230 = vmatprep.mubr.f32.mxu0 %v6853_v7 }
  0x20   :  { %4753 = vmatmul.mubr.msk.f32.gmra.mrb[6].mxu1 %vm81_vm0, %v7031_v52 }
  0x21   :  { %479 = vmatprep.mubr.f32.mxu1 %v6853_v7 }
  0x22   :  { %4728 = vmatmul.mubr.msk.f32.gmra.mrb[4].mxu0 %vm81_vm0, %v7020_v51 }
  0x23   :  { %236 = vmatprep.mubr.f32.mxu0 %v6853_v7 }
  0x24   :  { %4754 = vmatmul.mubr.msk.f32.gmra.mrb[8].mxu1 %vm81_vm0, %v7042_v53 }
  0x25   :  { %485 = vmatprep.mubr.f32.mxu1 %v6853_v7 }
  0x26   :  { %4729 = vmatmul.mubr.msk.f32.gmra.mrb[6].mxu0 %vm81_vm0, %v7031_v52 }
  0x27   :  { %242 = vmatprep.mubr.f32.mxu0 %v6853_v7 }
  0x28   :  { %4755 = vmatmul.mubr.msk.f32.gmra.mrb[10].mxu1 %vm81_vm0, %v7053_v54 }
  0x29   :  { %491 = vmatprep.mubr.f32.mxu1 %v6853_v7 }
  0x2a   :  { %4730 = vmatmul.mubr.msk.f32.gmra.mrb[8].mxu0 %vm81_vm0, %v7042_v53 }
  0x2b   :  { %248 = vmatprep.mubr.f32.mxu0 %v6853_v7 }
  0x2c   :  { %4756 = vmatmul.mubr.msk.f32.gmra.mrb[12].mxu1 %vm81_vm0, %v7064_v55 }
  0x2d   :  { %497 = vmatprep.mubr.f32.mxu1 %v6853_v7 }
  0x2e   :  { %4731 = vmatmul.mubr.msk.f32.gmra.mrb[10].mxu0 %vm81_vm0, %v7053_v54 }
  0x2f   :  { %254 = vmatprep.mubr.f32.mxu0 %v6853_v7 }
  0x30   :  { %4757 = vmatmul.mubr.msk.f32.gmra.mrb[14].mxu1 %vm81_vm0, %v7075_v56 }
  0x31   :  { %503 = vmatprep.mubr.f32.mxu1 %v6853_v7 }
  0x32   :  { %4732 = vmatmul.mubr.msk.f32.gmra.mrb[12].mxu0 %vm81_vm0, %v7064_v55 }
  0x33   :  { %260 = vmatprep.mubr.f32.mxu0 %v6853_v7 }
  0x34   :  { %4758 = vmatmul.mubr.msk.f32.gmra.mrb[16].mxu1 %vm81_vm0, %v7092_v57 }
  0x35   :  { %509 = vmatprep.mubr.f32.mxu1 %v6853_v7 }
  0x36   :  { %4733 = vmatmul.mubr.msk.f32.gmra.mrb[14].mxu0 %vm81_vm0, %v7075_v56 }
  0x37   :  { %266 = vmatprep.mubr.f32.mxu0 %v6853_v7 }
  0x38   :  { %4759 = vmatmul.mubr.msk.f32.gmra.mrb[18].mxu1 %vm81_vm0, %v7103_v58 }
  0x39   :  { %515 = vmatprep.mubr.f32.mxu1 %v6853_v7 }
  0x3a   :  { %4734 = vmatmul.mubr.msk.f32.gmra.mrb[16].mxu0 %vm81_vm0, %v7092_v57 }
  0x3b   :  { %272 = vmatprep.mubr.f32.mxu0 %v6853_v7 }
  0x3c   :  { %4760 = vmatmul.mubr.msk.f32.gmra.mrb[20].mxu1 %vm81_vm0, %v7114_v59 }
  0x3d   :  { %521 = vmatprep.mubr.f32.mxu1 %v6853_v7 }
  0x3e   :  { %4735 = vmatmul.mubr.msk.f32.gmra.mrb[18].mxu0 %vm81_vm0, %v7103_v58 }
  0x3f   :  { %278 = vmatprep.mubr.f32.mxu0 %v6853_v7 }
  0x40   :  { %4761 = vmatmul.mubr.msk.f32.gmra.mrb[22].mxu1 %vm81_vm0, %v7125_v60 }
  0x41   :  { %527 = vmatprep.mubr.f32.mxu1 %v6853_v7 }
  0x42   :  { %4736 = vmatmul.mubr.msk.f32.gmra.mrb[20].mxu0 %vm81_vm0, %v7114_v59 }
  0x43   :  { %284 = vmatprep.mubr.f32.mxu0 %v6853_v7 }
  0x44   :  { %4762 = vmatmul.mubr.msk.f32.gmra.mrb[24].mxu1 %vm81_vm0, %v7136_v61 }
  0x45   :  { %533 = vmatprep.mubr.f32.mxu1 %v6853_v7 }
  0x46   :  { %4737 = vmatmul.mubr.msk.f32.gmra.mrb[22].mxu0 %vm81_vm0, %v7125_v60 }
  0x47   :  { %290 = vmatprep.mubr.f32.mxu0 %v6853_v7 }
  0x48   :  { %4763 = vmatmul.mubr.msk.f32.gmra.mrb[26].mxu1 %vm81_vm0, %v7147_v62 }
  0x49   :  { %539 = vmatprep.mubr.f32.mxu1 %v6853_v7 }
  0x4a   :  { %4738 = vmatmul.mubr.msk.f32.gmra.mrb[24].mxu0 %vm81_vm0, %v7136_v61 }
  0x4b   :  { %296 = vmatprep.mubr.f32.mxu0 %v6853_v7 }
  0x4c   :  { %4764 = vmatmul.mubr.msk.f32.gmra.mrb[28].mxu1 %vm81_vm0, %v7158_v63 }
  0x4d   :  { %545 = vmatprep.mubr.f32.mxu1 %v6853_v7 }
  0x4e   :  { %4739 = vmatmul.mubr.msk.f32.gmra.mrb[26].mxu0 %vm81_vm0, %v7147_v62 }
  0x4f   :  { %302 = vmatprep.mubr.f32.mxu0 %v6853_v7 }
  0x50   :  { %4765 = vmatmul.mubr.msk.f32.gmra.mrb[30].mxu1 %vm81_vm0, %v7169_v0 }
  0x51   :  { %551 = vmatprep.mubr.f32.mxu1 %v6853_v7 }
  0x52   :  { %4740 = vmatmul.mubr.msk.f32.gmra.mrb[28].mxu0 %vm81_vm0, %v7158_v63 }
  0x53   :  { %308 = vmatprep.mubr.f32.mxu0 %v6853_v7 }
  0x54   :  { %4766 = vmatmul.mubr.msk.f32.gmra.mrb[32].mxu1 %vm81_vm0, %v45_v1 }
  0x55   :  { %557 = vmatprep.mubr.f32.mxu1 %v6853_v7 }
  0x56   :  { %4741 = vmatmul.mubr.msk.f32.gmra.mrb[30].mxu0 %vm81_vm0, %v7169_v0 }
  0x57   :  { %314 = vmatprep.mubr.f32.mxu0 %v6853_v7 }
  0x58   :  { %4767 = vmatmul.mubr.msk.f32.gmra.mrb[34].mxu1 %vm81_vm0, %v46_v2 }
  0x59   :  { %563 = vmatprep.mubr.f32.mxu1 %v6853_v7 }
  0x5a   :  { %4742 = vmatmul.mubr.msk.f32.gmra.mrb[32].mxu0 %vm81_vm0, %v45_v1 }
  0x5b   :  { %320 = vmatprep.mubr.f32.mxu0 %v6853_v7 }
  0x5c   :  { %4768 = vmatmul.mubr.msk.f32.gmra.mrb[36].mxu1 %vm81_vm0, %v47_v3 }
  0x5d   :  { %569 = vmatprep.mubr.f32.mxu1 %v6853_v7 }
  0x5e   :  { %4743 = vmatmul.mubr.msk.f32.gmra.mrb[34].mxu0 %vm81_vm0, %v46_v2 }
  0x5f   :  { %326 = vmatprep.mubr.f32.mxu0 %v6853_v7 }
  0x60   :  { %4769 = vmatmul.mubr.msk.f32.gmra.mrb[38].mxu1 %vm81_vm0, %v48_v4 }
  0x61   :  { %575 = vmatprep.mubr.f32.mxu1 %v6853_v7 }
  0x62   :  { %4744 = vmatmul.mubr.msk.f32.gmra.mrb[36].mxu0 %vm81_vm0, %v47_v3 }
  0x63   :  { %332 = vmatprep.mubr.f32.mxu0 %v6853_v7 }
  0x64   :  { %4770 = vmatmul.mubr.msk.f32.gmra.mrb[40].mxu1 %vm81_vm0, %v49_v5 }
  0x65   :  { %581 = vmatprep.mubr.f32.mxu1 %v6853_v7 }
  0x66   :  { %4745 = vmatmul.mubr.msk.f32.gmra.mrb[38].mxu0 %vm81_vm0, %v48_v4 }
  0x67   :  { %338 = vmatprep.mubr.f32.mxu0 %v6853_v7 }
  0x68   :  { %4771 = vmatmul.mubr.msk.f32.gmra.mrb[42].mxu1 %vm81_vm0, %v50_v6 }
  0x69   :  { %587 = vmatprep.mubr.f32.mxu1 %v6853_v7 }
  0x6a   :  { %4746 = vmatmul.mubr.msk.f32.gmra.mrb[40].mxu0 %vm81_vm0, %v49_v5 }
  0x6b   :  { %344 = vmatprep.mubr.f32.mxu0 %v6853_v7 }
  0x6c   :  { %4772 = vmatmul.mubr.msk.f32.gmra.mrb[44].mxu1 %vm81_vm0, %v51_v8 }
  0x6d   :  { %593 = vmatprep.mubr.f32.mxu1 %v6853_v7 }
  0x6e   :  { %4747 = vmatmul.mubr.msk.f32.gmra.mrb[42].mxu0 %vm81_vm0, %v50_v6 }
  0x6f   :  { %350 = vmatprep.mubr.f32.mxu0 %v6853_v7 }
  0x70   :  { %4773 = vmatmul.mubr.msk.f32.gmra.mrb[46].mxu1 %vm81_vm0, %v52_v9 }
  0x72   :  { %4748 = vmatmul.mubr.msk.f32.gmra.mrb[44].mxu0 %vm81_vm0, %v51_v8 }
  0x73   :  { %356 = vmatprep.mubr.f32.mxu0 %v6853_v7 }
  0x76   :  { %4749 = vmatmul.mubr.msk.f32.gmra.mrb[46].mxu0 %vm81_vm0, %v52_v9 }
  0xe7   :  { %v457_v7 = vpop.f32.mrb[0].mxu1 }
  0xe8   :  { %v459_v17 = vpop.f32.mrb[1].mxu1  ;;  %v458_v21 = vadd.f32 %v457_v7, %v7243_v16 }
  0xe9   :  { %v460_v24 = vadd.f32 %v459_v17, %v7247_v18 }
  0xeb   :  { %v463_v20 = vpop.f32.mrb[2].mxu1 }
  0xec   :  { %v464_v22 = vadd.f32 %v463_v20, %v7243_v16  ;;  %v465_v23 = vpop.f32.mrb[3].mxu1 }
  0xed   :  { %v466_v25 = vadd.f32 %v465_v23, %v7247_v18  ;;  %v220_v27 = vpop.f32.mrb[0].mxu0 }
  0xee   :  { %v5923_v28 = vpack.c.bf16 %v464_v22, %v458_v21  ;;  %v6352_v29 = vpack.i.bf16 %v464_v22, %v458_v21  ;;  %v221_v30 = vadd.f32 %v220_v27, %v7250_v19  ;;  %v7263_v31 = vpop.f32.mrb[1].mxu0 }
  0xef   :  { %v7265_v32 = vpack.c.bf16 %v466_v25, %v460_v24  ;;  %v469_v33 = vpop.f32.mrb[4].mxu1 }
  0xf0   :  { %6353 = vrot.lane.b32.xlu0 %v6352_v29, %s6854_s2  ;;  %5925 = vmatprep.subr.msk.bf16.mxu0 %vm7258_vm1, %v5923_v28  ;;  %v471_v34 = vpop.f32.mrb[5].mxu1  ;;  %v470_v38 = vadd.f32 %v469_v33, %v7243_v16 }
  0xf1   :  { %5928 = vmatpush3.bf16.xpose.msk.msra.mxu0 %vm7258_vm1, %v5923_v28  ;;  %v226_v35 = vpop.f32.mrb[2].mxu0  ;;  %5351 = vmatprep.mubr.msk.f32.mxu0 %vm81_vm0, %v221_v30  ;;  %v472_v41 = vadd.f32 %v471_v34, %v7247_v18 }
  0xf2   :  { %v7273_v36 = vpop.f32.mrb[3].mxu0 }
  0xf3   :  { %v475_v37 = vpop.f32.mrb[6].mxu1 }
  0xf4   :  { %v476_v39 = vadd.f32 %v475_v37, %v7243_v16  ;;  %v477_v40 = vpop.f32.mrb[7].mxu1 }
  0xf5   :  { %v478_v42 = vadd.f32 %v477_v40, %v7247_v18  ;;  %v232_v43 = vpop.f32.mrb[4].mxu0 }
  0xf6   :  { %v6357_v44 = vpack.i.bf16 %v476_v39, %v470_v38  ;;  %v5929_v45 = vpack.c.bf16 %v476_v39, %v470_v38  ;;  %v7279_v46 = vpop.f32.mrb[5].mxu0  ;;  %v233_v9 = vadd.f32 %v232_v43, %v7250_v19  ;;  %v7319_v43 = vpack.c.bf16 %v7012_v50, %v7004_v48 }
  0xf7   :  { %v7281_v47 = vpack.c.bf16 %v478_v42, %v472_v41  ;;  %v481_v49 = vpop.f32.mrb[8].mxu1  ;;  %v7337_v50 = vpack.c.bf16 %v7031_v52, %v7020_v51  ;;  %v7356_v52 = vpack.c.bf16 %v7075_v56, %v7064_v55 }
  0xf8   :  { %6358 = vrot.lane.b32.xlu0 %v6357_v44, %s6854_s2  ;;  %v483_v1 = vpop.f32.mrb[9].mxu1  ;;  %5931 = vmatprep.subr.msk.bf16.mxu0 %vm7258_vm1, %v5929_v45  ;;  %v482_v5 = vadd.f32 %v481_v49, %v7243_v16 }
  0xf9   :  { %5934 = vmatpush3.bf16.xpose.msk.msra.mxu0 %vm7258_vm1, %v5929_v45  ;;  %v238_v2 = vpop.f32.mrb[6].mxu0  ;;  %v484_v10 = vadd.f32 %v483_v1, %v7247_v18  ;;  %v227_v45 = vadd.f32 %v226_v35, %v7250_v19  ;;  %9456 = vst [vmem:[#allocation7_spill] sm:$0xff] %v7356_v52 }
  0xfa   :  { %v7288_v3 = vpop.f32.mrb[7].mxu0  ;;  %v239_v48 = vadd.f32 %v238_v2, %v7250_v19 }
  0xfb   :  { %v487_v4 = vpop.f32.mrb[10].mxu1 }
  0xfc   :  { %v488_v6 = vadd.f32 %v487_v4, %v7243_v16  ;;  %v489_v8 = vpop.f32.mrb[11].mxu1  ;;  %849 = vrot.lane.b32.xlu0 %v221_v30, %s6854_s2  ;;  %v7346_v4 = vpack.c.bf16 %v7053_v54, %v7042_v53 }
  0xfd   :  { %v490_v12 = vadd.f32 %v489_v8, %v7247_v18  ;;  %v244_v13 = vpop.f32.mrb[8].mxu0 }
  0xfe   :  { %v5935_v7 = vpack.c.bf16 %v488_v6, %v482_v5  ;;  %v6362_v17 = vpack.i.bf16 %v488_v6, %v482_v5  ;;  %v7296_v20 = vpop.f32.mrb[9].mxu0  ;;  %v245_v24 = vadd.f32 %v244_v13, %v7250_v19  ;;  %9455 = vst [vmem:[#allocation6_spill] sm:$0xff] %v7346_v4 }
  0xff   :  { %v7298_v21 = vpack.c.bf16 %v490_v12, %v484_v10  ;;  %v493_v22 = vpop.f32.mrb[12].mxu1 }
 0x100   :  { %6363 = vrot.lane.b32.xlu1 %v6362_v17, %s6854_s2  ;;  %v495_v23 = vpop.f32.mrb[13].mxu1  ;;  %853 = vrot.lane.b32.xlu0 %v233_v9, %s6854_s2  ;;  %v494_v29 = vadd.f32 %v493_v22, %v7243_v16 }
 0x101   :  { %v250_v25 = vpop.f32.mrb[10].mxu0  ;;  %5937 = vmatprep.subr.msk.bf16.mxu0 %vm7258_vm1, %v5935_v7  ;;  %v496_v34 = vadd.f32 %v495_v23, %v7247_v18 }
 0x102   :  { %v7305_v27 = vpop.f32.mrb[11].mxu0  ;;  %5940 = vmatpush3.bf16.xpose.msk.msra.mxu0 %vm7258_vm1, %v5935_v7  ;;  %v251_v35 = vadd.f32 %v250_v25, %v7250_v19 }
 0x103   :  { %v499_v28 = vpop.f32.mrb[14].mxu1 }
 0x104   :  { %v500_v30 = vadd.f32 %v499_v28, %v7243_v16  ;;  %857 = vrot.lane.b32.xlu0 %v245_v24, %s6854_s2  ;;  %v501_v33 = vpop.f32.mrb[15].mxu1 }
 0x105   :  { %v256_v37 = vpop.f32.mrb[12].mxu0  ;;  %v502_v38 = vadd.f32 %v501_v33, %v7247_v18 }
 0x106   :  { %v6367_v39 = vpack.i.bf16 %v500_v30, %v494_v29  ;;  %v5941_v40 = vpack.c.bf16 %v500_v30, %v494_v29  ;;  %v257_v41 = vadd.f32 %v256_v37, %v7250_v19  ;;  %v7315_v42 = vpop.f32.mrb[13].mxu0 }
 0x107   :  { %v7321_v44 = vpack.c.bf16 %v502_v38, %v496_v34 }
 0x108   :  { %6368 = vrot.lane.b32.xlu1 %v6367_v39, %s6854_s2  ;;  %861 = vrot.lane.b32.xlu0 %v257_v41, %s6854_s2 }
 0x109   :  { %v262_v49 = vpop.f32.mrb[14].mxu0  ;;  %5943 = vmatprep.subr.msk.bf16.mxu0 %vm7258_vm1, %v5941_v40 }
 0x10a   :  { %5946 = vmatpush3.bf16.xpose.msk.msra.mxu0 %vm7258_vm1, %v5941_v40  ;;  %v7330_v1 = vpop.f32.mrb[15].mxu0  ;;  %v263_v51 = vadd.f32 %v262_v49, %v7250_v19 }
 0x10b   :  { %5972 = vmatprep.subr.bf16.mxu0 %v7319_v43 }
 0x10c   :  { %851 = vrot.lane.b32.xlu1 %v227_v45, %s6854_s2 }
 0x10d   :  { %v7367_v53 = vpop.f32.mrb[16].mxu0 }
 0x10e   :  { %v7369_v54 = vpop.f32.mrb[17].mxu0 }
 0x10f   :  { %9457 = vst [vmem:[#allocation8_spill] sm:$0xff] %v7369_v54 }
 0x110   :  { %855 = vrot.lane.b32.xlu1 %v239_v48, %s6854_s2 }
 0x111   :  { %5352 = vmatmul.mubr.msk.f32.vlgmr.msra.gmra.mrb[48].mxu0 %vm81_vm0, %v227_v45  ;;  %v7371_v55 = vpop.f32.mrb[18].mxu0 }
 0x112   :  { %5354 = vmatprep.mubr.msk.f32.mxu0 %vm81_vm0, %v233_v9  ;;  %5974 = vmatpush3.bf16.msra.mxu0 %v7319_v43  ;;  %v7373_v56 = vpop.f32.mrb[19].mxu0 }
 0x113   :  { %5976 = vmatprep.subr.bf16.mxu0 %v7337_v50  ;;  %9458 = vst [vmem:[#allocation9_spill] sm:$0xff] %v7373_v56 }
 0x114   :  { %859 = vrot.lane.b32.xlu1 %v251_v35, %s6854_s2 }
 0x115   :  { %5355 = vmatmul.mubr.msk.f32.gmra.mrb[50].mxu0 %vm81_vm0, %v239_v48  ;;  %v7375_v2 = vpop.f32.mrb[20].mxu0 }
 0x116   :  { %5357 = vmatprep.mubr.msk.f32.mxu0 %vm81_vm0, %v245_v24  ;;  %5978 = vmatpush3.bf16.msra.mxu0 %v7337_v50  ;;  %v7377_v5 = vpop.f32.mrb[21].mxu0 }
 0x117   :  { %5980 = vmatprep.subr.bf16.mxu0 %v7346_v4  ;;  %9459 = vst [vmem:[#allocation10_spill] sm:$0xff] %v7377_v5 }
 0x118   :  { %863 = vrot.lane.b32.xlu1 %v263_v51, %s6854_s2 }
 0x119   :  { %5358 = vmatmul.mubr.msk.f32.gmra.mrb[52].mxu0 %vm81_vm0, %v251_v35  ;;  %v7379_v6 = vpop.f32.mrb[22].mxu0 }
 0x11a   :  { %5360 = vmatprep.mubr.msk.f32.mxu0 %vm81_vm0, %v257_v41  ;;  %5982 = vmatpush3.bf16.msra.mxu0 %v7346_v4  ;;  %v7381_v8 = vpop.f32.mrb[23].mxu0 }
 0x11b   :  { %5984 = vmatprep.subr.bf16.mxu0 %v7356_v52  ;;  %9460 = vst [vmem:[#allocation11_spill] sm:$0xff] %v7381_v8 }
 0x11d   :  { %5361 = vmatmul.mubr.msk.f32.gmra.mrb[54].mxu0 %vm81_vm0, %v263_v51  ;;  %v7383_v9 = vpop.f32.mrb[24].mxu0 }
 0x11e   :  { %5986 = vmatpush3.bf16.msra.mxu0 %v7356_v52  ;;  %v7385_v10 = vpop.f32.mrb[25].mxu0 }
 0x11f   :  { %5988 = vmatprep.subr.bf16.mxu0 %v7319_v43  ;;  %9461 = vst [vmem:[#allocation12_spill] sm:$0xff] %v7385_v10 }
 0x121   :  { %v7387_v12 = vpop.f32.mrb[26].mxu0 }
 0x122   :  { %v7389_v13 = vpop.f32.mrb[27].mxu0 }
 0x123   :  { %9462 = vst [vmem:[#allocation13_spill] sm:$0xff] %v7389_v13 }
 0x125   :  { %v7391_v7 = vpop.f32.mrb[28].mxu0 }
 0x126   :  { %v7393_v17 = vpop.f32.mrb[29].mxu0 }
 0x127   :  { %9463 = vst [vmem:[#allocation14_spill] sm:$0xff] %v7393_v17 }
 0x129   :  { %v7395_v22 = vpop.f32.mrb[30].mxu0 }
 0x12a   :  { %v7397_v23 = vpop.f32.mrb[31].mxu0 }
 0x12b   :  { %9464 = vst [vmem:[#allocation15_spill] sm:$0xff] %v7397_v23 }
 0x12d   :  { %v7399_v24 = vpop.f32.mrb[32].mxu0 }
 0x12e   :  { %9465 = vst [vmem:[#allocation16_spill] sm:$0xff] %v7399_v24  ;;  %v7401_v25 = vpop.f32.mrb[33].mxu0 }
 0x12f   :  { %9466 = vst [vmem:[#allocation17_spill] sm:$0xff] %v7401_v25 }
 0x131   :  { %v7403_v28 = vpop.f32.mrb[34].mxu0 }
 0x132   :  { %9467 = vst [vmem:[#allocation18_spill] sm:$0xff] %v7403_v28  ;;  %v7405_v29 = vpop.f32.mrb[35].mxu0 }
 0x133   :  { %9468 = vst [vmem:[#allocation19_spill] sm:$0xff] %v7405_v29  ;;  %v505_v29 = vpop.f32.mrb[16].mxu1 }
 0x135   :  { %v7407_v30 = vpop.f32.mrb[36].mxu0 }
 0x136   :  { %9469 = vst [vmem:[#allocation20_spill] sm:$0xff] %v7407_v30  ;;  %v7409_v33 = vpop.f32.mrb[37].mxu0 }
 0x137   :  { %9470 = vst [vmem:[#allocation21_spill] sm:$0xff] %v7409_v33 }
 0x139   :  { %v7411_v34 = vpop.f32.mrb[38].mxu0 }
 0x13a   :  { %9471 = vst [vmem:[#allocation22_spill] sm:$0xff] %v7411_v34  ;;  %v7413_v37 = vpop.f32.mrb[39].mxu0 }
 0x13b   :  { %9472 = vst [vmem:[#allocation23_spill] sm:$0xff] %v7413_v37 }
 0x13d   :  { %v7415_v38 = vpop.f32.mrb[40].mxu0 }
 0x13e   :  { %9473 = vst [vmem:[#allocation24_spill] sm:$0xff] %v7415_v38  ;;  %v7417_v39 = vpop.f32.mrb[41].mxu0 }
 0x13f   :  { %9474 = vst [vmem:[#allocation25_spill] sm:$0xff] %v7417_v39  ;;  %v7434_v39 = vadd.f32 %v505_v29, %v7243_v16 }
 0x141   :  { %v7419_v40 = vpop.f32.mrb[42].mxu0 }
 0x142   :  { %9475 = vst [vmem:[#allocation26_spill] sm:$0xff] %v7419_v40  ;;  %v7421_v41 = vpop.f32.mrb[43].mxu0 }
 0x143   :  { %9476 = vst [vmem:[#allocation27_spill] sm:$0xff] %v7421_v41  ;;  %v507_v41 = vpop.f32.mrb[17].mxu1 }
 0x144   :  { %v511_v25 = vpop.f32.mrb[18].mxu1 }
 0x145   :  { %v7423_v45 = vpop.f32.mrb[44].mxu0 }
 0x146   :  { %9477 = vst [vmem:[#allocation28_spill] sm:$0xff] %v7423_v45  ;;  %v7425_v49 = vpop.f32.mrb[45].mxu0 }
 0x147   :  { %9478 = vst [vmem:[#allocation29_spill] sm:$0xff] %v7425_v49  ;;  %v508_v49 = vadd.f32 %v507_v41, %v7247_v18 }
 0x149   :  { %v7427_v14 = vpop.f32.mrb[46].mxu0 }
 0x14a   :  { %9479 = vst [vmem:[#allocation30_spill] sm:$0xff] %v7427_v14  ;;  %v7429_v33 = vpop.f32.mrb[47].mxu0  ;;  %v513_v14 = vpop.f32.mrb[19].mxu1 }
 0x14b   :  { %9480 = vst [vmem:[#allocation31_spill] sm:$0xff] %v7429_v33 }
 0x162   :  { %v6354_v48 = vpop.permute.xlu0 %6353 }
 0x163   :  { %v6356_v35 = vunpack.i.h.bf16 %v6354_v48  ;;  %v6355_v51 = vunpack.i.l.bf16 %v6354_v48  ;;  %v7440_v48 = vadd.f32 %v511_v25, %v7243_v16 }
 0x165   :  { %v5947_v37 = vpack.c.bf16 %v6356_v35, %v6355_v51  ;;  %v514_v35 = vadd.f32 %v513_v14, %v7247_v18  ;;  %v517_v51 = vpop.f32.mrb[20].mxu1  ;;  %v7447_v38 = vpack.c.bf16 %v7440_v48, %v7434_v39 }
 0x166   :  { %v7452_v25 = vadd.f32 %v517_v51, %v7243_v16 }
 0x167   :  { %5949 = vmatprep.subr.msk.bf16.mxu1 %vm7258_vm1, %v5947_v37  ;;  %v7449_v41 = vpack.c.bf16 %v514_v35, %v508_v49 }
 0x168   :  { %5952 = vmatpush3.bf16.xpose.msk.msra.mxu1 %vm7258_vm1, %v5947_v37  ;;  %v519_v37 = vpop.f32.mrb[21].mxu1  ;;  %9482 = vst [vmem:[#allocation33_spill] sm:$0xff] %v7452_v25 }
 0x169   :  { %9481 = vst [vmem:[#allocation32_spill] sm:$0xff] %v7449_v41  ;;  %v520_v34 = vadd.f32 %v519_v37, %v7247_v18  ;;  %v523_v30 = vpop.f32.mrb[22].mxu1 }
 0x16a   :  { %v6359_v33 = vpop.permute.xlu0 %6358  ;;  %v7456_v28 = vadd.f32 %v523_v30, %v7243_v16 }
 0x16b   :  { %v6361_v45 = vunpack.i.h.bf16 %v6359_v33  ;;  %v6360_v40 = vunpack.i.l.bf16 %v6359_v33  ;;  %v525_v33 = vpop.f32.mrb[23].mxu1 }
 0x16c   :  { %9483 = vst [vmem:[#allocation34_spill] sm:$0xff] %v7456_v28  ;;  %v526_v29 = vadd.f32 %v525_v33, %v7247_v18  ;;  %v529_v23 = vpop.f32.mrb[24].mxu1  ;;  %v7466_v35 = vpack.c.bf16 %v7456_v28, %v7452_v25 }
 0x16d   :  { %v5953_v14 = vpack.c.bf16 %v6361_v45, %v6360_v40  ;;  %v7469_v30 = vadd.f32 %v529_v23, %v7243_v16  ;;  %v531_v40 = vpop.f32.mrb[25].mxu1 }
 0x16e   :  { %v850_v24 = vpop.permute.xlu0 %849  ;;  %v7473_v45 = vpack.c.bf16 %v526_v29, %v520_v34  ;;  %v532_v51 = vadd.f32 %v531_v40, %v7247_v18  ;;  %v535_v37 = vpop.f32.mrb[26].mxu1 }
 0x16f   :  { %5955 = vmatprep.subr.msk.bf16.mxu1 %vm7258_vm1, %v5953_v14  ;;  %5379 = vmatprep.mubr.msk.f32.mxu1 %vm81_vm0, %v850_v24  ;;  %v7477_v24 = vadd.f32 %v535_v37, %v7243_v16  ;;  %v537_v33 = vpop.f32.mrb[27].mxu1 }
 0x170   :  { %5958 = vmatpush3.bf16.xpose.msk.msra.mxu1 %vm7258_vm1, %v5953_v14  ;;  %9484 = vst [vmem:[#allocation35_spill] sm:$0xff] %v7473_v45  ;;  %v538_v17 = vadd.f32 %v537_v33, %v7247_v18  ;;  %v541_v34 = vpop.f32.mrb[28].mxu1 }
 0x171   :  { %v7484_v14 = vpack.c.bf16 %v7477_v24, %v7469_v30  ;;  %v7489_v40 = vadd.f32 %v541_v34, %v7243_v16  ;;  %v543_v37 = vpop.f32.mrb[29].mxu1 }
 0x172   :  { %v6364_v49 = vpop.permute.xlu1 %6363  ;;  %v7486_v29 = vpack.c.bf16 %v538_v17, %v532_v51  ;;  %v544_v5 = vadd.f32 %v543_v37, %v7247_v18  ;;  %v547_v33 = vpop.f32.mrb[30].mxu1 }
 0x173   :  { %v6366_v13 = vunpack.i.h.bf16 %v6364_v49  ;;  %v6365_v10 = vunpack.i.l.bf16 %v6364_v49  ;;  %v7493_v49 = vadd.f32 %v547_v33, %v7243_v16  ;;  %v549_v56 = vpop.f32.mrb[31].mxu1 }
 0x174   :  { %9485 = vst [vmem:[#allocation36_spill] sm:$0xff] %v7486_v29  ;;  %v550_v23 = vadd.f32 %v549_v56, %v7247_v18  ;;  %v553_v54 = vpop.f32.mrb[32].mxu1 }
 0x175   :  { %v5959_v8 = vpack.c.bf16 %v6366_v13, %v6365_v10  ;;  %v7504_v10 = vpack.c.bf16 %v7493_v49, %v7489_v40  ;;  %v7507_v13 = vadd.f32 %v553_v54, %v7243_v16  ;;  %v555_v51 = vpop.f32.mrb[33].mxu1 }
 0x176   :  { %v7509_v34 = vpack.c.bf16 %v550_v23, %v544_v5  ;;  %v559_v37 = vpop.f32.mrb[34].mxu1  ;;  %v556_v56 = vadd.f32 %v555_v51, %v7247_v18 }
 0x177   :  { %5961 = vmatprep.subr.msk.bf16.mxu1 %vm7258_vm1, %v5959_v8  ;;  %9486 = vst [vmem:[#allocation37_spill] sm:$0xff] %v7507_v13  ;;  %v7513_v29 = vadd.f32 %v559_v37, %v7243_v16  ;;  %v561_v17 = vpop.f32.mrb[35].mxu1 }
 0x178   :  { %5964 = vmatpush3.bf16.xpose.msk.msra.mxu1 %vm7258_vm1, %v5959_v8  ;;  %9487 = vst [vmem:[#allocation38_spill] sm:$0xff] %v7509_v34  ;;  %v562_v5 = vadd.f32 %v561_v17, %v7247_v18  ;;  %v565_v23 = vpop.f32.mrb[36].mxu1 }
 0x179   :  { %9488 = vst [vmem:[#allocation39_spill] sm:$0xff] %v7513_v29  ;;  %v7519_v54 = vpack.c.bf16 %v7513_v29, %v7507_v13  ;;  %v7523_v52 = vadd.f32 %v565_v23, %v7243_v16  ;;  %v567_v51 = vpop.f32.mrb[37].mxu1 }
 0x17a   :  { %v6369_v33 = vpop.permute.xlu1 %6368  ;;  %v7525_v4 = vpack.c.bf16 %v562_v5, %v556_v56  ;;  %v571_v25 = vpop.f32.mrb[38].mxu1 }
 0x17b   :  { %v6371_v8 = vunpack.i.h.bf16 %v6369_v33  ;;  %v6370_v45 = vunpack.i.l.bf16 %v6369_v33  ;;  %9489 = vst [vmem:[#allocation40_spill] sm:$0xff] %v7519_v54  ;;  %9490 = vst [vmem:[#allocation41_spill] sm:$0xff] %v7523_v52  ;;  %v568_v33 = vadd.f32 %v567_v51, %v7247_v18  ;;  %v7531_v41 = vadd.f32 %v571_v25, %v7243_v16  ;;  %v573_v13 = vpop.f32.mrb[39].mxu1  ;;  %v854_v56 = vpop.permute.xlu0 %853 }
 0x17c   :  { %9491 = vst [vmem:[#allocation42_spill] sm:$0xff] %v7525_v4  ;;  %v577_v17 = vpop.f32.mrb[40].mxu1 }
 0x17d   :  { %v5965_v34 = vpack.c.bf16 %v6371_v8, %v6370_v45  ;;  %9492 = vst [vmem:[#allocation43_spill] sm:$0xff] %v7531_v41  ;;  %v574_v45 = vadd.f32 %v573_v13, %v7247_v18  ;;  %v7543_v5 = vpack.c.bf16 %v7531_v41, %v7523_v52  ;;  %v7546_v25 = vadd.f32 %v577_v17, %v7243_v16  ;;  %v579_v23 = vpop.f32.mrb[41].mxu1 }
 0x17e   :  { %v852_v37 = vpop.permute.xlu1 %851  ;;  %v580_v13 = vadd.f32 %v579_v23, %v7247_v18  ;;  %v583_v51 = vpop.f32.mrb[42].mxu1 }
 0x17f   :  { %5967 = vmatprep.subr.msk.bf16.mxu1 %vm7258_vm1, %v5965_v34  ;;  %9493 = vst [vmem:[#allocation44_spill] sm:$0xff] %v7543_v5  ;;  %9494 = vst [vmem:[#allocation45_spill] sm:$0xff] %v7546_v25  ;;  %v7552_v4 = vadd.f32 %v583_v51, %v7243_v16  ;;  %v585_v29 = vpop.f32.mrb[43].mxu1 }
 0x180   :  { %5970 = vmatpush3.bf16.xpose.msk.msra.mxu1 %vm7258_vm1, %v5965_v34  ;;  %v7548_v34 = vpack.c.bf16 %v574_v45, %v568_v33  ;;  %v586_v8 = vadd.f32 %v585_v29, %v7247_v18  ;;  %v589_v28 = vpop.f32.mrb[44].mxu1  ;;  %v858_v29 = vpop.permute.xlu0 %857 }
 0x181   :  { %6005 = vmatprep.subr.msk.bf16.mxu1 %vm7258_vm1, %v7265_v32  ;;  %9496 = vst [vmem:[#allocation47_spill] sm:$0xff] %v7552_v4  ;;  %v7559_v17 = vpack.c.bf16 %v7552_v4, %v7546_v25  ;;  %v7562_v33 = vadd.f32 %v589_v28, %v7243_v16  ;;  %v591_v45 = vpop.f32.mrb[45].mxu1 }
 0x182   :  { %9495 = vst [vmem:[#allocation46_spill] sm:$0xff] %v7548_v34  ;;  %v856_v54 = vpop.permute.xlu1 %855  ;;  %v7564_v23 = vpack.c.bf16 %v586_v8, %v580_v13  ;;  %v592_v51 = vadd.f32 %v591_v45, %v7247_v18  ;;  %v595_v34 = vpop.f32.mrb[46].mxu1 }
 0x183   :  { %9497 = vst [vmem:[#allocation48_spill] sm:$0xff] %v7559_v17  ;;  %9498 = vst [vmem:[#allocation49_spill] sm:$0xff] %v7562_v33  ;;  %v7569_v41 = vadd.f32 %v595_v34, %v7243_v16  ;;  %v597_v52 = vpop.f32.mrb[47].mxu1 }
 0x184   :  { %9499 = vst [vmem:[#allocation50_spill] sm:$0xff] %v7564_v23  ;;  %v598_v28 = vadd.f32 %v597_v52, %v7247_v18  ;;  %v9503_v18 = vsub.s32 1, %v7231_v11 }
 0x185   :  { %9500 = vst [vmem:[#allocation51_spill] sm:$0xff] %v7569_v41  ;;  %v7583_v16 = vpack.c.bf16 %v7569_v41, %v7562_v33 }
 0x186   :  { %v860_v8 = vpop.permute.xlu1 %859  ;;  %v7585_v34 = vpack.c.bf16 %v598_v28, %v592_v51  ;;  %v7592_v52 = vrot.slane %v7241_v15, %v9503_v18 }
 0x187   :  { %5380 = vmatmul.mubr.msk.f32.vlgmr.msra.gmra.mrb[48].mxu1 %vm81_vm0, %v852_v37  ;;  %9501 = vst [vmem:[#allocation52_spill] sm:$0xff] %v7583_v16 }
 0x188   :  { %6008 = vmatpush3.bf16.xpose.msk.msra.mxu1 %vm7258_vm1, %v7265_v32  ;;  %5382 = vmatprep.mubr.msk.f32.mxu1 %vm81_vm0, %v854_v56  ;;  %9502 = vst [vmem:[#allocation53_spill] sm:$0xff] %v7585_v34  ;;  %v862_v32 = vpop.permute.xlu0 %861  ;;  %9504 = vst [vmem:[#allocation54_spill] sm:$0xff] %v7592_v52  ;;  %v229_v11 = vadd.f32 %v7273_v36, %v7592_v52  ;;  %v235_v15 = vadd.f32 %v7279_v46, %v7592_v52 }
 0x189   :  { %6011 = vmatprep.subr.msk.bf16.mxu1 %vm7258_vm1, %v7281_v47  ;;  %v247_v36 = vadd.f32 %v7296_v20, %v7592_v52  ;;  %v253_v46 = vadd.f32 %v7305_v27, %v7592_v52  ;;  %v265_v20 = vadd.f32 %v7330_v1, %v7592_v52  ;;  %v7673_v27 = vadd.f32 %v7371_v55, %v7250_v19 }
 0x18a   :  { %v864_v56 = vpop.permute.xlu1 %863  ;;  %v7709_v1 = vadd.f32 %v7391_v7, %v7250_v19 }
 0x18b   :  { %5383 = vmatmul.mubr.msk.f32.gmra.mrb[50].mxu1 %vm81_vm0, %v856_v54  ;;  %v223_v54 = vadd.f32 %v7263_v31, %v7592_v52  ;;  %v241_v31 = vadd.f32 %v7288_v3, %v7592_v52  ;;  %v7644_v3 = vadd.f32 %v7367_v53, %v7250_v19 }
 0x18c   :  { %5385 = vmatprep.mubr.msk.f32.mxu1 %vm81_vm0, %v858_v29 }
 0x18f   :  { %5386 = vmatmul.mubr.msk.f32.gmra.mrb[52].mxu1 %vm81_vm0, %v860_v8 }
 0x190   :  { %6014 = vmatpush3.bf16.xpose.msk.msra.mxu1 %vm7258_vm1, %v7281_v47  ;;  %5388 = vmatprep.mubr.msk.f32.mxu1 %vm81_vm0, %v862_v32  ;;  %v259_v47 = vadd.f32 %v7315_v42, %v7592_v52  ;;  %v7677_v42 = vadd.f32 %v7375_v2, %v7250_v19 }
 0x191   :  { %6017 = vmatprep.subr.msk.bf16.mxu1 %vm7258_vm1, %v7298_v21 }
 0x193   :  { %5389 = vmatmul.mubr.msk.f32.gmra.mrb[54].mxu1 %vm81_vm0, %v864_v56 }
 0x194   :  { %5463 = vmatprep.mubr.msk.f32.mxu1 %vm81_vm0, %v223_v54 }
 0x198   :  { %6020 = vmatpush3.bf16.xpose.msk.msra.mxu1 %vm7258_vm1, %v7298_v21  ;;  %v7665_v21 = vpack.c.bf16 %v7103_v58, %v7092_v57  ;;  %v7685_v57 = vadd.f32 %v7379_v6, %v7250_v19  ;;  %v7691_v58 = vadd.f32 %v7383_v9, %v7250_v19 }
 0x199   :  { %6023 = vmatprep.subr.msk.bf16.mxu1 %vm7258_vm1, %v7321_v44 }
 0x1a0   :  { %6026 = vmatpush3.bf16.xpose.msk.msra.mxu1 %vm7258_vm1, %v7321_v44  ;;  %v7681_v44 = vpack.c.bf16 %v7125_v60, %v7114_v59  ;;  %v7699_v59 = vpack.c.bf16 %v7147_v62, %v7136_v61  ;;  %v7703_v60 = vadd.f32 %v7387_v12, %v7250_v19  ;;  %v7717_v61 = vpack.c.bf16 %v7169_v0, %v7158_v63 }
 0x1a1   :  { %6045 = vmatprep.subr.msk.bf16.mxu1 %vm7258_vm1, %v7447_v38  ;;  %v7721_v62 = vadd.f32 %v7395_v22, %v7250_v19 }
 0x1a2   :  { %9505 = vst [vmem:[#allocation55_spill] sm:$0xff] %v7699_v59  ;;  %9506 = vst [vmem:[#allocation56_spill] sm:$0xff] %v7717_v61 }
 0x1a7   :  { %5464 = vmatmul.mubr.msk.f32.vlgmr.msra.gmra.mrb[56].mxu1 %vm81_vm0, %v229_v11 }
 0x1a8   :  { %5466 = vmatprep.mubr.msk.f32.mxu1 %vm81_vm0, %v235_v15  ;;  %6048 = vmatpush3.bf16.xpose.msk.msra.mxu1 %vm7258_vm1, %v7447_v38 }
 0x1a9   :  { %6051 = vmatprep.subr.msk.bf16.mxu1 %vm7258_vm1, %v7466_v35 }
 0x1ab   :  { %5467 = vmatmul.mubr.msk.f32.gmra.mrb[58].mxu1 %vm81_vm0, %v241_v31 }
 0x1ac   :  { %5469 = vmatprep.mubr.msk.f32.mxu1 %vm81_vm0, %v247_v36 }
 0x1af   :  { %5470 = vmatmul.mubr.msk.f32.gmra.mrb[60].mxu1 %vm81_vm0, %v253_v46 }
 0x1b0   :  { %5472 = vmatprep.mubr.msk.f32.mxu1 %vm81_vm0, %v259_v47  ;;  %6054 = vmatpush3.bf16.xpose.msk.msra.mxu1 %vm7258_vm1, %v7466_v35 }
 0x1b1   :  { %6057 = vmatprep.subr.msk.bf16.mxu1 %vm7258_vm1, %v7484_v14 }
 0x1b3   :  { %5473 = vmatmul.mubr.msk.f32.gmra.mrb[62].mxu1 %vm81_vm0, %v265_v20 }
 0x1b4   :  { %5519 = vmatprep.mubr.msk.f32.mxu1 %vm81_vm0, %v7644_v3 }
 0x1b8   :  { %6060 = vmatpush3.bf16.xpose.msk.msra.mxu1 %vm7258_vm1, %v7484_v14 }
 0x1b9   :  { %6063 = vmatprep.subr.msk.bf16.mxu1 %vm7258_vm1, %v7504_v10 }
 0x1c0   :  { %6066 = vmatpush3.bf16.xpose.msk.msra.mxu1 %vm7258_vm1, %v7504_v10 }
 0x1c1   :  { %6108 = vmatprep.subr.bf16.mxu1 %v7665_v21 }
 0x1c7   :  { %5520 = vmatmul.mubr.msk.f32.vlgmr.msra.gmra.mrb[64].mxu1 %vm81_vm0, %v7673_v27 }
 0x1c8   :  { %5522 = vmatprep.mubr.msk.f32.mxu1 %vm81_vm0, %v7677_v42  ;;  %6110 = vmatpush3.bf16.msra.mxu1 %v7665_v21 }
 0x1c9   :  { %6112 = vmatprep.subr.bf16.mxu1 %v7681_v44 }
 0x1cb   :  { %5523 = vmatmul.mubr.msk.f32.gmra.mrb[66].mxu1 %vm81_vm0, %v7685_v57 }
 0x1cc   :  { %5525 = vmatprep.mubr.msk.f32.mxu1 %vm81_vm0, %v7691_v58  ;;  %6114 = vmatpush3.bf16.msra.mxu1 %v7681_v44 }
 0x1cd   :  { %6116 = vmatprep.subr.bf16.mxu1 %v7699_v59 }
 0x1cf   :  { %5526 = vmatmul.mubr.msk.f32.gmra.mrb[68].mxu1 %vm81_vm0, %v7703_v60 }
 0x1d0   :  { %5528 = vmatprep.mubr.msk.f32.mxu1 %vm81_vm0, %v7709_v1  ;;  %6118 = vmatpush3.bf16.msra.mxu1 %v7699_v59 }
 0x1d1   :  { %6120 = vmatprep.subr.bf16.mxu1 %v7717_v61 }
 0x1d3   :  { %5529 = vmatmul.mubr.msk.f32.gmra.mrb[70].mxu1 %vm81_vm0, %v7721_v62 }
 0x1d4   :  { %6122 = vmatpush3.bf16.msra.mxu1 %v7717_v61 }
 0x1d5   :  { %6148 = vmatprep.subr.bf16.mxu1 %v7665_v21 }
 0x1e4   :  { %v5353_v63 = vpop.f32.mrb[48].mxu0 }
 0x1e5   :  { %v714_v0 = vpop.f32.mrb[49].mxu0 }
 0x1e6   :  { %v7737_v14 = vmul.f32 0.125, %v714_v0 }
 0x1e8   :  { %v5356_v53 = vpop.f32.mrb[50].mxu0  ;;  %v761_v8 = vsel %vm81_vm0, %v7737_v14, -inf }
 0x1e9   :  { %v724_v55 = vpop.f32.mrb[51].mxu0 }
 0x1ec   :  { %v5359_v2 = vpop.f32.mrb[52].mxu0 }
 0x1ed   :  { %v734_v6 = vpop.f32.mrb[53].mxu0 }
 0x1f0   :  { %v5362_v9 = vpop.f32.mrb[54].mxu0 }
 0x1f1   :  { %v744_v12 = vpop.f32.mrb[55].mxu0 }
 0x25a   :  { %v5381_v7 = vpop.f32.mrb[48].mxu1 }
 0x25b   :  { %v7733_v22 = vmul.f32 0.125, %v5381_v7  ;;  %v979_v38 = vpop.f32.mrb[49].mxu1  ;;  %v7765_v7 = vmul.f32 0.125, %v724_v55  ;;  %v7779_v55 = vmul.f32 0.125, %v744_v12 }
 0x25c   :  { %v7735_v35 = vmul.f32 0.125, %v979_v38 }
 0x25d   :  { %v1029_v10 = vsel %vm81_vm0, %v7733_v22, -inf }
 0x25e   :  { %1030 = vmax.xlane.f32.xlu1 %v1029_v10  ;;  %v5384_v13 = vpop.f32.mrb[50].mxu1  ;;  %v1026_v45 = vsel %vm81_vm0, %v7735_v35, -inf }
 0x25f   :  { %1027 = vmax.xlane.f32.xlu0 %v1026_v45  ;;  %v989_v51 = vpop.f32.mrb[51].mxu1  ;;  %v7743_v29 = vmul.f32 0.125, %v5384_v13  ;;  %v7771_v13 = vmul.f32 0.125, %v5353_v63  ;;  %v7773_v45 = vmul.f32 0.125, %v734_v6  ;;  %v7785_v63 = vmul.f32 0.125, %v5359_v2 }
 0x260   :  { %v7745_v28 = vmul.f32 0.125, %v989_v51  ;;  %v767_v51 = vsel %vm81_vm0, %v7765_v7, -inf }
 0x261   :  { %v1035_v15 = vsel %vm81_vm0, %v7743_v29, -inf }
 0x262   :  { %v5387_v32 = vpop.f32.mrb[52].mxu1  ;;  %762 = vmax.xlane.f32.xlu1 %v761_v8  ;;  %v1032_v18 = vsel %vm81_vm0, %v7745_v28, -inf  ;;  %v7777_v8 = vmul.f32 0.125, %v5356_v53  ;;  %v7791_v53 = vmul.f32 0.125, %v5362_v9 }
 0x263   :  { %1033 = vmax.xlane.f32.xlu0 %v1032_v18  ;;  %v999_v56 = vpop.f32.mrb[53].mxu1  ;;  %v7751_v54 = vmul.f32 0.125, %v5387_v32  ;;  %v764_v32 = vsel %vm81_vm0, %v7771_v13, -inf  ;;  %v773_v18 = vsel %vm81_vm0, %v7773_v45, -inf }
 0x264   :  { %v7753_v11 = vmul.f32 0.125, %v999_v56  ;;  %v770_v6 = vsel %vm81_vm0, %v7777_v8, -inf  ;;  %v779_v56 = vsel %vm81_vm0, %v7779_v55, -inf }
 0x265   :  { %v1041_v0 = vsel %vm81_vm0, %v7751_v54, -inf }
 0x266   :  { %v5390_v31 = vpop.f32.mrb[54].mxu1  ;;  %v1038_v36 = vsel %vm81_vm0, %v7753_v11, -inf }
 0x267   :  { %1036 = vmax.xlane.f32.xlu0 %v1035_v15  ;;  %v1009_v46 = vpop.f32.mrb[55].mxu1  ;;  %1039 = vmax.xlane.f32.xlu1 %v1038_v36  ;;  %v7759_v47 = vmul.f32 0.125, %v5390_v31  ;;  %v776_v15 = vsel %vm81_vm0, %v7785_v63, -inf }
 0x268   :  { %v7761_v20 = vmul.f32 0.125, %v1009_v46 }
 0x269   :  { %v1047_v10 = vsel %vm81_vm0, %v7759_v47, -inf }
 0x26a   :  { %v1044_v38 = vsel %vm81_vm0, %v7761_v20, -inf }
 0x26b   :  { %1042 = vmax.xlane.f32.xlu0 %v1041_v0  ;;  %1045 = vmax.xlane.f32.xlu1 %v1044_v38  ;;  %v782_v0 = vsel %vm81_vm0, %v7791_v53, -inf }
 0x26f   :  { %1048 = vmax.xlane.f32.xlu0 %v1047_v10  ;;  %768 = vmax.xlane.f32.xlu1 %v767_v51 }
 0x273   :  { %765 = vmax.xlane.f32.xlu0 %v764_v32  ;;  %774 = vmax.xlane.f32.xlu1 %v773_v18 }
 0x277   :  { %771 = vmax.xlane.f32.xlu0 %v770_v6  ;;  %780 = vmax.xlane.f32.xlu1 %v779_v56 }
 0x27a   :  { %v5465_v12 = vpop.f32.mrb[56].mxu1 }
 0x27b   :  { %v1486_v31 = vpop.f32.mrb[57].mxu1  ;;  %777 = vmax.xlane.f32.xlu0 %v776_v15  ;;  %v7797_v2 = vmul.f32 0.125, %v5465_v12 }
 0x27c   :  { %v7795_v36 = vmul.f32 0.125, %v1486_v31 }
 0x27d   :  { %v1536_v18 = vsel %vm81_vm0, %v7797_v2, -inf }
 0x27e   :  { %v5468_v46 = vpop.f32.mrb[58].mxu1  ;;  %v1533_v38 = vsel %vm81_vm0, %v7795_v36, -inf }
 0x27f   :  { %v1496_v10 = vpop.f32.mrb[59].mxu1  ;;  %783 = vmax.xlane.f32.xlu0 %v782_v0  ;;  %1534 = vmax.xlane.f32.xlu1 %v1533_v38  ;;  %v7805_v51 = vmul.f32 0.125, %v5468_v46 }
 0x280   :  { %v7803_v9 = vmul.f32 0.125, %v1496_v10 }
 0x281   :  { %v1542_v0 = vsel %vm81_vm0, %v7805_v51, -inf }
 0x282   :  { %v5471_v32 = vpop.f32.mrb[60].mxu1  ;;  %v1539_v6 = vsel %vm81_vm0, %v7803_v9, -inf }
 0x283   :  { %v1506_v56 = vpop.f32.mrb[61].mxu1  ;;  %1537 = vmax.xlane.f32.xlu0 %v1536_v18  ;;  %1540 = vmax.xlane.f32.xlu1 %v1539_v6  ;;  %v7813_v15 = vmul.f32 0.125, %v5471_v32 }
 0x284   :  { %v7811_v12 = vmul.f32 0.125, %v1506_v56 }
 0x285   :  { %v1548_v18 = vsel %vm81_vm0, %v7813_v15, -inf }
 0x286   :  { %v5474_v31 = vpop.f32.mrb[62].mxu1  ;;  %v1545_v46 = vsel %vm81_vm0, %v7811_v12, -inf }
 0x287   :  { %v1516_v38 = vpop.f32.mrb[63].mxu1  ;;  %1543 = vmax.xlane.f32.xlu0 %v1542_v0  ;;  %1546 = vmax.xlane.f32.xlu1 %v1545_v46  ;;  %v7819_v10 = vmul.f32 0.125, %v5474_v31 }
 0x289   :  { %v1554_v32 = vsel %vm81_vm0, %v7819_v10, -inf }
 0x28b   :  { %1549 = vmax.xlane.f32.xlu0 %v1548_v18 }
 0x28f   :  { %1555 = vmax.xlane.f32.xlu0 %v1554_v32 }
 0x29a   :  { %v7825_v6 = vpop.f32.mrb[64].mxu1 }
 0x29b   :  { %9507 = vst [vmem:[#allocation57_spill] sm:$0xff] %v7825_v6  ;;  %v7827_v56 = vpop.f32.mrb[65].mxu1 }
 0x29c   :  { %9508 = vst [vmem:[#allocation58_spill] sm:$0xff] %v7827_v56 }
 0x29e   :  { %v7829_v37 = vpop.f32.mrb[66].mxu1 }
 0x29f   :  { %9509 = vst [vmem:[#allocation59_spill] sm:$0xff] %v7829_v37  ;;  %v7831_v34 = vpop.f32.mrb[67].mxu1 }
 0x2a0   :  { %9510 = vst [vmem:[#allocation60_spill] sm:$0xff] %v7831_v34 }
 0x2a2   :  { %v7833_v0 = vpop.f32.mrb[68].mxu1 }
 0x2a3   :  { %9511 = vst [vmem:[#allocation61_spill] sm:$0xff] %v7833_v0  ;;  %v7835_v31 = vpop.f32.mrb[69].mxu1 }
 0x2a4   :  { %9512 = vst [vmem:[#allocation62_spill] sm:$0xff] %v7835_v31 }
 0x2a6   :  { %v7837_v46 = vpop.f32.mrb[70].mxu1 }
 0x2a7   :  { %9513 = vst [vmem:[#allocation63_spill] sm:$0xff] %v7837_v46  ;;  %v7839_v23 = vpop.f32.mrb[71].mxu1 }
 0x2a8   :  { %9514 = vst [vmem:[#allocation64_spill] sm:$0xff] %v7839_v23  ;;  %v7847_v23 = vmul.f32 0.125, %v1516_v38 }
 0x2aa   :  { %v1551_v38 = vsel %vm81_vm0, %v7847_v23, -inf }
 0x2eb   :  { %v1031_v18 = vpop.xlane.xlu1 %1030 }
 0x2ec   :  { %v1028_v33 = vpop.xlane.xlu0 %1027 }
 0x2ef   :  { %v763_v41 = vpop.xlane.xlu1 %762 }
 0x2f0   :  { %v785_v32 = vsub.f32 %v7737_v14, %v763_v41  ;;  %v1034_v25 = vpop.xlane.xlu0 %1033  ;;  %v1050_v14 = vsub.f32 %v7735_v35, %v1028_v33 }
 0x2f1   :  { %v1052_v61 = vsub.f32 %v7745_v28, %v1034_v25 }
 0x2f2   :  { %v793_v4 = vmul.f32 1.442695, %v785_v32 }
 0x2f4   :  { %6412 = vpow2.f32 %v793_v4  ;;  %v1037_v16 = vpop.xlane.xlu0 %1036  ;;  %v1040_v19 = vpop.xlane.xlu1 %1039 }
 0x2f8   :  { %v1043_v17 = vpop.xlane.xlu0 %1042  ;;  %v7842_v5 = vpop.xlane.xlu1 %1045 }
 0x2f9   :  { %v1055_v25 = vsub.f32 %v7751_v54, %v1043_v17  ;;  %v1056_v17 = vsub.f32 %v7761_v20, %v7842_v5 }
 0x2fc   :  { %v1049_v52 = vpop.xlane.xlu0 %1048  ;;  %v769_v0 = vpop.xlane.xlu1 %768 }
 0x2fd   :  { %v787_v31 = vsub.f32 %v7765_v7, %v769_v0  ;;  %v1051_v7 = vsub.f32 %v7733_v22, %v1031_v18  ;;  %v1062_v22 = vmul.f32 1.442695, %v1052_v61 }
 0x2fe   :  { %v7845_v46 = vpop.eup %6412 }
 0x2ff   :  { %v797_v37 = vmul.f32 1.442695, %v787_v31  ;;  %v809_v41 = vsel %vm81_vm0, %v7845_v46, 0.0  ;;  %v1058_v31 = vmul.f32 1.442695, %v1050_v14 }
 0x300   :  { %v766_v4 = vpop.xlane.xlu0 %765  ;;  %v775_v32 = vpop.xlane.xlu1 %774  ;;  %810 = vadd.xlane.f32.xlu1 %v809_v41  ;;  %v1060_v35 = vmul.f32 1.442695, %v1051_v7  ;;  %v1070_v7 = vmul.f32 1.442695, %v1056_v17 }
 0x301   :  { %v786_v34 = vsub.f32 %v7771_v13, %v766_v4  ;;  %v789_v6 = vsub.f32 %v7773_v45, %v775_v32  ;;  %6414 = vpow2.f32 %v797_v37  ;;  %v1053_v13 = vsub.f32 %v7743_v29, %v1037_v16 }
 0x302   :  { %v1057_v29 = vsub.f32 %v7759_v47, %v1049_v52 }
 0x303   :  { %v795_v0 = vmul.f32 1.442695, %v786_v34  ;;  %v801_v56 = vmul.f32 1.442695, %v789_v6  ;;  %v1054_v34 = vsub.f32 %v7753_v11, %v1040_v19  ;;  %v1064_v18 = vmul.f32 1.442695, %v1053_v13 }
 0x304   :  { %v772_v59 = vpop.xlane.xlu0 %771  ;;  %1552 = vmax.xlane.f32.xlu1 %v1551_v38  ;;  %v781_v6 = vpop.xlane.xlu1 %780  ;;  %v1068_v19 = vmul.f32 1.442695, %v1055_v25  ;;  %v1072_v52 = vmul.f32 1.442695, %v1057_v29 }
 0x305   :  { %6416 = vpow2.f32 %v795_v0  ;;  %v788_v33 = vsub.f32 %v7777_v8, %v772_v59  ;;  %v1066_v59 = vmul.f32 1.442695, %v1054_v34  ;;  %v791_v8 = vsub.f32 %v7779_v55, %v781_v6 }
 0x306   :  { %6418 = vpow2.f32 %v801_v56 }
 0x307   :  { %v799_v37 = vmul.f32 1.442695, %v788_v33  ;;  %6420 = vpow2.f32 %v1058_v31  ;;  %v805_v54 = vmul.f32 1.442695, %v791_v8 }
 0x308   :  { %v778_v45 = vpop.xlane.xlu0 %777 }
 0x309   :  { %6422 = vpow2.f32 %v799_v37  ;;  %v790_v47 = vsub.f32 %v7785_v63, %v778_v45 }
 0x30a   :  { %6424 = vpow2.f32 %v1060_v35 }
 0x30b   :  { %v7862_v28 = vpop.eup %6414  ;;  %6426 = vpow2.f32 %v1062_v22  ;;  %v803_v31 = vmul.f32 1.442695, %v790_v47 }
 0x30c   :  { %v784_v56 = vpop.xlane.xlu0 %783  ;;  %v815_v16 = vsel %vm81_vm0, %v7862_v28, 0.0  ;;  %6428 = vpow2.f32 %v1064_v18 }
 0x30d   :  { %816 = vadd.xlane.f32.xlu1 %v815_v16  ;;  %6430 = vpow2.f32 %v1066_v59  ;;  %v792_v33 = vsub.f32 %v7791_v53, %v784_v56 }
 0x30e   :  { %6432 = vpow2.f32 %v1068_v19 }
 0x30f   :  { %v7867_v61 = vpop.eup %6416  ;;  %6434 = vpow2.f32 %v805_v54  ;;  %v807_v34 = vmul.f32 1.442695, %v792_v33 }
 0x310   :  { %v7870_v11 = vpop.eup %6418  ;;  %v812_v55 = vsel %vm81_vm0, %v7867_v61, 0.0  ;;  %v1538_v4 = vpop.xlane.xlu0 %1537  ;;  %6436 = vpow2.f32 %v1072_v52 }
 0x311   :  { %813 = vadd.xlane.f32.xlu0 %v812_v55  ;;  %v821_v41 = vsel %vm81_vm0, %v7870_v11, 0.0  ;;  %v7878_v14 = vpop.eup %6420  ;;  %6438 = vpow2.f32 %v1070_v7  ;;  %v1558_v45 = vsub.f32 %v7797_v2, %v1538_v4 }
 0x312   :  { %822 = vadd.xlane.f32.xlu1 %v821_v41  ;;  %v1074_v0 = vsel %vm81_vm0, %v7878_v14, 0.0  ;;  %6440 = vpow2.f32 %v803_v31 }
 0x313   :  { %v7880_v32 = vpop.eup %6422  ;;  %6442 = vpow2.f32 %v807_v34  ;;  %v1567_v8 = vmul.f32 1.442695, %v1558_v45 }
 0x314   :  { %v818_v5 = vsel %vm81_vm0, %v7880_v32, 0.0  ;;  %v7885_v20 = vpop.eup %6424  ;;  %v1544_v63 = vpop.xlane.xlu0 %1543 }
 0x315   :  { %819 = vadd.xlane.f32.xlu0 %v818_v5  ;;  %v7889_v38 = vpop.eup %6426  ;;  %v1077_v35 = vsel %vm81_vm0, %v7885_v20, 0.0  ;;  %v1560_v56 = vsub.f32 %v7805_v51, %v1544_v63  ;;  %6444 = vpow2.f32 %v1567_v8 }
 0x316   :  { %1075 = vadd.xlane.f32.xlu1 %v1074_v0  ;;  %v7894_v13 = vpop.eup %6428  ;;  %v1080_v37 = vsel %vm81_vm0, %v7889_v38, 0.0 }
 0x317   :  { %v7898_v22 = vpop.eup %6430  ;;  %v1083_v53 = vsel %vm81_vm0, %v7894_v13, 0.0  ;;  %v1571_v17 = vmul.f32 1.442695, %v1560_v56 }
 0x318   :  { %v7903_v6 = vpop.eup %6432  ;;  %v1086_v18 = vsel %vm81_vm0, %v7898_v22, 0.0  ;;  %v1550_v59 = vpop.xlane.xlu0 %1549 }
 0x319   :  { %1078 = vadd.xlane.f32.xlu0 %v1077_v35  ;;  %v7907_v25 = vpop.eup %6434  ;;  %v1089_v2 = vsel %vm81_vm0, %v7903_v6, 0.0  ;;  %v1562_v54 = vsub.f32 %v7813_v15, %v1550_v59  ;;  %6446 = vpow2.f32 %v1571_v17 }
 0x31a   :  { %1081 = vadd.xlane.f32.xlu1 %v1080_v37  ;;  %v7912_v16 = vpop.eup %6436  ;;  %v827_v19 = vsel %vm81_vm0, %v7907_v25, 0.0  ;;  %v9515_v37 = vpack.i.bf16 %v7440_v48, %v7434_v39 }
 0x31b   :  { %v7916_v29 = vpop.eup %6438  ;;  %v1095_v51 = vsel %vm81_vm0, %v7912_v16, 0.0  ;;  %v1575_v52 = vmul.f32 1.442695, %v1562_v54 }
 0x31c   :  { %v1556_v55 = vpop.xlane.xlu0 %1555  ;;  %v7921_v41 = vpop.eup %6440  ;;  %v1092_v4 = vsel %vm81_vm0, %v7916_v29, 0.0 }
 0x31d   :  { %1084 = vadd.xlane.f32.xlu0 %v1083_v53  ;;  %v1564_v47 = vsub.f32 %v7819_v10, %v1556_v55  ;;  %v824_v7 = vsel %vm81_vm0, %v7921_v41, 0.0  ;;  %v7928_v5 = vpop.eup %6442  ;;  %6448 = vpow2.f32 %v1575_v52  ;;  %v9517_v52 = vpack.i.bf16 %v7493_v49, %v7489_v40 }
 0x31e   :  { %1087 = vadd.xlane.f32.xlu1 %v1086_v18  ;;  %v830_v0 = vsel %vm81_vm0, %v7928_v5, 0.0  ;;  %v1535_v18 = vpop.xlane.xlu1 %1534 }
 0x31f   :  { %v1579_v15 = vmul.f32 1.442695, %v1564_v47  ;;  %v7932_v31 = vpop.eup %6444  ;;  %v1557_v8 = vsub.f32 %v7795_v36, %v1535_v18 }
 0x320   :  { %v1584_v33 = vsel %vm81_vm0, %v7932_v31, 0.0 }
 0x321   :  { %1090 = vadd.xlane.f32.xlu0 %v1089_v2  ;;  %6450 = vpow2.f32 %v1579_v15  ;;  %v1565_v56 = vmul.f32 1.442695, %v1557_v8 }
 0x322   :  { %828 = vadd.xlane.f32.xlu1 %v827_v19  ;;  %v1541_v59 = vpop.xlane.xlu1 %1540 }
 0x323   :  { %v7936_v63 = vpop.eup %6446  ;;  %v1559_v2 = vsub.f32 %v7803_v9, %v1541_v59  ;;  %6452 = vpow2.f32 %v1565_v56 }
 0x324   :  { %v1590_v10 = vsel %vm81_vm0, %v7936_v63, 0.0 }
 0x325   :  { %1096 = vadd.xlane.f32.xlu0 %v1095_v51  ;;  %v1569_v39 = vmul.f32 1.442695, %v1559_v2 }
 0x326   :  { %1093 = vadd.xlane.f32.xlu1 %v1092_v4  ;;  %v1547_v19 = vpop.xlane.xlu1 %1546  ;;  %v9516_v4 = vpack.i.bf16 %v7477_v24, %v7469_v30 }
 0x327   :  { %v7940_v35 = vpop.eup %6448  ;;  %v1561_v48 = vsub.f32 %v7811_v12, %v1547_v19  ;;  %6454 = vpow2.f32 %v1569_v39 }
 0x328   :  { %v1596_v34 = vsel %vm81_vm0, %v7940_v35, 0.0 }
 0x329   :  { %825 = vadd.xlane.f32.xlu0 %v824_v7  ;;  %v1573_v17 = vmul.f32 1.442695, %v1561_v48 }
 0x32b   :  { %v7948_v45 = vpop.eup %6450  ;;  %6456 = vpow2.f32 %v1573_v17  ;;  %v9518_v17 = vld [vmem:[#allocation34_spill] sm:$0xff] }
 0x32c   :  { %v1602_v53 = vsel %vm81_vm0, %v7948_v45, 0.0 }
 0x32d   :  { %831 = vadd.xlane.f32.xlu0 %v830_v0  ;;  %v7955_v54 = vpop.eup %6452 }
 0x32e   :  { %v1581_v55 = vsel %vm81_vm0, %v7955_v54, 0.0 }
 0x331   :  { %1585 = vadd.xlane.f32.xlu0 %v1584_v33  ;;  %v7959_v51 = vpop.eup %6454 }
 0x332   :  { %v1587_v36 = vsel %vm81_vm0, %v7959_v51, 0.0 }
 0x335   :  { %1591 = vadd.xlane.f32.xlu0 %v1590_v10  ;;  %v7963_v9 = vpop.eup %6456 }
 0x336   :  { %v1593_v12 = vsel %vm81_vm0, %v7963_v9, 0.0 }
 0x337   :  { %6373 = vrot.lane.b32.xlu1 %v9515_v37, %s6854_s2 }
 0x339   :  { %1597 = vadd.xlane.f32.xlu0 %v1596_v34 }
 0x33d   :  { %1603 = vadd.xlane.f32.xlu0 %v1602_v53 }
 0x35b   :  { %1582 = vadd.xlane.f32.xlu1 %v1581_v55 }
 0x35f   :  { %1588 = vadd.xlane.f32.xlu1 %v1587_v36 }
 0x363   :  { %1594 = vadd.xlane.f32.xlu1 %v1593_v12 }
 0x374   :  { %6383 = vrot.lane.b32.xlu1 %v9516_v4, %s6854_s2  ;;  %v9521_v4 = vld [vmem:[#allocation6_spill] sm:$0xff] }
 0x378   :  { %6388 = vrot.lane.b32.xlu1 %v9517_v52, %s6854_s2 }
 0x37c   :  { %2039 = vrot.lane.b32.xlu1 %v7644_v3, %s6854_s2 }
 0x380   :  { %2041 = vrot.lane.b32.xlu1 %v7673_v27, %s6854_s2 }
 0x384   :  { %2045 = vrot.lane.b32.xlu1 %v7685_v57, %s6854_s2 }
 0x388   :  { %2049 = vrot.lane.b32.xlu1 %v7703_v60, %s6854_s2 }
 0x38c   :  { %2053 = vrot.lane.b32.xlu1 %v7721_v62, %s6854_s2 }
 0x38d   :  { %v811_v30 = vpop.xlane.xlu1 %810 }
 0x391   :  { %v1553_v24 = vpop.xlane.xlu1 %1552 }
 0x392   :  { %v1563_v40 = vsub.f32 %v7847_v23, %v1553_v24  ;;  %v9522_v24 = vld [vmem:[#allocation7_spill] sm:$0xff] }
 0x394   :  { %v1577_v49 = vmul.f32 1.442695, %v1563_v40 }
 0x396   :  { %6458 = vpow2.f32 %v1577_v49 }
 0x39a   :  { %v817_v47 = vpop.xlane.xlu1 %816 }
 0x39e   :  { %v814_v3 = vpop.xlane.xlu0 %813 }
 0x39f   :  { %v823_v7 = vpop.xlane.xlu1 %822 }
 0x3a0   :  { %v7986_v15 = vpop.eup %6458 }
 0x3a1   :  { %v1599_v27 = vsel %vm81_vm0, %v7986_v15, 0.0 }
 0x3a2   :  { %v820_v57 = vpop.xlane.xlu0 %819  ;;  %1600 = vadd.xlane.f32.xlu0 %v1599_v27 }
 0x3a3   :  { %v1076_v60 = vpop.xlane.xlu1 %1075 }
 0x3a4   :  { %6460 = vrcp.f32 %v1076_v60 }
 0x3a6   :  { %v1079_v0 = vpop.xlane.xlu0 %1078 }
 0x3a7   :  { %6462 = vrcp.f32 %v1079_v0  ;;  %v1082_v62 = vpop.xlane.xlu1 %1081 }
 0x3a8   :  { %6464 = vrcp.f32 %v1082_v62 }
 0x3aa   :  { %v1085_v33 = vpop.xlane.xlu0 %1084 }
 0x3ab   :  { %6466 = vrcp.f32 %v1085_v33  ;;  %v1088_v23 = vpop.xlane.xlu1 %1087 }
 0x3ac   :  { %6468 = vrcp.f32 %v1088_v23 }
 0x3ae   :  { %v6461_v10 = vpop.eup %6460  ;;  %v1091_v37 = vpop.xlane.xlu0 %1090 }
 0x3af   :  { %6470 = vrcp.f32 %v1091_v37  ;;  %v829_v34 = vpop.xlane.xlu1 %828  ;;  %v1099_v53 = vmul.f32 %v6461_v10, %v7878_v14 }
 0x3b0   :  { %6472 = vrcp.f32 %v811_v30 }
 0x3b1   :  { %v6463_v18 = vpop.eup %6462  ;;  %5407 = vmatprep.mubr.msk.f32.mxu0 %vm81_vm0, %v1099_v53 }
 0x3b2   :  { %v6465_v59 = vpop.eup %6464  ;;  %v1101_v8 = vmul.f32 %v6463_v18, %v7885_v20  ;;  %v1097_v56 = vpop.xlane.xlu0 %1096 }
 0x3b3   :  { %6474 = vrcp.f32 %v1097_v56  ;;  %v1094_v2 = vpop.xlane.xlu1 %1093  ;;  %v1103_v19 = vmul.f32 %v6465_v59, %v7889_v38  ;;  %v9519_v38 = vld [vmem:[#allocation33_spill] sm:$0xff] }
 0x3b4   :  { %6476 = vrcp.f32 %v1094_v2  ;;  %5408 = vmatmul.mubr.msk.f32.vlgmr.msra.gmra.mrb[56].mxu0 %vm81_vm0, %v1101_v8  ;;  %v9520_v55 = vpack.i.bf16 %v9518_v17, %v9519_v38 }
 0x3b5   :  { %v6467_v39 = vpop.eup %6466  ;;  %5410 = vmatprep.mubr.msk.f32.mxu0 %vm81_vm0, %v1103_v19  ;;  %5990 = vmatpush3.bf16.msra.mxu0 %v7319_v43  ;;  %6478 = vrcp.f32 %v814_v3 }
 0x3b6   :  { %v6469_v14 = vpop.eup %6468  ;;  %v1105_v48 = vmul.f32 %v6467_v39, %v7894_v13  ;;  %5992 = vmatprep.subr.bf16.mxu0 %v7337_v50  ;;  %6480 = vrcp.f32 %v817_v47  ;;  %v826_v12 = vpop.xlane.xlu0 %825 }
 0x3b7   :  { %v1107_v20 = vmul.f32 %v6469_v14, %v7898_v22  ;;  %6482 = vrcp.f32 %v820_v57 }
 0x3b8   :  { %6378 = vrot.lane.b32.xlu0 %v9520_v55, %s6854_s2  ;;  %5411 = vmatmul.mubr.msk.f32.gmra.mrb[58].mxu0 %vm81_vm0, %v1105_v48  ;;  %6484 = vrcp.f32 %v823_v7 }
 0x3b9   :  { %v6471_v36 = vpop.eup %6470  ;;  %5413 = vmatprep.mubr.msk.f32.mxu0 %vm81_vm0, %v1107_v20  ;;  %5994 = vmatpush3.bf16.msra.mxu0 %v7337_v50  ;;  %6486 = vrcp.f32 %v826_v12 }
 0x3ba   :  { %v1109_v13 = vmul.f32 %v6471_v36, %v7903_v6  ;;  %5996 = vmatprep.subr.bf16.mxu0 %v9521_v4  ;;  %v6473_v22 = vpop.eup %6472  ;;  %6488 = vrcp.f32 %v829_v34  ;;  %v832_v49 = vpop.xlane.xlu0 %831 }
 0x3bb   :  { %6490 = vrcp.f32 %v832_v49 }
 0x3bc   :  { %2043 = vrot.lane.b32.xlu0 %v7677_v42, %s6854_s2  ;;  %5414 = vmatmul.mubr.msk.f32.gmra.mrb[60].mxu0 %vm81_vm0, %v1109_v13  ;;  %v834_v42 = vmul.f32 %v6473_v22, %v7845_v46 }
 0x3bd   :  { %v6475_v52 = vpop.eup %6474  ;;  %5998 = vmatpush3.bf16.msra.mxu0 %v9521_v4 }
 0x3be   :  { %v6477_v30 = vpop.eup %6476  ;;  %6000 = vmatprep.subr.bf16.mxu0 %v9522_v24  ;;  %v1113_v40 = vmul.f32 %v6475_v52, %v7912_v16 }
 0x3bf   :  { %v1111_v6 = vmul.f32 %v6477_v30, %v7916_v29  ;;  %v6479_v47 = vpop.eup %6478 }
 0x3c0   :  { %2047 = vrot.lane.b32.xlu0 %v7691_v58, %s6854_s2  ;;  %v6481_v3 = vpop.eup %6480  ;;  %v836_v16 = vmul.f32 %v6479_v47, %v7867_v61  ;;  %v9523_v47 = vld [vmem:[#allocation55_spill] sm:$0xff] }
 0x3c1   :  { %5416 = vmatprep.mubr.msk.f32.mxu0 %vm81_vm0, %v1111_v6  ;;  %6002 = vmatpush3.bf16.msra.mxu0 %v9522_v24  ;;  %v6483_v58 = vpop.eup %6482  ;;  %v838_v29 = vmul.f32 %v6481_v3, %v7862_v28  ;;  %v9524_v3 = vld [vmem:[#allocation56_spill] sm:$0xff] }
 0x3c2   :  { %5417 = vmatmul.mubr.msk.f32.gmra.mrb[62].mxu0 %vm81_vm0, %v1113_v40  ;;  %6028 = vmatprep.subr.bf16.mxu0 %v7319_v43  ;;  %v6485_v7 = vpop.eup %6484  ;;  %v840_v46 = vmul.f32 %v6483_v58, %v7880_v32  ;;  %v9525_v58 = vld [vmem:[#allocation32_spill] sm:$0xff] }
 0x3c3   :  { %5435 = vmatprep.mubr.msk.f32.mxu0 %vm81_vm0, %v834_v42  ;;  %v6487_v27 = vpop.eup %6486  ;;  %v842_v61 = vmul.f32 %v6485_v7, %v7870_v11 }
 0x3c4   :  { %2051 = vrot.lane.b32.xlu0 %v7709_v1, %s6854_s2  ;;  %v6489_v57 = vpop.eup %6488  ;;  %v6374_v1 = vpop.permute.xlu1 %6373 }
 0x3c5   :  { %v6491_v28 = vpop.eup %6490  ;;  %v846_v60 = vmul.f32 %v6489_v57, %v7907_v25  ;;  %v6376_v0 = vunpack.i.h.bf16 %v6374_v1  ;;  %v6375_v32 = vunpack.i.l.bf16 %v6374_v1  ;;  %v1586_v25 = vpop.xlane.xlu0 %1585 }
 0x3c6   :  { %5436 = vmatmul.mubr.msk.f32.vlgmr.msra.gmra.mrb[56].mxu0 %vm81_vm0, %v836_v16  ;;  %6492 = vrcp.f32 %v1586_v25 }
 0x3c7   :  { %6030 = vmatpush3.bf16.msra.mxu0 %v7319_v43  ;;  %5438 = vmatprep.mubr.msk.f32.mxu0 %vm81_vm0, %v838_v29  ;;  %v844_v43 = vmul.f32 %v6487_v27, %v7921_v41  ;;  %v6067_v11 = vpack.c.bf16 %v6376_v0, %v6375_v32 }
 0x3c8   :  { %6032 = vmatprep.subr.bf16.mxu0 %v7337_v50 }
 0x3c9   :  { %v1592_v41 = vpop.xlane.xlu0 %1591 }
 0x3ca   :  { %5439 = vmatmul.mubr.msk.f32.gmra.mrb[58].mxu0 %vm81_vm0, %v840_v46 }
 0x3cb   :  { %6034 = vmatpush3.bf16.msra.mxu0 %v7337_v50  ;;  %5441 = vmatprep.mubr.msk.f32.mxu0 %vm81_vm0, %v842_v61  ;;  %v848_v50 = vmul.f32 %v6491_v28, %v7928_v5 }
 0x3cc   :  { %6036 = vmatprep.subr.bf16.mxu0 %v9521_v4 }
 0x3cd   :  { %v1598_v23 = vpop.xlane.xlu0 %1597 }
 0x3ce   :  { %5442 = vmatmul.mubr.msk.f32.gmra.mrb[60].mxu0 %vm81_vm0, %v844_v43 }
 0x3cf   :  { %6038 = vmatpush3.bf16.msra.mxu0 %v9521_v4  ;;  %5444 = vmatprep.mubr.msk.f32.mxu0 %vm81_vm0, %v846_v60 }
 0x3d0   :  { %6040 = vmatprep.subr.bf16.mxu0 %v9522_v24  ;;  %v6493_v5 = vpop.eup %6492 }
 0x3d1   :  { %v1608_v53 = vmul.f32 %v6493_v5, %v7932_v31  ;;  %v1604_v39 = vpop.xlane.xlu0 %1603 }
 0x3d2   :  { %5445 = vmatmul.mubr.msk.f32.gmra.mrb[62].mxu0 %vm81_vm0, %v848_v50 }
 0x3d3   :  { %6042 = vmatpush3.bf16.msra.mxu0 %v9522_v24 }
 0x3d4   :  { %6069 = vmatprep.subr.msk.bf16.mxu0 %vm7258_vm1, %v6067_v11 }
 0x3e8   :  { %v1583_v62 = vpop.xlane.xlu1 %1582 }
 0x3e9   :  { %6494 = vrcp.f32 %v1583_v62 }
 0x3ea   :  { %6496 = vrcp.f32 %v1592_v41 }
 0x3ec   :  { %v1589_v33 = vpop.xlane.xlu1 %1588 }
 0x3ed   :  { %6498 = vrcp.f32 %v1589_v33 }
 0x3ee   :  { %6500 = vrcp.f32 %v1598_v23 }
 0x3f0   :  { %v1595_v10 = vpop.xlane.xlu1 %1594 }
 0x3f1   :  { %6502 = vrcp.f32 %v1595_v10 }
 0x3f2   :  { %6504 = vrcp.f32 %v1604_v39 }
 0x3f3   :  { %v6495_v37 = vpop.eup %6494 }
 0x3f4   :  { %v1606_v34 = vmul.f32 %v6495_v37, %v7955_v54  ;;  %v6497_v18 = vpop.eup %6496 }
 0x3f5   :  { %v1612_v56 = vmul.f32 %v6497_v18, %v7936_v63 }
 0x3f6   :  { %5491 = vmatprep.mubr.msk.f32.mxu0 %vm81_vm0, %v1606_v34 }
 0x3f7   :  { %v6499_v59 = vpop.eup %6498  ;;  %5492 = vmatmul.mubr.msk.f32.vlgmr.msra.gmra.mrb[56].mxu0 %vm81_vm0, %v1608_v53 }
 0x3f8   :  { %6072 = vmatpush3.bf16.xpose.msk.msra.mxu0 %vm7258_vm1, %v6067_v11  ;;  %v1610_v8 = vmul.f32 %v6499_v59, %v7959_v51  ;;  %v6501_v2 = vpop.eup %6500  ;;  %v6384_v51 = vpop.permute.xlu1 %6383 }
 0x3f9   :  { %v1616_v54 = vmul.f32 %v6501_v2, %v7940_v35  ;;  %v6386_v48 = vunpack.i.h.bf16 %v6384_v51  ;;  %v6385_v20 = vunpack.i.l.bf16 %v6384_v51 }
 0x3fa   :  { %5494 = vmatprep.mubr.msk.f32.mxu0 %vm81_vm0, %v1610_v8 }
 0x3fb   :  { %v6503_v19 = vpop.eup %6502  ;;  %5495 = vmatmul.mubr.msk.f32.gmra.mrb[58].mxu0 %vm81_vm0, %v1612_v56  ;;  %v6079_v36 = vpack.c.bf16 %v6386_v48, %v6385_v20 }
 0x3fc   :  { %v1614_v31 = vmul.f32 %v6503_v19, %v7963_v9  ;;  %v6389_v12 = vpop.permute.xlu1 %6388  ;;  %v6505_v35 = vpop.eup %6504 }
 0x3fd   :  { %v6391_v4 = vunpack.i.h.bf16 %v6389_v12  ;;  %v6390_v22 = vunpack.i.l.bf16 %v6389_v12  ;;  %v1620_v52 = vmul.f32 %v6505_v35, %v7948_v45 }
 0x3fe   :  { %5497 = vmatprep.mubr.msk.f32.mxu0 %vm81_vm0, %v1614_v31 }
 0x3ff   :  { %5498 = vmatmul.mubr.msk.f32.gmra.mrb[60].mxu0 %vm81_vm0, %v1616_v54  ;;  %v6085_v24 = vpack.c.bf16 %v6391_v4, %v6390_v22 }
 0x400   :  { %v2040_v30 = vpop.permute.xlu1 %2039 }
 0x404   :  { %v2042_v40 = vpop.permute.xlu1 %2041 }
 0x42f   :  { %v1601_v14 = vpop.xlane.xlu0 %1600 }
 0x430   :  { %6506 = vrcp.f32 %v1601_v14 }
 0x433   :  { %v6379_v63 = vpop.permute.xlu0 %6378 }
 0x434   :  { %v6381_v17 = vunpack.i.h.bf16 %v6379_v63  ;;  %v6380_v38 = vunpack.i.l.bf16 %v6379_v63 }
 0x436   :  { %v6073_v55 = vpack.c.bf16 %v6381_v17, %v6380_v38 }
 0x437   :  { %v2044_v45 = vpop.permute.xlu0 %2043 }
 0x438   :  { %6075 = vmatprep.subr.msk.bf16.mxu0 %vm7258_vm1, %v6073_v55 }
 0x439   :  { %6078 = vmatpush3.bf16.xpose.msk.msra.mxu0 %vm7258_vm1, %v6073_v55 }
 0x43a   :  { %v6507_v9 = vpop.eup %6506  ;;  %6081 = vmatprep.subr.msk.bf16.mxu0 %vm7258_vm1, %v6079_v36 }
 0x43b   :  { %v1618_v13 = vmul.f32 %v6507_v9, %v7986_v15  ;;  %v2046_v15 = vpop.permute.xlu1 %2045  ;;  %v2048_v6 = vpop.permute.xlu0 %2047 }
 0x43d   :  { %5500 = vmatprep.mubr.msk.f32.mxu0 %vm81_vm0, %v1618_v13 }
 0x43e   :  { %5501 = vmatmul.mubr.msk.f32.gmra.mrb[62].mxu0 %vm81_vm0, %v1620_v52 }
 0x43f   :  { %5547 = vmatprep.mubr.msk.f32.mxu0 %vm81_vm0, %v2040_v30  ;;  %v2050_v49 = vpop.permute.xlu1 %2049  ;;  %v2052_v42 = vpop.permute.xlu0 %2051 }
 0x441   :  { %6084 = vmatpush3.bf16.xpose.msk.msra.mxu0 %vm7258_vm1, %v6079_v36 }
 0x442   :  { %6087 = vmatprep.subr.msk.bf16.mxu0 %vm7258_vm1, %v6085_v24 }
 0x443   :  { %v2054_v16 = vpop.permute.xlu1 %2053 }
 0x449   :  { %6090 = vmatpush3.bf16.xpose.msk.msra.mxu0 %vm7258_vm1, %v6085_v24 }
 0x44a   :  { %6092 = vmatprep.subr.bf16.mxu0 %v7665_v21 }
 0x450   :  { %5548 = vmatmul.mubr.msk.f32.vlgmr.msra.gmra.mrb[64].mxu0 %vm81_vm0, %v2042_v40 }
 0x451   :  { %5550 = vmatprep.mubr.msk.f32.mxu0 %vm81_vm0, %v2044_v45  ;;  %6094 = vmatpush3.bf16.msra.mxu0 %v7665_v21 }
 0x452   :  { %6096 = vmatprep.subr.bf16.mxu0 %v7681_v44 }
 0x454   :  { %5551 = vmatmul.mubr.msk.f32.gmra.mrb[66].mxu0 %vm81_vm0, %v2046_v15 }
 0x455   :  { %5553 = vmatprep.mubr.msk.f32.mxu0 %vm81_vm0, %v2048_v6  ;;  %6098 = vmatpush3.bf16.msra.mxu0 %v7681_v44 }
 0x456   :  { %6100 = vmatprep.subr.bf16.mxu0 %v9523_v47 }
 0x458   :  { %5554 = vmatmul.mubr.msk.f32.gmra.mrb[68].mxu0 %vm81_vm0, %v2050_v49 }
 0x459   :  { %5556 = vmatprep.mubr.msk.f32.mxu0 %vm81_vm0, %v2052_v42  ;;  %6102 = vmatpush3.bf16.msra.mxu0 %v9523_v47 }
 0x45a   :  { %6104 = vmatprep.subr.bf16.mxu0 %v9524_v3 }
 0x45c   :  { %5557 = vmatmul.mubr.msk.f32.gmra.mrb[70].mxu0 %vm81_vm0, %v2054_v16 }
 0x45d   :  { %6106 = vmatpush3.bf16.msra.mxu0 %v9524_v3 }
 0x45e   :  { %6125 = vmatprep.subr.msk.bf16.mxu0 %vm7258_vm1, %v9525_v58 }
 0x4ca   :  { %v8098_v29 = vpop.f32.mrb[56].mxu0 }
 0x4cb   :  { %v8100_v7 = vpop.f32.mrb[57].mxu0 }
 0x4ce   :  { %v8102_v46 = vpop.f32.mrb[58].mxu0 }
 0x4cf   :  { %v8104_v27 = vpop.f32.mrb[59].mxu0 }
 0x4d2   :  { %v8106_v61 = vpop.f32.mrb[60].mxu0 }
 0x4d3   :  { %v8108_v57 = vpop.f32.mrb[61].mxu0 }
 0x511   :  { %v8110_v1 = vpop.f32.mrb[62].mxu0 }
 0x512   :  { %v8112_v43 = vpop.f32.mrb[63].mxu0 }
 0x523   :  { %v5549_v28 = vpop.f32.mrb[64].mxu0 }
 0x524   :  { %v2209_v60 = vmul.f32 0.125, %v5549_v28  ;;  %v2169_v0 = vpop.f32.mrb[65].mxu0 }
 0x525   :  { %v2208_v32 = vmul.f32 0.125, %v2169_v0 }
 0x526   :  { %v2219_v50 = vsel %vm81_vm0, %v2209_v60, -inf }
 0x527   :  { %2220 = vmax.xlane.f32.xlu1 %v2219_v50  ;;  %v5552_v11 = vpop.f32.mrb[66].mxu0  ;;  %v2216_v25 = vsel %vm81_vm0, %v2208_v32, -inf }
 0x528   :  { %2217 = vmax.xlane.f32.xlu0 %v2216_v25  ;;  %v2179_v41 = vpop.f32.mrb[67].mxu0  ;;  %v2211_v33 = vmul.f32 0.125, %v5552_v11 }
 0x529   :  { %v2210_v62 = vmul.f32 0.125, %v2179_v41 }
 0x52a   :  { %v2225_v18 = vsel %vm81_vm0, %v2211_v33, -inf }
 0x52b   :  { %v5555_v23 = vpop.f32.mrb[68].mxu0  ;;  %v2222_v10 = vsel %vm81_vm0, %v2210_v62, -inf }
 0x52c   :  { %2223 = vmax.xlane.f32.xlu0 %v2222_v10  ;;  %v2189_v5 = vpop.f32.mrb[69].mxu0  ;;  %v2213_v34 = vmul.f32 0.125, %v5555_v23  ;;  %v9526_v10 = vld [vmem:[#allocation58_spill] sm:$0xff] }
 0x52d   :  { %v2212_v37 = vmul.f32 0.125, %v2189_v5  ;;  %v8149_v5 = vmul.f32 0.125, %v9526_v10 }
 0x52e   :  { %v2231_v19 = vsel %vm81_vm0, %v2213_v34, -inf }
 0x52f   :  { %v5558_v53 = vpop.f32.mrb[70].mxu0  ;;  %v2228_v59 = vsel %vm81_vm0, %v2212_v37, -inf }
 0x530   :  { %2226 = vmax.xlane.f32.xlu0 %v2225_v18  ;;  %2229 = vmax.xlane.f32.xlu1 %v2228_v59  ;;  %v2199_v8 = vpop.f32.mrb[71].mxu0  ;;  %v2215_v2 = vmul.f32 0.125, %v5558_v53  ;;  %v9527_v53 = vld [vmem:[#allocation57_spill] sm:$0xff] }
 0x531   :  { %v2214_v56 = vmul.f32 0.125, %v2199_v8  ;;  %v8156_v18 = vmul.f32 0.125, %v9527_v53  ;;  %v9528_v8 = vld [vmem:[#allocation60_spill] sm:$0xff] }
 0x532   :  { %v2237_v54 = vsel %vm81_vm0, %v2215_v2, -inf  ;;  %v9535_v53 = vld [vmem:[#allocation36_spill] sm:$0xff] }
 0x533   :  { %v2234_v31 = vsel %vm81_vm0, %v2214_v56, -inf }
 0x534   :  { %2232 = vmax.xlane.f32.xlu0 %v2231_v19  ;;  %2235 = vmax.xlane.f32.xlu1 %v2234_v31  ;;  %v9529_v19 = vld [vmem:[#allocation59_spill] sm:$0xff] }
 0x535   :  { %v8166_v31 = vmul.f32 0.125, %v9529_v19 }
 0x538   :  { %2238 = vmax.xlane.f32.xlu0 %v2237_v54  ;;  %v1954_v54 = vsel %vm81_vm0, %v8156_v18, -inf }
 0x5b4   :  { %v2221_v39 = vpop.xlane.xlu1 %2220 }
 0x5b5   :  { %v2241_v14 = vsub.f32 %v2209_v60, %v2221_v39  ;;  %v2218_v51 = vpop.xlane.xlu0 %2217  ;;  %v9530_v39 = vld [vmem:[#allocation62_spill] sm:$0xff] }
 0x5b6   :  { %v2240_v63 = vsub.f32 %v2208_v32, %v2218_v51 }
 0x5b7   :  { %v2250_v48 = vmul.f32 1.442695, %v2241_v14  ;;  %v8171_v14 = vmul.f32 0.125, %v9530_v39  ;;  %v9541_v39 = vld [vmem:[#allocation10_spill] sm:$0xff] }
 0x5b8   :  { %v2248_v20 = vmul.f32 1.442695, %v2240_v63  ;;  %v9531_v63 = vld [vmem:[#allocation61_spill] sm:$0xff] }
 0x5b9   :  { %6508 = vpow2.f32 %v2250_v48  ;;  %v2224_v17 = vpop.xlane.xlu0 %2223  ;;  %v8176_v48 = vmul.f32 0.125, %v9531_v63  ;;  %v9542_v63 = vld [vmem:[#allocation11_spill] sm:$0xff] }
 0x5ba   :  { %6510 = vpow2.f32 %v2248_v20  ;;  %v2242_v38 = vsub.f32 %v2210_v62, %v2224_v17  ;;  %v1960_v20 = vsel %vm81_vm0, %v8166_v31, -inf  ;;  %v9532_v17 = vld [vmem:[#allocation64_spill] sm:$0xff] }
 0x5bc   :  { %v2252_v55 = vmul.f32 1.442695, %v2242_v38  ;;  %v8181_v38 = vmul.f32 0.125, %v9532_v17  ;;  %v9543_v17 = vld [vmem:[#allocation44_spill] sm:$0xff] }
 0x5bd   :  { %v2227_v36 = vpop.xlane.xlu0 %2226  ;;  %v2230_v12 = vpop.xlane.xlu1 %2229 }
 0x5be   :  { %6512 = vpow2.f32 %v2252_v55  ;;  %v2243_v35 = vsub.f32 %v2211_v33, %v2227_v36  ;;  %v2244_v9 = vsub.f32 %v2212_v37, %v2230_v12  ;;  %v1963_v55 = vsel %vm81_vm0, %v8171_v14, -inf  ;;  %v9533_v36 = vld [vmem:[#allocation63_spill] sm:$0xff] }
 0x5bf   :  { %v8186_v12 = vmul.f32 0.125, %v9533_v36 }
 0x5c0   :  { %v2254_v13 = vmul.f32 1.442695, %v2243_v35  ;;  %v2256_v4 = vmul.f32 1.442695, %v2244_v9  ;;  %v1966_v35 = vsel %vm81_vm0, %v8176_v48, -inf  ;;  %v1969_v9 = vsel %vm81_vm0, %v8181_v38, -inf }
 0x5c1   :  { %v2233_v22 = vpop.xlane.xlu0 %2232  ;;  %v2236_v52 = vpop.xlane.xlu1 %2235 }
 0x5c2   :  { %6514 = vpow2.f32 %v2254_v13  ;;  %v2245_v30 = vsub.f32 %v2213_v34, %v2233_v22  ;;  %v2246_v24 = vsub.f32 %v2214_v56, %v2236_v52  ;;  %v8161_v56 = vmul.f32 0.125, %v9528_v8  ;;  %v9536_v8 = vld [vmem:[#allocation54_spill] sm:$0xff] }
 0x5c3   :  { %v8122_v40 = vpop.eup %6508  ;;  %6516 = vpow2.f32 %v2256_v4  ;;  %v1972_v13 = vsel %vm81_vm0, %v8186_v12, -inf }
 0x5c4   :  { %v8124_v45 = vpop.eup %6510  ;;  %v2258_v15 = vmul.f32 1.442695, %v2245_v30  ;;  %v2260_v6 = vmul.f32 1.442695, %v2246_v24  ;;  %v2267_v49 = vsel %vm81_vm0, %v8122_v40, 0.0  ;;  %v1957_v51 = vsel %vm81_vm0, %v8161_v56, -inf }
 0x5c5   :  { %2268 = vadd.xlane.f32.xlu0 %v2267_v49  ;;  %v2239_v42 = vpop.xlane.xlu0 %2238  ;;  %v2264_v16 = vsel %vm81_vm0, %v8124_v45, 0.0 }
 0x5c6   :  { %6518 = vpow2.f32 %v2258_v15  ;;  %v2247_v28 = vsub.f32 %v2215_v2, %v2239_v42  ;;  %2265 = vadd.xlane.f32.xlu1 %v2264_v16  ;;  %v1951_v2 = vsel %vm81_vm0, %v8149_v5, -inf }
 0x5c7   :  { %6520 = vpow2.f32 %v2260_v6 }
 0x5c8   :  { %v8130_v60 = vpop.eup %6512  ;;  %v2262_v0 = vmul.f32 1.442695, %v2247_v28 }
 0x5c9   :  { %v2270_v32 = vsel %vm81_vm0, %v8130_v60, 0.0 }
 0x5ca   :  { %6522 = vpow2.f32 %v2262_v0  ;;  %2271 = vadd.xlane.f32.xlu1 %v2270_v32 }
 0x5cc   :  { %v8134_v50 = vpop.eup %6514 }
 0x5cd   :  { %v8136_v11 = vpop.eup %6516  ;;  %v2273_v25 = vsel %vm81_vm0, %v8134_v50, 0.0 }
 0x5ce   :  { %2274 = vadd.xlane.f32.xlu0 %v2273_v25  ;;  %v2276_v41 = vsel %vm81_vm0, %v8136_v11, 0.0 }
 0x5cf   :  { %2277 = vadd.xlane.f32.xlu1 %v2276_v41  ;;  %v9534_v41 = vld [vmem:[#allocation35_spill] sm:$0xff] }
 0x5d0   :  { %v8142_v62 = vpop.eup %6518 }
 0x5d1   :  { %v8144_v33 = vpop.eup %6520  ;;  %v2279_v23 = vsel %vm81_vm0, %v8142_v62, 0.0 }
 0x5d2   :  { %2280 = vadd.xlane.f32.xlu0 %v2279_v23  ;;  %v2282_v37 = vsel %vm81_vm0, %v8144_v33, 0.0 }
 0x5d3   :  { %2283 = vadd.xlane.f32.xlu1 %v2282_v37 }
 0x5d4   :  { %v8153_v34 = vpop.eup %6522 }
 0x5d5   :  { %v2285_v59 = vsel %vm81_vm0, %v8153_v34, 0.0 }
 0x5d6   :  { %2286 = vadd.xlane.f32.xlu0 %v2285_v59 }
 0x5d7   :  { %1952 = vmax.xlane.f32.xlu1 %v1951_v2  ;;  %v9537_v2 = vld [vmem:[#allocation8_spill] sm:$0xff] }
 0x5d8   :  { %v271_v19 = vadd.f32 %v9537_v2, %v9536_v8  ;;  %v6803_v2 = vld [vmem:[%s9400_s0 + $0xb8] sm:$0xff] }
 0x5da   :  { %1955 = vmax.xlane.f32.xlu0 %v1954_v54 }
 0x5db   :  { %1958 = vmax.xlane.f32.xlu1 %v1957_v51  ;;  %v283_v51 = vadd.f32 %v9541_v39, %v9536_v8  ;;  %v9562_v39 = vld [vmem:[#allocation30_spill] sm:$0xff] }
 0x5de   :  { %1961 = vmax.xlane.f32.xlu0 %v1960_v20  ;;  %v289_v20 = vadd.f32 %v9542_v63, %v9536_v8 }
 0x5df   :  { %1964 = vmax.xlane.f32.xlu1 %v1963_v55  ;;  %v9544_v55 = vld [vmem:[#allocation12_spill] sm:$0xff] }
 0x5e0   :  { %v295_v36 = vadd.f32 %v9544_v55, %v9536_v8 }
 0x5e2   :  { %1967 = vmax.xlane.f32.xlu0 %v1966_v35  ;;  %v9545_v35 = vld [vmem:[#allocation13_spill] sm:$0xff] }
 0x5e3   :  { %1970 = vmax.xlane.f32.xlu1 %v1969_v9  ;;  %v301_v9 = vadd.f32 %v9545_v35, %v9536_v8 }
 0x5e6   :  { %1973 = vmax.xlane.f32.xlu0 %v1972_v13  ;;  %v9546_v13 = vld [vmem:[#allocation14_spill] sm:$0xff] }
 0x652   :  { %v2269_v4 = vpop.xlane.xlu0 %2268 }
 0x653   :  { %6524 = vrcp.f32 %v2269_v4  ;;  %v2266_v22 = vpop.xlane.xlu1 %2265  ;;  %v307_v4 = vadd.f32 %v9546_v13, %v9536_v8 }
 0x654   :  { %6526 = vrcp.f32 %v2266_v22  ;;  %v9547_v22 = vld [vmem:[#allocation15_spill] sm:$0xff] }
 0x657   :  { %v2272_v52 = vpop.xlane.xlu1 %2271 }
 0x658   :  { %6528 = vrcp.f32 %v2272_v52  ;;  %v313_v52 = vadd.f32 %v9547_v22, %v9536_v8 }
 0x65b   :  { %v2275_v30 = vpop.xlane.xlu0 %2274 }
 0x65c   :  { %6530 = vrcp.f32 %v2275_v30  ;;  %v2278_v24 = vpop.xlane.xlu1 %2277  ;;  %v9548_v30 = vld [vmem:[#allocation48_spill] sm:$0xff] }
 0x65d   :  { %v6525_v15 = vpop.eup %6524  ;;  %6532 = vrcp.f32 %v2278_v24  ;;  %v9549_v24 = vld [vmem:[#allocation5_spill] sm:$0xff] }
 0x65e   :  { %v6527_v6 = vpop.eup %6526  ;;  %v2291_v16 = vmul.f32 %v6525_v15, %v8122_v40  ;;  %v9550_v15 = vld [vmem:[#allocation16_spill] sm:$0xff] }
 0x65f   :  { %v2281_v49 = vpop.xlane.xlu0 %2280  ;;  %v2289_v42 = vmul.f32 %v6527_v6, %v8124_v45  ;;  %v8271_v6 = vadd.f32 %v9550_v15, %v9549_v24 }
 0x660   :  { %6534 = vrcp.f32 %v2281_v49  ;;  %v2284_v28 = vpop.xlane.xlu1 %2283  ;;  %v9551_v49 = vld [vmem:[#allocation52_spill] sm:$0xff] }
 0x661   :  { %6536 = vrcp.f32 %v2284_v28  ;;  %5575 = vmatprep.mubr.msk.f32.mxu0 %vm81_vm0, %v2289_v42  ;;  %v6796_v42 = vld [vmem:[%s9400_s0 + $0x80] sm:$0xff] }
 0x662   :  { %v6529_v0 = vpop.eup %6528  ;;  %5576 = vmatmul.mubr.msk.f32.vlgmr.msra.gmra.mrb[72].mxu0 %vm81_vm0, %v2291_v16  ;;  %v6797_v16 = vld [vmem:[%s9400_s0 + $0x88] sm:$0xff] }
 0x663   :  { %6128 = vmatpush3.bf16.xpose.msk.msra.mxu0 %vm7258_vm1, %v9525_v58  ;;  %v2287_v32 = vpop.xlane.xlu0 %2286  ;;  %v2293_v25 = vmul.f32 %v6529_v0, %v8130_v60  ;;  %v8288_v28 = vpack.c.bf16 %v6797_v16, %v6796_v42  ;;  %v6798_v0 = vld [vmem:[%s9400_s0 + $0x90] sm:$0xff] }
 0x664   :  { %6538 = vrcp.f32 %v2287_v32  ;;  %6131 = vmatprep.subr.msk.bf16.mxu0 %vm7258_vm1, %v9534_v41  ;;  %v6799_v32 = vld [vmem:[%s9400_s0 + $0x98] sm:$0xff]  ;;  %v1953_v22 = vpop.xlane.xlu1 %1952 }
 0x665   :  { %5578 = vmatprep.mubr.msk.f32.mxu0 %vm81_vm0, %v2293_v25  ;;  %9552 = vst [vmem:[#allocation34_spill] sm:$0xff] %v8288_v28  ;;  %v8300_v25 = vpack.c.bf16 %v6799_v32, %v6798_v0 }
 0x666   :  { %v6531_v40 = vpop.eup %6530 }
 0x667   :  { %v6533_v45 = vpop.eup %6532  ;;  %v2295_v23 = vmul.f32 %v6531_v40, %v8134_v50  ;;  %9553 = vst [vmem:[#allocation33_spill] sm:$0xff] %v8300_v25 }
 0x668   :  { %v2297_v10 = vmul.f32 %v6533_v45, %v8136_v11  ;;  %v9555_v45 = vld [vmem:[#allocation20_spill] sm:$0xff] }
 0x669   :  { %5579 = vmatmul.mubr.msk.f32.gmra.mrb[74].mxu0 %vm81_vm0, %v2295_v23  ;;  %v8308_v23 = vadd.f32 %v9555_v45, %v9549_v24 }
 0x66a   :  { %v6535_v37 = vpop.eup %6534  ;;  %5581 = vmatprep.mubr.msk.f32.mxu0 %vm81_vm0, %v2297_v10  ;;  %v6800_v10 = vld [vmem:[%s9400_s0 + $0xa0] sm:$0xff] }
 0x66b   :  { %v6537_v58 = vpop.eup %6536  ;;  %6134 = vmatpush3.bf16.xpose.msk.msra.mxu0 %vm7258_vm1, %v9534_v41  ;;  %v2299_v60 = vmul.f32 %v6535_v37, %v8142_v62  ;;  %v9538_v62 = vld [vmem:[#allocation38_spill] sm:$0xff] }
 0x66c   :  { %6137 = vmatprep.subr.msk.bf16.mxu0 %vm7258_vm1, %v9535_v53  ;;  %v2301_v50 = vmul.f32 %v6537_v58, %v8144_v33  ;;  %v9539_v33 = vld [vmem:[#allocation40_spill] sm:$0xff]  ;;  %v9554_v41 = vld [vmem:[#allocation18_spill] sm:$0xff] }
 0x66d   :  { %5582 = vmatmul.mubr.msk.f32.gmra.mrb[76].mxu0 %vm81_vm0, %v2299_v60  ;;  %v8304_v40 = vadd.f32 %v9554_v41, %v9549_v24  ;;  %v6801_v37 = vld [vmem:[%s9400_s0 + $0xa8] sm:$0xff] }
 0x66e   :  { %v6539_v11 = vpop.eup %6538  ;;  %5584 = vmatprep.mubr.msk.f32.mxu0 %vm81_vm0, %v2301_v50  ;;  %v8321_v58 = vpack.c.bf16 %v6801_v37, %v6800_v10  ;;  %v9557_v60 = vld [vmem:[#allocation22_spill] sm:$0xff]  ;;  %v9558_v50 = vld [vmem:[#allocation24_spill] sm:$0xff] }
 0x66f   :  { %v2303_v59 = vmul.f32 %v6539_v11, %v8153_v34  ;;  %v9540_v34 = vld [vmem:[#allocation9_spill] sm:$0xff]  ;;  %v8330_v11 = vadd.f32 %v9558_v50, %v9549_v24 }
 0x670   :  { %v277_v54 = vadd.f32 %v9540_v34, %v9536_v8  ;;  %9556 = vst [vmem:[#allocation6_spill] sm:$0xff] %v8321_v58  ;;  %v9561_v34 = vld [vmem:[#allocation28_spill] sm:$0xff] }
 0x671   :  { %5585 = vmatmul.mubr.msk.f32.gmra.mrb[78].mxu0 %vm81_vm0, %v2303_v59  ;;  %v6802_v59 = vld [vmem:[%s9400_s0 + $0xb0] sm:$0xff] }
 0x672   :  { %5631 = vmatprep.mubr.msk.f32.mxu0 %vm81_vm0, %v271_v19  ;;  %v8343_v19 = vpack.c.bf16 %v6803_v2, %v6802_v59 }
 0x673   :  { %6140 = vmatpush3.bf16.xpose.msk.msra.mxu0 %vm7258_vm1, %v9535_v53  ;;  %v8325_v53 = vadd.f32 %v9557_v60, %v9549_v24 }
 0x674   :  { %6143 = vmatprep.subr.msk.bf16.mxu0 %vm7258_vm1, %v9538_v62  ;;  %9559 = vst [vmem:[#allocation7_spill] sm:$0xff] %v8343_v19 }
 0x67b   :  { %6146 = vmatpush3.bf16.xpose.msk.msra.mxu0 %vm7258_vm1, %v9538_v62  ;;  %v9560_v62 = vld [vmem:[#allocation26_spill] sm:$0xff] }
 0x67c   :  { %6165 = vmatprep.subr.msk.bf16.mxu0 %vm7258_vm1, %v9539_v33 }
 0x682   :  { %5632 = vmatmul.mubr.msk.f32.vlgmr.msra.gmra.mrb[80].mxu0 %vm81_vm0, %v277_v54  ;;  %v8352_v54 = vadd.f32 %v9561_v34, %v9549_v24 }
 0x683   :  { %5634 = vmatprep.mubr.msk.f32.mxu0 %vm81_vm0, %v283_v51  ;;  %6168 = vmatpush3.bf16.xpose.msk.msra.mxu0 %vm7258_vm1, %v9539_v33  ;;  %v8347_v33 = vadd.f32 %v9560_v62, %v9549_v24  ;;  %v8361_v51 = vadd.f32 %v9562_v39, %v9549_v24  ;;  %v1959_v24 = vpop.xlane.xlu1 %1958 }
 0x684   :  { %6171 = vmatprep.subr.msk.bf16.mxu0 %vm7258_vm1, %v9543_v17  ;;  %v1977_v42 = vsub.f32 %v8161_v56, %v1959_v24 }
 0x686   :  { %5635 = vmatmul.mubr.msk.f32.gmra.mrb[82].mxu0 %vm81_vm0, %v289_v20 }
 0x687   :  { %5637 = vmatprep.mubr.msk.f32.mxu0 %vm81_vm0, %v295_v36  ;;  %v1965_v37 = vpop.xlane.xlu1 %1964 }
 0x688   :  { %v1979_v39 = vsub.f32 %v8171_v14, %v1965_v37 }
 0x68a   :  { %5638 = vmatmul.mubr.msk.f32.gmra.mrb[84].mxu0 %vm81_vm0, %v301_v9  ;;  %v1991_v14 = vmul.f32 1.442695, %v1979_v39 }
 0x68b   :  { %5640 = vmatprep.mubr.msk.f32.mxu0 %vm81_vm0, %v307_v4  ;;  %6174 = vmatpush3.bf16.xpose.msk.msra.mxu0 %vm7258_vm1, %v9543_v17  ;;  %v1956_v4 = vpop.xlane.xlu0 %1955 }
 0x68c   :  { %6177 = vmatprep.subr.msk.bf16.mxu0 %vm7258_vm1, %v9548_v30  ;;  %v1976_v15 = vsub.f32 %v8156_v18, %v1956_v4 }
 0x68e   :  { %5641 = vmatmul.mubr.msk.f32.gmra.mrb[86].mxu0 %vm81_vm0, %v313_v52  ;;  %v1975_v52 = vsub.f32 %v8149_v5, %v1953_v22  ;;  %v1985_v45 = vmul.f32 1.442695, %v1976_v15  ;;  %v1987_v5 = vmul.f32 1.442695, %v1977_v42 }
 0x68f   :  { %5687 = vmatprep.mubr.msk.f32.mxu0 %vm81_vm0, %v8271_v6 }
 0x693   :  { %6180 = vmatpush3.bf16.xpose.msk.msra.mxu0 %vm7258_vm1, %v9548_v30  ;;  %v1962_v30 = vpop.xlane.xlu0 %1961 }
 0x694   :  { %6183 = vmatprep.subr.msk.bf16.mxu0 %vm7258_vm1, %v9551_v49  ;;  %v1978_v10 = vsub.f32 %v8166_v31, %v1962_v30 }
 0x696   :  { %v1989_v62 = vmul.f32 1.442695, %v1978_v10 }
 0x697   :  { %v1968_v0 = vpop.xlane.xlu0 %1967 }
 0x698   :  { %v1980_v31 = vsub.f32 %v8176_v48, %v1968_v0 }
 0x69a   :  { %v1993_v48 = vmul.f32 1.442695, %v1980_v31 }
 0x69b   :  { %6186 = vmatpush3.bf16.xpose.msk.msra.mxu0 %vm7258_vm1, %v9551_v49  ;;  %v1983_v49 = vmul.f32 1.442695, %v1975_v52  ;;  %v1974_v4 = vpop.xlane.xlu0 %1973  ;;  %v1971_v52 = vpop.xlane.xlu1 %1970 }
 0x69c   :  { %6212 = vmatprep.subr.bf16.mxu0 %v8288_v28  ;;  %v1982_v42 = vsub.f32 %v8186_v12, %v1974_v4  ;;  %v1981_v0 = vsub.f32 %v8181_v38, %v1971_v52 }
 0x69d   :  { %6540 = vpow2.f32 %v1983_v49 }
 0x69e   :  { %6542 = vpow2.f32 %v1985_v45  ;;  %v1997_v12 = vmul.f32 1.442695, %v1982_v42 }
 0x69f   :  { %6544 = vpow2.f32 %v1987_v5 }
 0x6a0   :  { %6546 = vpow2.f32 %v1989_v62 }
 0x6a1   :  { %6548 = vpow2.f32 %v1993_v48 }
 0x6a2   :  { %5688 = vmatmul.mubr.msk.f32.vlgmr.msra.gmra.mrb[88].mxu0 %vm81_vm0, %v8304_v40  ;;  %6550 = vpow2.f32 %v1991_v14 }
 0x6a3   :  { %5690 = vmatprep.mubr.msk.f32.mxu0 %vm81_vm0, %v8308_v23  ;;  %6214 = vmatpush3.bf16.msra.mxu0 %v8288_v28  ;;  %6552 = vpow2.f32 %v1997_v12 }
 0x6a4   :  { %6216 = vmatprep.subr.bf16.mxu0 %v8300_v25 }
 0x6a6   :  { %5691 = vmatmul.mubr.msk.f32.gmra.mrb[90].mxu0 %vm81_vm0, %v8325_v53 }
 0x6a7   :  { %5693 = vmatprep.mubr.msk.f32.mxu0 %vm81_vm0, %v8330_v11  ;;  %6218 = vmatpush3.bf16.msra.mxu0 %v8300_v25  ;;  %v8416_v37 = vpop.eup %6540 }
 0x6a8   :  { %6220 = vmatprep.subr.bf16.mxu0 %v8321_v58 }
 0x6aa   :  { %5694 = vmatmul.mubr.msk.f32.gmra.mrb[92].mxu0 %vm81_vm0, %v8347_v33 }
 0x6ab   :  { %5696 = vmatprep.mubr.msk.f32.mxu0 %vm81_vm0, %v8352_v54  ;;  %6222 = vmatpush3.bf16.msra.mxu0 %v8321_v58 }
 0x6ac   :  { %6224 = vmatprep.subr.bf16.mxu0 %v8343_v19 }
 0x6ae   :  { %5697 = vmatmul.mubr.msk.f32.gmra.mrb[94].mxu0 %vm81_vm0, %v8361_v51 }
 0x6af   :  { %6226 = vmatpush3.bf16.msra.mxu0 %v8343_v19 }
 0x6b0   :  { %6228 = vmatprep.subr.bf16.mxu0 %v8288_v28 }
 0x735   :  { %v8368_v63 = vpop.f32.mrb[72].mxu0 }
 0x736   :  { %v8370_v20 = vpop.f32.mrb[73].mxu0 }
 0x73c   :  { %v8372_v17 = vpop.f32.mrb[74].mxu0 }
 0x73d   :  { %v8374_v55 = vpop.f32.mrb[75].mxu0 }
 0x740   :  { %v8376_v36 = vpop.f32.mrb[76].mxu0 }
 0x741   :  { %v8378_v35 = vpop.f32.mrb[77].mxu0 }
 0x744   :  { %v8380_v9 = vpop.f32.mrb[78].mxu0 }
 0x745   :  { %v8382_v13 = vpop.f32.mrb[79].mxu0 }
 0x755   :  { %v5633_v16 = vpop.f32.mrb[80].mxu0 }
 0x756   :  { %v8387_v32 = vmul.f32 0.125, %v5633_v16  ;;  %v2676_v41 = vpop.f32.mrb[81].mxu0 }
 0x757   :  { %v8390_v60 = vmul.f32 0.125, %v2676_v41 }
 0x758   :  { %v2726_v50 = vsel %vm81_vm0, %v8387_v32, -inf }
 0x759   :  { %2727 = vmax.xlane.f32.xlu0 %v2726_v50  ;;  %v5636_v18 = vpop.f32.mrb[82].mxu0  ;;  %v2723_v56 = vsel %vm81_vm0, %v8390_v60, -inf }
 0x75a   :  { %v8396_v59 = vmul.f32 0.125, %v5636_v18  ;;  %2724 = vmax.xlane.f32.xlu1 %v2723_v56  ;;  %v2686_v2 = vpop.f32.mrb[83].mxu0  ;;  %v1995_v18 = vmul.f32 1.442695, %v1981_v0  ;;  %v8422_v56 = vpop.eup %6542 }
 0x75b   :  { %v8399_v34 = vmul.f32 0.125, %v2686_v2  ;;  %v1999_v2 = vsel %vm81_vm0, %v8416_v37, 0.0  ;;  %v8426_v62 = vpop.eup %6544  ;;  %v2002_v31 = vsel %vm81_vm0, %v8422_v56, 0.0 }
 0x75c   :  { %v2732_v22 = vsel %vm81_vm0, %v8396_v59, -inf  ;;  %6554 = vpow2.f32 %v1995_v18  ;;  %v8430_v39 = vpop.eup %6546 }
 0x75d   :  { %2733 = vmax.xlane.f32.xlu0 %v2732_v22  ;;  %v5639_v30 = vpop.f32.mrb[84].mxu0  ;;  %v2729_v24 = vsel %vm81_vm0, %v8399_v34, -inf  ;;  %v2005_v22 = vsel %vm81_vm0, %v8426_v62, 0.0  ;;  %v2008_v52 = vsel %vm81_vm0, %v8430_v39, 0.0 }
 0x75e   :  { %v8406_v15 = vmul.f32 0.125, %v5639_v30  ;;  %2730 = vmax.xlane.f32.xlu1 %v2729_v24  ;;  %v2696_v49 = vpop.f32.mrb[85].mxu0  ;;  %v8438_v30 = vpop.eup %6548 }
 0x75f   :  { %v8409_v16 = vmul.f32 0.125, %v2696_v49  ;;  %v8442_v49 = vpop.eup %6550  ;;  %v2014_v48 = vsel %vm81_vm0, %v8438_v30, 0.0 }
 0x760   :  { %v2738_v41 = vsel %vm81_vm0, %v8406_v15, -inf  ;;  %v8446_v42 = vpop.eup %6552  ;;  %v2011_v14 = vsel %vm81_vm0, %v8442_v49, 0.0 }
 0x761   :  { %2739 = vmax.xlane.f32.xlu0 %v2738_v41  ;;  %v5642_v45 = vpop.f32.mrb[86].mxu0  ;;  %v2735_v10 = vsel %vm81_vm0, %v8409_v16, -inf  ;;  %v2020_v41 = vsel %vm81_vm0, %v8446_v42, 0.0 }
 0x762   :  { %v8418_v5 = vmul.f32 0.125, %v5642_v45  ;;  %2736 = vmax.xlane.f32.xlu1 %v2735_v10  ;;  %v2706_v50 = vpop.f32.mrb[87].mxu0 }
 0x763   :  { %v8432_v4 = vmul.f32 0.125, %v2706_v50 }
 0x764   :  { %v2744_v38 = vsel %vm81_vm0, %v8418_v5, -inf }
 0x765   :  { %2745 = vmax.xlane.f32.xlu0 %v2744_v38  ;;  %v2741_v24 = vsel %vm81_vm0, %v8432_v4, -inf }
 0x766   :  { %2000 = vadd.xlane.f32.xlu1 %v1999_v2  ;;  %v8450_v0 = vpop.eup %6554 }
 0x767   :  { %v2017_v10 = vsel %vm81_vm0, %v8450_v0, 0.0 }
 0x769   :  { %2003 = vadd.xlane.f32.xlu0 %v2002_v31 }
 0x76a   :  { %2006 = vadd.xlane.f32.xlu1 %v2005_v22 }
 0x76d   :  { %2009 = vadd.xlane.f32.xlu0 %v2008_v52  ;;  %v9568_v52 = vld [vmem:[#allocation39_spill] sm:$0xff] }
 0x76e   :  { %2742 = vmax.xlane.f32.xlu1 %v2741_v24  ;;  %v9569_v24 = vld [vmem:[#allocation37_spill] sm:$0xff] }
 0x771   :  { %2015 = vadd.xlane.f32.xlu0 %v2014_v48  ;;  %v9570_v48 = vpack.i.bf16 %v9568_v52, %v9569_v24 }
 0x772   :  { %2012 = vadd.xlane.f32.xlu1 %v2011_v14 }
 0x775   :  { %2021 = vadd.xlane.f32.xlu0 %v2020_v41  ;;  %v8454_v45 = vpop.f32.mrb[88].mxu0 }
 0x776   :  { %v8458_v50 = vpop.f32.mrb[89].mxu0  ;;  %2018 = vadd.xlane.f32.xlu1 %v2017_v10 }
 0x779   :  { %v8460_v12 = vpop.f32.mrb[90].mxu0 }
 0x77a   :  { %9563 = vst [vmem:[#allocation55_spill] sm:$0xff] %v8460_v12  ;;  %v8462_v18 = vpop.f32.mrb[91].mxu0 }
 0x77d   :  { %v8464_v38 = vpop.f32.mrb[92].mxu0 }
 0x77e   :  { %9564 = vst [vmem:[#allocation56_spill] sm:$0xff] %v8464_v38  ;;  %v8466_v2 = vpop.f32.mrb[93].mxu0 }
 0x77f   :  { %9565 = vst [vmem:[#allocation32_spill] sm:$0xff] %v8466_v2 }
 0x781   :  { %v8468_v31 = vpop.f32.mrb[94].mxu0 }
 0x782   :  { %9566 = vst [vmem:[#allocation58_spill] sm:$0xff] %v8468_v31  ;;  %v8470_v22 = vpop.f32.mrb[95].mxu0 }
 0x783   :  { %9567 = vst [vmem:[#allocation57_spill] sm:$0xff] %v8470_v22 }
 0x787   :  { %6393 = vrot.lane.b32.xlu1 %v9570_v48, %s6854_s2 }
 0x7e6   :  { %v2728_v14 = vpop.xlane.xlu0 %2727 }
 0x7e7   :  { %v2748_v41 = vsub.f32 %v8387_v32, %v2728_v14  ;;  %v2725_v10 = vpop.xlane.xlu1 %2724 }
 0x7e8   :  { %v2747_v19 = vsub.f32 %v8390_v60, %v2725_v10 }
 0x7e9   :  { %v2757_v58 = vmul.f32 1.442695, %v2748_v41 }
 0x7ea   :  { %v2755_v25 = vmul.f32 1.442695, %v2747_v19  ;;  %v2734_v28 = vpop.xlane.xlu0 %2733 }
 0x7eb   :  { %6556 = vpow2.f32 %v2757_v58  ;;  %v2750_v38 = vsub.f32 %v8396_v59, %v2734_v28  ;;  %v2731_v31 = vpop.xlane.xlu1 %2730 }
 0x7ec   :  { %6558 = vpow2.f32 %v2755_v25  ;;  %v2749_v22 = vsub.f32 %v8399_v34, %v2731_v31 }
 0x7ed   :  { %v2761_v2 = vmul.f32 1.442695, %v2750_v38 }
 0x7ee   :  { %v2759_v12 = vmul.f32 1.442695, %v2749_v22  ;;  %v2740_v52 = vpop.xlane.xlu0 %2739 }
 0x7ef   :  { %6560 = vpow2.f32 %v2761_v2  ;;  %v2752_v24 = vsub.f32 %v8406_v15, %v2740_v52  ;;  %v2737_v32 = vpop.xlane.xlu1 %2736 }
 0x7f0   :  { %6562 = vpow2.f32 %v2759_v12  ;;  %v2751_v60 = vsub.f32 %v8409_v16, %v2737_v32 }
 0x7f1   :  { %v2765_v48 = vmul.f32 1.442695, %v2752_v24 }
 0x7f2   :  { %v2763_v19 = vmul.f32 1.442695, %v2751_v60  ;;  %v2746_v14 = vpop.xlane.xlu0 %2745 }
 0x7f3   :  { %6564 = vpow2.f32 %v2765_v48  ;;  %v2754_v28 = vsub.f32 %v8418_v5, %v2746_v14  ;;  %v2001_v58 = vpop.xlane.xlu1 %2000 }
 0x7f4   :  { %6566 = vpow2.f32 %v2763_v19 }
 0x7f5   :  { %v8483_v25 = vpop.eup %6556  ;;  %v2769_v59 = vmul.f32 1.442695, %v2754_v28  ;;  %6568 = vrcp.f32 %v2001_v58 }
 0x7f6   :  { %v8485_v34 = vpop.eup %6558  ;;  %v2004_v38 = vpop.xlane.xlu0 %2003  ;;  %v2774_v15 = vsel %vm81_vm0, %v8483_v25, 0.0 }
 0x7f7   :  { %6570 = vpow2.f32 %v2769_v59  ;;  %2775 = vadd.xlane.f32.xlu0 %v2774_v15  ;;  %v2007_v16 = vpop.xlane.xlu1 %2006  ;;  %v2771_v12 = vsel %vm81_vm0, %v8485_v34, 0.0 }
 0x7f8   :  { %6572 = vrcp.f32 %v2004_v38  ;;  %2772 = vadd.xlane.f32.xlu1 %v2771_v12 }
 0x7f9   :  { %v8491_v5 = vpop.eup %6560  ;;  %6574 = vrcp.f32 %v2007_v16 }
 0x7fa   :  { %v8493_v2 = vpop.eup %6562  ;;  %v2010_v31 = vpop.xlane.xlu0 %2009  ;;  %v2780_v22 = vsel %vm81_vm0, %v8491_v5, 0.0 }
 0x7fb   :  { %6576 = vrcp.f32 %v2010_v31  ;;  %2781 = vadd.xlane.f32.xlu0 %v2780_v22  ;;  %v2743_v41 = vpop.xlane.xlu1 %2742  ;;  %v2777_v10 = vsel %vm81_vm0, %v8493_v2, 0.0 }
 0x7fc   :  { %v2753_v52 = vsub.f32 %v8432_v4, %v2743_v41  ;;  %2778 = vadd.xlane.f32.xlu1 %v2777_v10 }
 0x7fd   :  { %v8500_v24 = vpop.eup %6564 }
 0x7fe   :  { %v8502_v32 = vpop.eup %6566  ;;  %v2767_v60 = vmul.f32 1.442695, %v2753_v52  ;;  %v2016_v48 = vpop.xlane.xlu0 %2015  ;;  %v2786_v19 = vsel %vm81_vm0, %v8500_v24, 0.0 }
 0x7ff   :  { %v6569_v14 = vpop.eup %6568  ;;  %6578 = vrcp.f32 %v2016_v48  ;;  %2787 = vadd.xlane.f32.xlu0 %v2786_v19  ;;  %v2013_v28 = vpop.xlane.xlu1 %2012  ;;  %v2783_v58 = vsel %vm81_vm0, %v8502_v32, 0.0 }
 0x800   :  { %6580 = vpow2.f32 %v2767_v60  ;;  %2784 = vadd.xlane.f32.xlu1 %v2783_v58  ;;  %v2024_v4 = vmul.f32 %v6569_v14, %v8416_v37 }
 0x801   :  { %v8509_v59 = vpop.eup %6570  ;;  %6582 = vrcp.f32 %v2013_v28 }
 0x802   :  { %v6573_v38 = vpop.eup %6572  ;;  %5603 = vmatprep.mubr.msk.f32.mxu1 %vm81_vm0, %v2024_v4  ;;  %v2022_v15 = vpop.xlane.xlu0 %2021  ;;  %v2792_v16 = vsel %vm81_vm0, %v8509_v59, 0.0 }
 0x803   :  { %v6575_v12 = vpop.eup %6574  ;;  %v2026_v31 = vmul.f32 %v6573_v38, %v8422_v56  ;;  %6584 = vrcp.f32 %v2022_v15  ;;  %2793 = vadd.xlane.f32.xlu0 %v2792_v16  ;;  %v2019_v22 = vpop.xlane.xlu1 %2018  ;;  %v9571_v38 = vld [vmem:[#allocation47_spill] sm:$0xff] }
 0x804   :  { %6586 = vrcp.f32 %v2019_v22  ;;  %v2028_v41 = vmul.f32 %v6575_v12, %v8426_v62 }
 0x805   :  { %v6577_v37 = vpop.eup %6576  ;;  %5604 = vmatmul.mubr.msk.f32.vlgmr.msra.gmra.mrb[72].mxu1 %vm81_vm0, %v2026_v31 }
 0x806   :  { %6150 = vmatpush3.bf16.msra.mxu1 %v7665_v21  ;;  %5606 = vmatprep.mubr.msk.f32.mxu1 %vm81_vm0, %v2028_v41  ;;  %v2030_v10 = vmul.f32 %v6577_v37, %v8430_v39 }
 0x807   :  { %6152 = vmatprep.subr.bf16.mxu1 %v7681_v44  ;;  %v6394_v60 = vpop.permute.xlu1 %6393 }
 0x808   :  { %v6396_v19 = vunpack.i.h.bf16 %v6394_v60  ;;  %v6395_v14 = vunpack.i.l.bf16 %v6394_v60 }
 0x809   :  { %v6579_v52 = vpop.eup %6578  ;;  %5607 = vmatmul.mubr.msk.f32.gmra.mrb[74].mxu1 %vm81_vm0, %v2030_v10 }
 0x80a   :  { %v8522_v56 = vpop.eup %6580  ;;  %6154 = vmatpush3.bf16.msra.mxu1 %v7681_v44  ;;  %v2034_v28 = vmul.f32 %v6579_v52, %v8438_v30  ;;  %v6187_v4 = vpack.c.bf16 %v6396_v19, %v6395_v14 }
 0x80b   :  { %v6583_v62 = vpop.eup %6582  ;;  %6156 = vmatprep.subr.bf16.mxu1 %v9523_v47  ;;  %v2789_v21 = vsel %vm81_vm0, %v8522_v56, 0.0 }
 0x80c   :  { %2790 = vadd.xlane.f32.xlu0 %v2789_v21  ;;  %v2032_v48 = vmul.f32 %v6583_v62, %v8442_v49  ;;  %v9572_v49 = vld [vmem:[#allocation45_spill] sm:$0xff] }
 0x80d   :  { %v6585_v39 = vpop.eup %6584  ;;  %v9573_v15 = vpack.i.bf16 %v9571_v38, %v9572_v49 }
 0x80e   :  { %v6587_v58 = vpop.eup %6586  ;;  %6158 = vmatpush3.bf16.msra.mxu1 %v9523_v47  ;;  %5609 = vmatprep.mubr.msk.f32.mxu1 %vm81_vm0, %v2032_v48  ;;  %v2038_v30 = vmul.f32 %v6585_v39, %v8446_v42  ;;  %v9574_v47 = vld [vmem:[#allocation51_spill] sm:$0xff]  ;;  %v9578_v42 = vld [vmem:[#allocation41_spill] sm:$0xff] }
 0x80f   :  { %5610 = vmatmul.mubr.msk.f32.gmra.mrb[76].mxu1 %vm81_vm0, %v2034_v28  ;;  %6160 = vmatprep.subr.bf16.mxu1 %v9524_v3  ;;  %v2036_v44 = vmul.f32 %v6587_v58, %v8450_v0  ;;  %v9575_v0 = vld [vmem:[#allocation49_spill] sm:$0xff] }
 0x810   :  { %v9576_v16 = vpack.i.bf16 %v9574_v47, %v9575_v0 }
 0x811   :  { %6403 = vrot.lane.b32.xlu1 %v9573_v15, %s6854_s2  ;;  %5612 = vmatprep.mubr.msk.f32.mxu1 %vm81_vm0, %v2036_v44 }
 0x812   :  { %6162 = vmatpush3.bf16.msra.mxu1 %v9524_v3  ;;  %v9577_v3 = vld [vmem:[#allocation43_spill] sm:$0xff] }
 0x813   :  { %6189 = vmatprep.subr.msk.bf16.mxu1 %vm7258_vm1, %v6187_v4  ;;  %5613 = vmatmul.mubr.msk.f32.gmra.mrb[78].mxu1 %vm81_vm0, %v2038_v30  ;;  %v9579_v12 = vpack.i.bf16 %v9577_v3, %v9578_v42 }
 0x815   :  { %6408 = vrot.lane.b32.xlu1 %v9576_v16, %s6854_s2 }
 0x819   :  { %3229 = vrot.lane.b32.xlu1 %v8271_v6, %s6854_s2 }
 0x81d   :  { %3231 = vrot.lane.b32.xlu1 %v8304_v40, %s6854_s2 }
 0x821   :  { %3235 = vrot.lane.b32.xlu1 %v8325_v53, %s6854_s2 }
 0x822   :  { %6398 = vrot.lane.b32.xlu0 %v9579_v12, %s6854_s2  ;;  %v9581_v12 = vld [vmem:[#allocation46_spill] sm:$0xff] }
 0x825   :  { %3239 = vrot.lane.b32.xlu1 %v8347_v33, %s6854_s2 }
 0x826   :  { %3233 = vrot.lane.b32.xlu0 %v8308_v23, %s6854_s2 }
 0x829   :  { %3243 = vrot.lane.b32.xlu1 %v8361_v51, %s6854_s2 }
 0x82a   :  { %3237 = vrot.lane.b32.xlu0 %v8330_v11, %s6854_s2 }
 0x82e   :  { %3241 = vrot.lane.b32.xlu0 %v8352_v54, %s6854_s2 }
 0x884   :  { %v2776_v6 = vpop.xlane.xlu0 %2775 }
 0x885   :  { %6588 = vrcp.f32 %v2776_v6  ;;  %v2773_v40 = vpop.xlane.xlu1 %2772 }
 0x886   :  { %6590 = vrcp.f32 %v2773_v40 }
 0x888   :  { %v2782_v53 = vpop.xlane.xlu0 %2781 }
 0x889   :  { %6592 = vrcp.f32 %v2782_v53  ;;  %v2779_v31 = vpop.xlane.xlu1 %2778  ;;  %v9582_v53 = vld [vmem:[#allocation50_spill] sm:$0xff] }
 0x88a   :  { %6594 = vrcp.f32 %v2779_v31  ;;  %v9583_v31 = vld [vmem:[#allocation17_spill] sm:$0xff] }
 0x88c   :  { %v2788_v33 = vpop.xlane.xlu0 %2787 }
 0x88d   :  { %6596 = vrcp.f32 %v2788_v33  ;;  %v2785_v23 = vpop.xlane.xlu1 %2784  ;;  %v319_v33 = vadd.f32 %v9583_v31, %v9536_v8  ;;  %v1763_v31 = vmul.f32 0.33333334, %v8106_v61  ;;  %v6809_v61 = vld [vmem:[%s9400_s0 + $0x28] sm:$0xff] }
 0x88e   :  { %6598 = vrcp.f32 %v2785_v23 }
 0x88f   :  { %v6589_v22 = vpop.eup %6588 }
 0x890   :  { %v6591_v51 = vpop.eup %6590  ;;  %v2798_v11 = vmul.f32 %v6589_v22, %v8483_v25  ;;  %v2794_v10 = vpop.xlane.xlu0 %2793  ;;  %v9584_v22 = vld [vmem:[#allocation53_spill] sm:$0xff] }
 0x891   :  { %v2796_v41 = vmul.f32 %v6591_v51, %v8485_v34  ;;  %6600 = vrcp.f32 %v2794_v10  ;;  %v6404_v39 = vpop.permute.xlu1 %6403  ;;  %v4170_v51 = vld [vmem:[%s9405_s5] sm:$0xff]  ;;  %v9585_v10 = vld [vmem:[#allocation19_spill] sm:$0xff] }
 0x892   :  { %v6405_v19 = vunpack.i.l.bf16 %v6404_v39 }
 0x893   :  { %v6593_v37 = vpop.eup %6592  ;;  %5659 = vmatprep.mubr.msk.f32.mxu1 %vm81_vm0, %v2796_v41  ;;  %v4171_v41 = vld [vmem:[%s9405_s5 + $0x8] sm:$0xff] }
 0x894   :  { %v6595_v54 = vpop.eup %6594  ;;  %5660 = vmatmul.mubr.msk.f32.vlgmr.msra.gmra.mrb[72].mxu1 %vm81_vm0, %v2798_v11  ;;  %v2802_v60 = vmul.f32 %v6593_v37, %v8491_v5  ;;  %v6406_v5 = vunpack.i.h.bf16 %v6404_v39  ;;  %v6283_v11 = vpack.c.bf16 %v4171_v41, %v4170_v51  ;;  %v4172_v37 = vld [vmem:[%s9405_s5 + $0x10] sm:$0xff]  ;;  %v1764_v51 = vmul.f32 0.33333334, %v8112_v43 }
 0x895   :  { %6192 = vmatpush3.bf16.xpose.msk.msra.mxu1 %vm7258_vm1, %v6187_v4  ;;  %v2800_v52 = vmul.f32 %v6595_v54, %v8493_v2  ;;  %v6409_v4 = vpop.permute.xlu1 %6408  ;;  %v4173_v54 = vld [vmem:[%s9405_s5 + $0x18] sm:$0xff]  ;;  %v6810_v43 = vld [vmem:[%s9400_s0 + $0x30] sm:$0xff] }
 0x896   :  { %v6199_v44 = vpack.c.bf16 %v6406_v5, %v6405_v19  ;;  %v6411_v49 = vunpack.i.h.bf16 %v6409_v4  ;;  %v6410_v15 = vunpack.i.l.bf16 %v6409_v4  ;;  %v1758_v19 = vmul.f32 0.33333334, %v8100_v7 }
 0x897   :  { %v6597_v62 = vpop.eup %6596  ;;  %5662 = vmatprep.mubr.msk.f32.mxu1 %vm81_vm0, %v2800_v52  ;;  %v325_v52 = vadd.f32 %v9585_v10, %v9536_v8  ;;  %v1759_v4 = vmul.f32 0.33333334, %v8098_v29  ;;  %v9591_v29 = vld [vmem:[#allocation31_spill] sm:$0xff] }
 0x898   :  { %v6599_v34 = vpop.eup %6598  ;;  %5663 = vmatmul.mubr.msk.f32.gmra.mrb[74].mxu1 %vm81_vm0, %v2802_v60  ;;  %v2806_v48 = vmul.f32 %v6597_v62, %v8500_v24  ;;  %v6205_v0 = vpack.c.bf16 %v6411_v49, %v6410_v15  ;;  %v6287_v60 = vpack.c.bf16 %v4173_v54, %v4172_v37  ;;  %v9586_v62 = vld [vmem:[#allocation21_spill] sm:$0xff]  ;;  %v1779_v37 = vmul.f32 0.6, %v6809_v61 }
 0x899   :  { %v2791_v25 = vpop.xlane.xlu0 %2790  ;;  %v2804_v21 = vmul.f32 %v6599_v34, %v8502_v32  ;;  %v3230_v47 = vpop.permute.xlu1 %3229  ;;  %v331_v34 = vadd.f32 %v9586_v62, %v9536_v8  ;;  %v6804_v49 = vld [vmem:[%s9400_s0] sm:$0xff]  ;;  %v1765_v54 = vmul.f32 0.33333334, %v8110_v1  ;;  %v6811_v1 = vld [vmem:[%s9400_s0 + $0x38] sm:$0xff] }
 0x89a   :  { %6602 = vrcp.f32 %v2791_v25  ;;  %v4175_v25 = vld [vmem:[%s9405_s5 + $0x28] sm:$0xff]  ;;  %v1774_v15 = vmul.f32 0.6, %v6804_v49 }
 0x89b   :  { %5665 = vmatprep.mubr.msk.f32.mxu1 %vm81_vm0, %v2804_v21  ;;  %v6601_v32 = vpop.eup %6600  ;;  %v9587_v21 = vld [vmem:[#allocation23_spill] sm:$0xff]  ;;  %v6291_v39 = vpack.c.bf16 %v4175_v25, %v4174_v26  ;;  %v1781_v26 = vmul.f32 0.6, %v6811_v1 }
 0x89c   :  { %5666 = vmatmul.mubr.msk.f32.gmra.mrb[76].mxu1 %vm81_vm0, %v2806_v48  ;;  %v2810_v30 = vmul.f32 %v6601_v32, %v8509_v59  ;;  %v337_v48 = vadd.f32 %v9587_v21, %v9536_v8  ;;  %v9590_v32 = vld [vmem:[#allocation29_spill] sm:$0xff] }
 0x89d   :  { %v6399_v2 = vpop.permute.xlu0 %6398  ;;  %v3232_v16 = vpop.permute.xlu1 %3231 }
 0x89e   :  { %v6401_v14 = vunpack.i.h.bf16 %v6399_v2  ;;  %v6400_v28 = vunpack.i.l.bf16 %v6399_v2  ;;  %v9588_v2 = vld [vmem:[#allocation25_spill] sm:$0xff] }
 0x89f   :  { %v343_v5 = vadd.f32 %v9588_v2, %v9536_v8 }
 0x8a0   :  { %v6193_v58 = vpack.c.bf16 %v6401_v14, %v6400_v28  ;;  %v4176_v14 = vld [vmem:[%s9405_s5 + $0x30] sm:$0xff]  ;;  %v4177_v28 = vld [vmem:[%s9405_s5 + $0x38] sm:$0xff] }
 0x8a1   :  { %v3234_v59 = vpop.permute.xlu0 %3233  ;;  %v3236_v3 = vpop.permute.xlu1 %3235  ;;  %v6295_v7 = vpack.c.bf16 %v4177_v28, %v4176_v14  ;;  %v6812_v28 = vld [vmem:[%s9400_s0 + $0x40] sm:$0xff] }
 0x8a2   :  { %6195 = vmatprep.subr.msk.bf16.mxu1 %vm7258_vm1, %v6193_v58 }
 0x8a3   :  { %6198 = vmatpush3.bf16.xpose.msk.msra.mxu1 %vm7258_vm1, %v6193_v58  ;;  %v9589_v58 = vld [vmem:[#allocation27_spill] sm:$0xff] }
 0x8a4   :  { %v6603_v24 = vpop.eup %6602  ;;  %6201 = vmatprep.subr.msk.bf16.mxu1 %vm7258_vm1, %v6199_v44 }
 0x8a5   :  { %v2808_v38 = vmul.f32 %v6603_v24, %v8522_v56  ;;  %v9580_v56 = vld [vmem:[#allocation42_spill] sm:$0xff]  ;;  %v3238_v42 = vpop.permute.xlu0 %3237  ;;  %v3240_v6 = vpop.permute.xlu1 %3239  ;;  %v355_v24 = vadd.f32 %v9590_v32, %v9536_v8 }
 0x8a7   :  { %5668 = vmatprep.mubr.msk.f32.mxu1 %vm81_vm0, %v2808_v38  ;;  %v1766_v38 = vmul.f32 0.4, %v1758_v19 }
 0x8a8   :  { %5669 = vmatmul.mubr.msk.f32.gmra.mrb[78].mxu1 %vm81_vm0, %v2810_v30  ;;  %v1760_v30 = vmul.f32 0.33333334, %v8104_v27 }
 0x8a9   :  { %5715 = vmatprep.mubr.msk.f32.mxu1 %vm81_vm0, %v3230_v47  ;;  %v3242_v40 = vpop.permute.xlu0 %3241  ;;  %v3244_v23 = vpop.permute.xlu1 %3243  ;;  %v361_v47 = vadd.f32 %v9591_v29, %v9536_v8  ;;  %v6814_v29 = vld [vmem:[%s9400_s0 + $0x50] sm:$0xff] }
 0x8aa   :  { %v1768_v27 = vmul.f32 0.4, %v1760_v30 }
 0x8ab   :  { %6204 = vmatpush3.bf16.xpose.msk.msra.mxu1 %vm7258_vm1, %v6199_v44  ;;  %v349_v44 = vadd.f32 %v9589_v58, %v9536_v8  ;;  %v2964_v58 = vmul.f32 0.6, %v6812_v28 }
 0x8ac   :  { %6207 = vmatprep.subr.msk.bf16.mxu1 %vm7258_vm1, %v6205_v0 }
 0x8b3   :  { %6210 = vmatpush3.bf16.xpose.msk.msra.mxu1 %vm7258_vm1, %v6205_v0  ;;  %v1767_v0 = vmul.f32 0.4, %v1759_v4 }
 0x8b4   :  { %6245 = vmatprep.subr.msk.bf16.mxu1 %vm7258_vm1, %v9580_v56 }
 0x8ba   :  { %5716 = vmatmul.mubr.msk.f32.vlgmr.msra.gmra.mrb[80].mxu1 %vm81_vm0, %v3232_v16  ;;  %v6805_v16 = vld [vmem:[%s9400_s0 + $0x8] sm:$0xff] }
 0x8bb   :  { %5718 = vmatprep.mubr.msk.f32.mxu1 %vm81_vm0, %v3234_v59  ;;  %6248 = vmatpush3.bf16.xpose.msk.msra.mxu1 %vm7258_vm1, %v9580_v56  ;;  %v1775_v56 = vmul.f32 0.6, %v6805_v16  ;;  %v1761_v59 = vmul.f32 0.33333334, %v8102_v46 }
 0x8bc   :  { %6251 = vmatprep.subr.msk.bf16.mxu1 %vm7258_vm1, %v9581_v12 }
 0x8bd   :  { %v8697_v8 = vadd.f32 %v1775_v56, %v1767_v0  ;;  %v1769_v46 = vmul.f32 0.4, %v1761_v59 }
 0x8be   :  { %5719 = vmatmul.mubr.msk.f32.gmra.mrb[82].mxu1 %vm81_vm0, %v3236_v3  ;;  %v8688_v3 = vadd.f32 %v1774_v15, %v1766_v38 }
 0x8bf   :  { %5721 = vmatprep.mubr.msk.f32.mxu1 %vm81_vm0, %v3238_v42  ;;  %v6806_v42 = vld [vmem:[%s9400_s0 + $0x10] sm:$0xff] }
 0x8c2   :  { %5722 = vmatmul.mubr.msk.f32.gmra.mrb[84].mxu1 %vm81_vm0, %v3240_v6  ;;  %v1762_v6 = vmul.f32 0.33333334, %v8108_v57  ;;  %v6808_v57 = vld [vmem:[%s9400_s0 + $0x20] sm:$0xff] }
 0x8c3   :  { %5724 = vmatprep.mubr.msk.f32.mxu1 %vm81_vm0, %v3242_v40  ;;  %6254 = vmatpush3.bf16.xpose.msk.msra.mxu1 %vm7258_vm1, %v9581_v12  ;;  %v1776_v12 = vmul.f32 0.6, %v6806_v42  ;;  %v6807_v40 = vld [vmem:[%s9400_s0 + $0x18] sm:$0xff] }
 0x8c4   :  { %6257 = vmatprep.subr.msk.bf16.mxu1 %vm7258_vm1, %v9582_v53 }
 0x8c6   :  { %5725 = vmatmul.mubr.msk.f32.gmra.mrb[86].mxu1 %vm81_vm0, %v3244_v23  ;;  %v1770_v23 = vmul.f32 0.4, %v1762_v6 }
 0x8c7   :  { %5799 = vmatprep.mubr.msk.f32.mxu1 %vm81_vm0, %v319_v33  ;;  %v8703_v33 = vadd.f32 %v1776_v12, %v1768_v27 }
 0x8cb   :  { %6260 = vmatpush3.bf16.xpose.msk.msra.mxu1 %vm7258_vm1, %v9582_v53  ;;  %v1777_v53 = vmul.f32 0.6, %v6807_v40 }
 0x8cc   :  { %6263 = vmatprep.subr.msk.bf16.mxu1 %vm7258_vm1, %v9584_v22 }
 0x8cd   :  { %v8713_v41 = vadd.f32 %v1777_v53, %v1769_v46  ;;  %v6816_v53 = vld [vmem:[%s9400_s0 + $0x60] sm:$0xff] }
 0x8d3   :  { %6266 = vmatpush3.bf16.xpose.msk.msra.mxu1 %vm7258_vm1, %v9584_v22  ;;  %v1778_v22 = vmul.f32 0.6, %v6808_v57 }
 0x8d4   :  { %6284 = vmatprep.subr.bf16.mxu1 %v6283_v11 }
 0x8d5   :  { %v8719_v10 = vadd.f32 %v1778_v22, %v1770_v23 }
 0x8da   :  { %5800 = vmatmul.mubr.msk.f32.vlgmr.msra.gmra.mrb[88].mxu1 %vm81_vm0, %v325_v52  ;;  %v1772_v52 = vmul.f32 0.4, %v1764_v51 }
 0x8db   :  { %5802 = vmatprep.mubr.msk.f32.mxu1 %vm81_vm0, %v331_v34  ;;  %6286 = vmatpush3.bf16.msra.mxu1 %v6283_v11  ;;  %v1771_v11 = vmul.f32 0.4, %v1763_v31  ;;  %v1773_v34 = vmul.f32 0.4, %v1765_v54  ;;  %v2968_v31 = vmul.f32 0.6, %v6816_v53 }
 0x8dc   :  { %6288 = vmatprep.subr.bf16.mxu1 %v6287_v60  ;;  %v9592_v53 = vld [vmem:[#allocation55_spill] sm:$0xff] }
 0x8dd   :  { %v8728_v62 = vadd.f32 %v1779_v37, %v1771_v11  ;;  %v8739_v21 = vadd.f32 %v1781_v26, %v1773_v34  ;;  %v6818_v34 = vld [vmem:[%s9400_s0 + $0x70] sm:$0xff] }
 0x8de   :  { %5803 = vmatmul.mubr.msk.f32.gmra.mrb[90].mxu1 %vm81_vm0, %v337_v48  ;;  %v2970_v1 = vmul.f32 0.6, %v6818_v34 }
 0x8df   :  { %5805 = vmatprep.mubr.msk.f32.mxu1 %vm81_vm0, %v343_v5  ;;  %6290 = vmatpush3.bf16.msra.mxu1 %v6287_v60  ;;  %v1780_v60 = vmul.f32 0.6, %v6810_v43 }
 0x8e0   :  { %6292 = vmatprep.subr.bf16.mxu1 %v6291_v39 }
 0x8e1   :  { %v8733_v25 = vadd.f32 %v1780_v60, %v1772_v52 }
 0x8e2   :  { %5806 = vmatmul.mubr.msk.f32.gmra.mrb[92].mxu1 %vm81_vm0, %v349_v44 }
 0x8e3   :  { %5808 = vmatprep.mubr.msk.f32.mxu1 %vm81_vm0, %v355_v24  ;;  %6294 = vmatpush3.bf16.msra.mxu1 %v6291_v39 }
 0x8e4   :  { %6296 = vmatprep.subr.bf16.mxu1 %v6295_v7 }
 0x8e6   :  { %5809 = vmatmul.mubr.msk.f32.gmra.mrb[94].mxu1 %vm81_vm0, %v361_v47  ;;  %v2966_v47 = vmul.f32 0.6, %v6814_v29 }
 0x8e7   :  { %6298 = vmatpush3.bf16.msra.mxu1 %v6295_v7  ;;  %5855 = vmatprep.mubr.msk.f32.mxu1 %vm81_vm0, %v8688_v3  ;;  %v6813_v7 = vld [vmem:[%s9400_s0 + $0x48] sm:$0xff] }
 0x8e8   :  { %v2965_v32 = vmul.f32 0.6, %v6813_v7 }
 0x8ea   :  { %5856 = vmatmul.mubr.msk.f32.vlgmr.msra.gmra.mrb[96].mxu1 %vm81_vm0, %v8697_v8 }
 0x8eb   :  { %5858 = vmatprep.mubr.msk.f32.mxu1 %vm81_vm0, %v8703_v33 }
 0x8ee   :  { %5859 = vmatmul.mubr.msk.f32.gmra.mrb[98].mxu1 %vm81_vm0, %v8713_v41 }
 0x8ef   :  { %5861 = vmatprep.mubr.msk.f32.mxu1 %vm81_vm0, %v8719_v10 }
 0x8f2   :  { %5862 = vmatmul.mubr.msk.f32.gmra.mrb[100].mxu1 %vm81_vm0, %v8728_v62 }
 0x8f3   :  { %5864 = vmatprep.mubr.msk.f32.mxu1 %vm81_vm0, %v8733_v25 }
 0x8f6   :  { %5865 = vmatmul.mubr.msk.f32.gmra.mrb[102].mxu1 %vm81_vm0, %v8739_v21 }
 0x967   :  { %v5661_v48 = vpop.f32.mrb[72].mxu1 }
 0x968   :  { %v6299_v39 = vadd.f32 %v5661_v48, %v8368_v63  ;;  %v2901_v2 = vpop.f32.mrb[73].mxu1  ;;  %v6819_v48 = vld [vmem:[%s9400_s0 + $0x78] sm:$0xff] }
 0x969   :  { %v6300_v5 = vadd.f32 %v2901_v2, %v8370_v20 }
 0x96a   :  { %v2949_v19 = vmul.f32 0.33333334, %v6299_v39  ;;  %v2971_v39 = vmul.f32 0.6, %v6819_v48 }
 0x96b   :  { %v2948_v14 = vmul.f32 0.33333334, %v6300_v5  ;;  %v5664_v44 = vpop.f32.mrb[74].mxu1 }
 0x96c   :  { %v2957_v4 = vmul.f32 0.4, %v2949_v19  ;;  %v6301_v24 = vadd.f32 %v5664_v44, %v8372_v17  ;;  %v2911_v63 = vpop.f32.mrb[75].mxu1  ;;  %v6815_v17 = vld [vmem:[%s9400_s0 + $0x58] sm:$0xff] }
 0x96d   :  { %v2956_v38 = vmul.f32 0.4, %v2948_v14  ;;  %v6302_v20 = vadd.f32 %v2911_v63, %v8374_v55  ;;  %v2967_v59 = vmul.f32 0.6, %v6815_v17 }
 0x96e   :  { %v2951_v49 = vmul.f32 0.33333334, %v6301_v24  ;;  %v8758_v16 = vadd.f32 %v2965_v32, %v2957_v4 }
 0x96f   :  { %v8753_v15 = vadd.f32 %v2964_v58, %v2956_v38  ;;  %v2950_v30 = vmul.f32 0.33333334, %v6302_v20  ;;  %v5667_v0 = vpop.f32.mrb[76].mxu1 }
 0x970   :  { %v2959_v56 = vmul.f32 0.4, %v2951_v49  ;;  %v6303_v55 = vadd.f32 %v5667_v0, %v8376_v36  ;;  %v2921_v27 = vpop.f32.mrb[77].mxu1 }
 0x971   :  { %v2958_v42 = vmul.f32 0.4, %v2950_v30  ;;  %v6304_v12 = vadd.f32 %v2921_v27, %v8378_v35  ;;  %5867 = vmatprep.mubr.msk.f32.mxu1 %vm81_vm0, %v8753_v15  ;;  %v6817_v35 = vld [vmem:[%s9400_s0 + $0x68] sm:$0xff] }
 0x972   :  { %v2953_v6 = vmul.f32 0.33333334, %v6303_v55  ;;  %5868 = vmatmul.mubr.msk.f32.gmra.mrb[104].mxu1 %vm81_vm0, %v8758_v16  ;;  %v8774_v36 = vadd.f32 %v2967_v59, %v2959_v56  ;;  %v2969_v57 = vmul.f32 0.6, %v6817_v35  ;;  %v8832_v59 = vmul.f32 0.125, %v8458_v50 }
 0x973   :  { %v8769_v46 = vadd.f32 %v2966_v47, %v2958_v42  ;;  %v2952_v40 = vmul.f32 0.33333334, %v6304_v12  ;;  %v8841_v12 = vmul.f32 0.125, %v8454_v45 }
 0x974   :  { %v2961_v23 = vmul.f32 0.4, %v2953_v6  ;;  %v8844_v6 = vmul.f32 0.125, %v8462_v18 }
 0x975   :  { %v2960_v22 = vmul.f32 0.4, %v2952_v40  ;;  %5870 = vmatprep.mubr.msk.f32.mxu1 %vm81_vm0, %v8769_v46  ;;  %v3141_v40 = vsel %vm81_vm0, %v8832_v59, -inf  ;;  %v3144_v45 = vsel %vm81_vm0, %v8841_v12, -inf }
 0x976   :  { %5871 = vmatmul.mubr.msk.f32.gmra.mrb[106].mxu1 %vm81_vm0, %v8774_v36  ;;  %v8785_v11 = vadd.f32 %v2969_v57, %v2961_v23  ;;  %v9593_v23 = vld [vmem:[#allocation32_spill] sm:$0xff]  ;;  %v3147_v18 = vsel %vm81_vm0, %v8844_v6, -inf }
 0x977   :  { %v8783_v51 = vadd.f32 %v2968_v31, %v2960_v22  ;;  %v8851_v31 = vmul.f32 0.125, %v9592_v53  ;;  %v8854_v35 = vmul.f32 0.125, %v9593_v23  ;;  %v9594_v57 = vld [vmem:[#allocation56_spill] sm:$0xff] }
 0x978   :  { %v8861_v22 = vmul.f32 0.125, %v9594_v57 }
 0x979   :  { %5873 = vmatprep.mubr.msk.f32.mxu1 %vm81_vm0, %v8783_v51 }
 0x97a   :  { %5874 = vmatmul.mubr.msk.f32.gmra.mrb[108].mxu1 %vm81_vm0, %v8785_v11 }
 0x97b   :  { %v5670_v61 = vpop.f32.mrb[78].mxu1 }
 0x97c   :  { %v6305_v37 = vadd.f32 %v5670_v61, %v8380_v9  ;;  %v2931_v54 = vpop.f32.mrb[79].mxu1  ;;  %v9595_v61 = vld [vmem:[#allocation57_spill] sm:$0xff] }
 0x97d   :  { %v6306_v52 = vadd.f32 %v2931_v54, %v8382_v13  ;;  %v3150_v54 = vsel %vm81_vm0, %v8851_v31, -inf }
 0x97e   :  { %v2955_v43 = vmul.f32 0.33333334, %v6305_v37  ;;  %v8864_v37 = vmul.f32 0.125, %v9595_v61 }
 0x97f   :  { %v2954_v60 = vmul.f32 0.33333334, %v6306_v52  ;;  %v3153_v52 = vsel %vm81_vm0, %v8854_v35, -inf }
 0x980   :  { %v2963_v26 = vmul.f32 0.4, %v2955_v43  ;;  %v9596_v43 = vld [vmem:[#allocation58_spill] sm:$0xff] }
 0x981   :  { %v2962_v2 = vmul.f32 0.4, %v2954_v60  ;;  %v8871_v60 = vmul.f32 0.125, %v9596_v43 }
 0x982   :  { %v8801_v9 = vadd.f32 %v2971_v39, %v2963_v26  ;;  %v3159_v26 = vsel %vm81_vm0, %v8864_v37, -inf }
 0x983   :  { %v8799_v5 = vadd.f32 %v2970_v1, %v2962_v2  ;;  %v3156_v1 = vsel %vm81_vm0, %v8861_v22, -inf }
 0x985   :  { %5876 = vmatprep.mubr.msk.f32.mxu1 %vm81_vm0, %v8799_v5 }
 0x986   :  { %5877 = vmatmul.mubr.msk.f32.gmra.mrb[110].mxu1 %vm81_vm0, %v8801_v9 }
 0x98d   :  { %v5717_v13 = vpop.f32.mrb[80].mxu1 }
 0x98e   :  { %v8807_v19 = vmul.f32 0.125, %v5717_v13  ;;  %v3359_v14 = vpop.f32.mrb[81].mxu1 }
 0x98f   :  { %v8809_v28 = vmul.f32 0.125, %v3359_v14  ;;  %v3162_v14 = vsel %vm81_vm0, %v8871_v60, -inf }
 0x990   :  { %v3409_v58 = vsel %vm81_vm0, %v8807_v19, -inf }
 0x991   :  { %3410 = vmax.xlane.f32.xlu1 %v3409_v58  ;;  %v5720_v44 = vpop.f32.mrb[82].mxu1  ;;  %v3406_v4 = vsel %vm81_vm0, %v8809_v28, -inf }
 0x992   :  { %3407 = vmax.xlane.f32.xlu0 %v3406_v4  ;;  %v3369_v7 = vpop.f32.mrb[83].mxu1  ;;  %v8817_v24 = vmul.f32 0.125, %v5720_v44 }
 0x993   :  { %v8815_v32 = vmul.f32 0.125, %v3369_v7 }
 0x994   :  { %v3415_v47 = vsel %vm81_vm0, %v8817_v24, -inf }
 0x995   :  { %v5723_v63 = vpop.f32.mrb[84].mxu1  ;;  %v3412_v38 = vsel %vm81_vm0, %v8815_v32, -inf }
 0x996   :  { %3413 = vmax.xlane.f32.xlu0 %v3412_v38  ;;  %v3379_v20 = vpop.f32.mrb[85].mxu1  ;;  %v8823_v30 = vmul.f32 0.125, %v5723_v63 }
 0x997   :  { %v8821_v49 = vmul.f32 0.125, %v3379_v20 }
 0x998   :  { %v3421_v27 = vsel %vm81_vm0, %v8823_v30, -inf }
 0x999   :  { %v5726_v29 = vpop.f32.mrb[86].mxu1  ;;  %v3418_v0 = vsel %vm81_vm0, %v8821_v49, -inf }
 0x99a   :  { %3416 = vmax.xlane.f32.xlu0 %v3415_v47  ;;  %3419 = vmax.xlane.f32.xlu1 %v3418_v0  ;;  %v3389_v56 = vpop.f32.mrb[87].mxu1  ;;  %v8834_v55 = vmul.f32 0.125, %v5726_v29 }
 0x99b   :  { %v8829_v17 = vmul.f32 0.125, %v3389_v56 }
 0x99c   :  { %v3427_v50 = vsel %vm81_vm0, %v8834_v55, -inf }
 0x99d   :  { %v3424_v42 = vsel %vm81_vm0, %v8829_v17, -inf }
 0x99e   :  { %3422 = vmax.xlane.f32.xlu0 %v3421_v27  ;;  %3425 = vmax.xlane.f32.xlu1 %v3424_v42 }
 0x9a2   :  { %3428 = vmax.xlane.f32.xlu0 %v3427_v50  ;;  %3142 = vmax.xlane.f32.xlu1 %v3141_v40 }
 0x9a6   :  { %3145 = vmax.xlane.f32.xlu0 %v3144_v45  ;;  %3148 = vmax.xlane.f32.xlu1 %v3147_v18 }
 0x9aa   :  { %3151 = vmax.xlane.f32.xlu0 %v3150_v54  ;;  %3154 = vmax.xlane.f32.xlu1 %v3153_v52 }
 0x9ad   :  { %v5801_v34 = vpop.f32.mrb[88].mxu1 }
 0x9ae   :  { %3157 = vmax.xlane.f32.xlu0 %v3156_v1  ;;  %v3866_v48 = vpop.f32.mrb[89].mxu1  ;;  %3160 = vmax.xlane.f32.xlu1 %v3159_v26  ;;  %v8879_v2 = vmul.f32 0.125, %v5801_v34 }
 0x9af   :  { %v8877_v39 = vmul.f32 0.125, %v3866_v48 }
 0x9b0   :  { %v3916_v38 = vsel %vm81_vm0, %v8879_v2, -inf }
 0x9b1   :  { %v5804_v13 = vpop.f32.mrb[90].mxu1  ;;  %v3913_v58 = vsel %vm81_vm0, %v8877_v39, -inf }
 0x9b2   :  { %3163 = vmax.xlane.f32.xlu0 %v3162_v14  ;;  %v3876_v44 = vpop.f32.mrb[91].mxu1  ;;  %3914 = vmax.xlane.f32.xlu1 %v3913_v58  ;;  %v8887_v7 = vmul.f32 0.125, %v5804_v13 }
 0x9b3   :  { %v8885_v4 = vmul.f32 0.125, %v3876_v44 }
 0x9b4   :  { %v3922_v27 = vsel %vm81_vm0, %v8887_v7, -inf }
 0x9b5   :  { %v5807_v63 = vpop.f32.mrb[92].mxu1  ;;  %v3919_v20 = vsel %vm81_vm0, %v8885_v4, -inf }
 0x9b6   :  { %3917 = vmax.xlane.f32.xlu0 %v3916_v38  ;;  %v3886_v29 = vpop.f32.mrb[93].mxu1  ;;  %3920 = vmax.xlane.f32.xlu1 %v3919_v20  ;;  %v8895_v0 = vmul.f32 0.125, %v5807_v63 }
 0x9b7   :  { %v8893_v47 = vmul.f32 0.125, %v3886_v29 }
 0x9b8   :  { %v3928_v45 = vsel %vm81_vm0, %v8895_v0, -inf }
 0x9b9   :  { %v5810_v56 = vpop.f32.mrb[94].mxu1  ;;  %v3925_v42 = vsel %vm81_vm0, %v8893_v47, -inf }
 0x9ba   :  { %3923 = vmax.xlane.f32.xlu0 %v3922_v27  ;;  %v3896_v50 = vpop.f32.mrb[95].mxu1  ;;  %3926 = vmax.xlane.f32.xlu1 %v3925_v42  ;;  %v8903_v53 = vmul.f32 0.125, %v5810_v56  ;;  %v8925_v42 = vld [vmem:[%s9406_s6] ss:$0 sm:$0xff] }
 0x9bb   :  { %v8901_v40 = vmul.f32 0.125, %v3896_v50 }
 0x9bc   :  { %v3934_v54 = vsel %vm81_vm0, %v8903_v53, -inf }
 0x9bd   :  { %v5857_v23 = vpop.f32.mrb[96].mxu1  ;;  %v3931_v18 = vsel %vm81_vm0, %v8901_v40, -inf }
 0x9be   :  { %3929 = vmax.xlane.f32.xlu0 %v3928_v45  ;;  %v4323_v57 = vpop.f32.mrb[97].mxu1  ;;  %3932 = vmax.xlane.f32.xlu1 %v3931_v18  ;;  %v4329_v18 = vadd.f32 %v5857_v23, %v8925_v42 }
 0x9c0   :  { %v4443_v23 = vsub.f32 0.0, %v4329_v18 }
 0x9c1   :  { %v5860_v61 = vpop.f32.mrb[98].mxu1 }
 0x9c2   :  { %3935 = vmax.xlane.f32.xlu0 %v3934_v54  ;;  %v4333_v52 = vpop.f32.mrb[99].mxu1 }
 0x9c5   :  { %v8911_v43 = vpop.f32.mrb[100].mxu1 }
 0x9c6   :  { %v8913_v34 = vpop.f32.mrb[101].mxu1 }
 0x9c9   :  { %v8915_v1 = vpop.f32.mrb[102].mxu1 }
 0x9ca   :  { %v8917_v26 = vpop.f32.mrb[103].mxu1 }
 0xa1e   :  { %v3411_v48 = vpop.xlane.xlu1 %3410 }
 0xa1f   :  { %v3431_v13 = vsub.f32 %v8807_v19, %v3411_v48  ;;  %v3408_v14 = vpop.xlane.xlu0 %3407 }
 0xa20   :  { %v3430_v58 = vsub.f32 %v8809_v28, %v3408_v14 }
 0xa21   :  { %v3440_v44 = vmul.f32 1.442695, %v3431_v13 }
 0xa22   :  { %v3438_v63 = vmul.f32 1.442695, %v3430_v58 }
 0xa23   :  { %6604 = vpow2.f32 %v3440_v44  ;;  %v3414_v38 = vpop.xlane.xlu0 %3413 }
 0xa24   :  { %6606 = vpow2.f32 %v3438_v63  ;;  %v3432_v20 = vsub.f32 %v8815_v32, %v3414_v38 }
 0xa26   :  { %v3442_v29 = vmul.f32 1.442695, %v3432_v20 }
 0xa27   :  { %v3417_v56 = vpop.xlane.xlu0 %3416  ;;  %v3420_v27 = vpop.xlane.xlu1 %3419 }
 0xa28   :  { %6608 = vpow2.f32 %v3442_v29  ;;  %v3433_v19 = vsub.f32 %v8817_v24, %v3417_v56  ;;  %v3434_v28 = vsub.f32 %v8821_v49, %v3420_v27  ;;  %v4324_v24 = vadd.f32 %v8925_v42, %v4323_v57 }
 0xa29   :  { %v4339_v57 = vadd.f32 %v5860_v61, %v8925_v42 }
 0xa2a   :  { %v3444_v50 = vmul.f32 1.442695, %v3433_v19  ;;  %v3446_v45 = vmul.f32 1.442695, %v3434_v28  ;;  %v4442_v27 = vsub.f32 0.0, %v4324_v24  ;;  %v4349_v24 = vadd.f32 %v8911_v43, %v8925_v42 }
 0xa2b   :  { %v3423_v54 = vpop.xlane.xlu0 %3422  ;;  %v3426_v48 = vpop.xlane.xlu1 %3425  ;;  %v4445_v61 = vsub.f32 0.0, %v4339_v57 }
 0xa2c   :  { %6610 = vpow2.f32 %v3444_v50  ;;  %v3435_v32 = vsub.f32 %v8823_v30, %v3423_v54  ;;  %v3436_v13 = vsub.f32 %v8829_v17, %v3426_v48  ;;  %v4468_v50 = vmul.f32 1.442695, %v4443_v23 }
 0xa2d   :  { %v8932_v14 = vpop.eup %6604  ;;  %6612 = vpow2.f32 %v3446_v45  ;;  %v4334_v45 = vadd.f32 %v8925_v42, %v4333_v52 }
 0xa2e   :  { %v8934_v58 = vpop.eup %6606  ;;  %v3448_v44 = vmul.f32 1.442695, %v3435_v32  ;;  %v3450_v49 = vmul.f32 1.442695, %v3436_v13  ;;  %v3457_v63 = vsel %vm81_vm0, %v8932_v14, 0.0 }
 0xa2f   :  { %v3429_v38 = vpop.xlane.xlu0 %3428  ;;  %3458 = vadd.xlane.f32.xlu0 %v3457_v63  ;;  %v3143_v20 = vpop.xlane.xlu1 %3142  ;;  %v3454_v30 = vsel %vm81_vm0, %v8934_v58, 0.0  ;;  %v4466_v13 = vmul.f32 1.442695, %v4442_v27  ;;  %v4444_v63 = vsub.f32 0.0, %v4334_v45 }
 0xa30   :  { %6614 = vpow2.f32 %v3448_v44  ;;  %v3437_v17 = vsub.f32 %v8834_v55, %v3429_v38  ;;  %v3165_v29 = vsub.f32 %v8832_v59, %v3143_v20  ;;  %3455 = vadd.xlane.f32.xlu1 %v3454_v30 }
 0xa31   :  { %6616 = vpow2.f32 %v3450_v49 }
 0xa32   :  { %v8944_v56 = vpop.eup %6608  ;;  %v3452_v19 = vmul.f32 1.442695, %v3437_v17  ;;  %v3173_v28 = vmul.f32 1.442695, %v3165_v29  ;;  %v4472_v17 = vmul.f32 1.442695, %v4445_v61 }
 0xa33   :  { %v3146_v18 = vpop.xlane.xlu0 %3145  ;;  %v3149_v54 = vpop.xlane.xlu1 %3148  ;;  %v3460_v48 = vsel %vm81_vm0, %v8944_v56, 0.0 }
 0xa34   :  { %6618 = vpow2.f32 %v3452_v19  ;;  %v3166_v59 = vsub.f32 %v8841_v12, %v3146_v18  ;;  %v3167_v55 = vsub.f32 %v8844_v6, %v3149_v54  ;;  %3461 = vadd.xlane.f32.xlu1 %v3460_v48  ;;  %v4344_v12 = vadd.f32 %v8925_v42, %v8913_v34 }
 0xa35   :  { %6620 = vpow2.f32 %v3173_v28  ;;  %v4447_v34 = vsub.f32 0.0, %v4349_v24  ;;  %v4470_v28 = vmul.f32 1.442695, %v4444_v63 }
 0xa36   :  { %v8951_v32 = vpop.eup %6610  ;;  %v3175_v52 = vmul.f32 1.442695, %v3166_v59  ;;  %v3177_v44 = vmul.f32 1.442695, %v3167_v55  ;;  %6622 = vpow2.f32 %v4468_v50  ;;  %v4446_v50 = vsub.f32 0.0, %v4344_v12 }
 0xa37   :  { %v8955_v49 = vpop.eup %6612  ;;  %v3152_v23 = vpop.xlane.xlu0 %3151  ;;  %v3463_v38 = vsel %vm81_vm0, %v8951_v32, 0.0 }
 0xa38   :  { %v3155_v6 = vpop.xlane.xlu1 %3154  ;;  %6624 = vpow2.f32 %v3175_v52  ;;  %v3168_v20 = vsub.f32 %v8851_v31, %v3152_v23  ;;  %3464 = vadd.xlane.f32.xlu0 %v3463_v38  ;;  %v3466_v43 = vsel %vm81_vm0, %v8955_v49, 0.0  ;;  %v4359_v31 = vadd.f32 %v8915_v1, %v8925_v42 }
 0xa39   :  { %v3169_v30 = vsub.f32 %v8854_v35, %v3155_v6  ;;  %6626 = vpow2.f32 %v3177_v44  ;;  %3467 = vadd.xlane.f32.xlu1 %v3466_v43  ;;  %v4476_v1 = vmul.f32 1.442695, %v4447_v34  ;;  %v4474_v52 = vmul.f32 1.442695, %v4446_v50 }
 0xa3a   :  { %v8965_v29 = vpop.eup %6614  ;;  %6628 = vpow2.f32 %v4466_v13  ;;  %v3179_v57 = vmul.f32 1.442695, %v3168_v20  ;;  %v4449_v44 = vsub.f32 0.0, %v4359_v31 }
 0xa3b   :  { %v3181_v27 = vmul.f32 1.442695, %v3169_v30  ;;  %v8967_v19 = vpop.eup %6616  ;;  %v3158_v35 = vpop.xlane.xlu0 %3157  ;;  %v3469_v18 = vsel %vm81_vm0, %v8965_v29, 0.0 }
 0xa3c   :  { %v3161_v45 = vpop.xlane.xlu1 %3160  ;;  %6630 = vpow2.f32 %v3179_v57  ;;  %v3170_v54 = vsub.f32 %v8861_v22, %v3158_v35  ;;  %3470 = vadd.xlane.f32.xlu0 %v3469_v18  ;;  %v3472_v59 = vsel %vm81_vm0, %v8967_v19, 0.0  ;;  %v4480_v34 = vmul.f32 1.442695, %v4449_v44 }
 0xa3d   :  { %v3171_v48 = vsub.f32 %v8864_v37, %v3161_v45  ;;  %6632 = vpow2.f32 %v3181_v27  ;;  %3473 = vadd.xlane.f32.xlu1 %v3472_v59 }
 0xa3e   :  { %v8977_v55 = vpop.eup %6618  ;;  %6634 = vpow2.f32 %v4472_v17  ;;  %v3183_v61 = vmul.f32 1.442695, %v3170_v54 }
 0xa3f   :  { %v3185_v13 = vmul.f32 1.442695, %v3171_v48  ;;  %v8979_v24 = vpop.eup %6620  ;;  %6636 = vpow2.f32 %v4470_v28  ;;  %v3164_v22 = vpop.xlane.xlu0 %3163  ;;  %v3475_v37 = vsel %vm81_vm0, %v8977_v55, 0.0 }
 0xa40   :  { %v3915_v63 = vpop.xlane.xlu1 %3914  ;;  %6638 = vpow2.f32 %v3183_v61  ;;  %v3172_v12 = vsub.f32 %v8871_v60, %v3164_v22  ;;  %3476 = vadd.xlane.f32.xlu0 %v3475_v37  ;;  %v3189_v6 = vsel %vm81_vm0, %v8979_v24, 0.0  ;;  %v6623_v38 = vpop.eup %6622 }
 0xa41   :  { %v3937_v23 = vsub.f32 %v8877_v39, %v3915_v63  ;;  %6640 = vpow2.f32 %v3185_v13  ;;  %3190 = vadd.xlane.f32.xlu1 %v3189_v6  ;;  %v4515_v18 = vadd.f32 1.0, %v6623_v38  ;;  %v4354_v6 = vadd.f32 %v8925_v42, %v8917_v26 }
 0xa42   :  { %v8987_v20 = vpop.eup %6624  ;;  %6642 = vpow2.f32 %v4476_v1  ;;  %v3187_v30 = vmul.f32 1.442695, %v3172_v12 }
 0xa43   :  { %v3945_v43 = vmul.f32 1.442695, %v3937_v23  ;;  %v8989_v17 = vpop.eup %6626  ;;  %6644 = vpow2.f32 %v4474_v52  ;;  %v3918_v57 = vpop.xlane.xlu0 %3917  ;;  %v3192_v39 = vsel %vm81_vm0, %v8987_v20, 0.0 }
 0xa44   :  { %v3921_v60 = vpop.xlane.xlu1 %3920  ;;  %v6629_v27 = vpop.eup %6628  ;;  %6646 = vpow2.f32 %v3187_v30  ;;  %v3938_v28 = vsub.f32 %v8879_v2, %v3918_v57  ;;  %3193 = vadd.xlane.f32.xlu0 %v3192_v39  ;;  %v3195_v31 = vsel %vm81_vm0, %v8989_v17, 0.0 }
 0xa45   :  { %v3939_v50 = vsub.f32 %v8885_v4, %v3921_v60  ;;  %6648 = vpow2.f32 %v3945_v43  ;;  %3196 = vadd.xlane.f32.xlu1 %v3195_v31  ;;  %v5869_v35 = vpop.f32.mrb[104].mxu1  ;;  %v4514_v2 = vadd.f32 1.0, %v6629_v27 }
 0xa46   :  { %v8997_v45 = vpop.eup %6630  ;;  %v3947_v54 = vmul.f32 1.442695, %v3938_v28  ;;  %v4369_v59 = vadd.f32 %v5869_v35, %v8925_v42  ;;  %v4363_v1 = vpop.f32.mrb[105].mxu1  ;;  %6650 = vpow2.f32 %v4480_v34 }
 0xa47   :  { %v3949_v48 = vmul.f32 1.442695, %v3939_v50  ;;  %v9000_v61 = vpop.eup %6632  ;;  %v4364_v4 = vadd.f32 %v8925_v42, %v4363_v1  ;;  %v3924_v13 = vpop.xlane.xlu0 %3923  ;;  %v3198_v44 = vsel %vm81_vm0, %v8997_v45, 0.0  ;;  %v4448_v1 = vsub.f32 0.0, %v4354_v6 }
 0xa48   :  { %v3927_v52 = vpop.xlane.xlu1 %3926  ;;  %v9005_v22 = vpop.eup %6634  ;;  %6652 = vpow2.f32 %v3947_v54  ;;  %v4451_v63 = vsub.f32 0.0, %v4369_v59  ;;  %v3940_v37 = vsub.f32 %v8887_v7, %v3924_v13  ;;  %3199 = vadd.xlane.f32.xlu0 %v3198_v44  ;;  %v3201_v30 = vsel %vm81_vm0, %v9000_v61, 0.0 }
 0xa49   :  { %v3941_v12 = vsub.f32 %v8893_v47, %v3927_v52  ;;  %v9009_v23 = vpop.eup %6636  ;;  %6654 = vpow2.f32 %v3949_v48  ;;  %v4450_v38 = vsub.f32 0.0, %v4364_v4  ;;  %v5872_v43 = vpop.f32.mrb[106].mxu1  ;;  %3202 = vadd.xlane.f32.xlu1 %v3201_v30 }
 0xa4a   :  { %v9015_v34 = vpop.eup %6638  ;;  %6656 = vrcp.f32 %v4515_v18  ;;  %v4484_v57 = vmul.f32 1.442695, %v4451_v63  ;;  %v3951_v60 = vmul.f32 1.442695, %v3940_v37  ;;  %v4379_v7 = vadd.f32 %v5872_v43, %v8925_v42  ;;  %v4373_v26 = vpop.f32.mrb[107].mxu1 }
 0xa4b   :  { %v9018_v47 = vpop.eup %6640  ;;  %6658 = vrcp.f32 %v4514_v2  ;;  %v4482_v39 = vmul.f32 1.442695, %v4450_v38  ;;  %v3953_v27 = vmul.f32 1.442695, %v3941_v12  ;;  %v3930_v28 = vpop.xlane.xlu0 %3929  ;;  %v3204_v50 = vsel %vm81_vm0, %v9015_v34, 0.0 }
 0xa4c   :  { %v6643_v31 = vpop.eup %6642  ;;  %6660 = vpow2.f32 %v4484_v57  ;;  %v4453_v35 = vsub.f32 0.0, %v4379_v7  ;;  %v4374_v18 = vadd.f32 %v8925_v42, %v4373_v26  ;;  %v3942_v54 = vsub.f32 %v8895_v0, %v3930_v28  ;;  %v3933_v48 = vpop.xlane.xlu1 %3932  ;;  %3205 = vadd.xlane.f32.xlu0 %v3204_v50 }
 0xa4d   :  { %v6645_v59 = vpop.eup %6644  ;;  %6662 = vpow2.f32 %v4482_v39  ;;  %v3943_v2 = vsub.f32 %v8901_v40, %v3933_v48  ;;  %v3207_v4 = vsel %vm81_vm0, %v9018_v47, 0.0  ;;  %v5875_v13 = vpop.f32.mrb[108].mxu1  ;;  %v4478_v50 = vmul.f32 1.442695, %v4448_v1 }
 0xa4e   :  { %v9027_v52 = vpop.eup %6646  ;;  %6664 = vpow2.f32 %v3951_v60  ;;  %v4488_v44 = vmul.f32 1.442695, %v4453_v35  ;;  %v4452_v63 = vsub.f32 0.0, %v4374_v18  ;;  %v3955_v37 = vmul.f32 1.442695, %v3942_v54  ;;  %3208 = vadd.xlane.f32.xlu1 %v3207_v4  ;;  %v4383_v12 = vpop.f32.mrb[109].mxu1 }
 0xa4f   :  { %v9029_v0 = vpop.eup %6648  ;;  %6666 = vpow2.f32 %v3953_v27  ;;  %v3957_v38 = vmul.f32 1.442695, %v3943_v2  ;;  %v4389_v6 = vadd.f32 %v5875_v13, %v8925_v42  ;;  %v4384_v40 = vadd.f32 %v8925_v42, %v4383_v12  ;;  %v3936_v30 = vpop.xlane.xlu0 %3935 }
 0xa50   :  { %6668 = vpow2.f32 %v4488_v44  ;;  %v4486_v43 = vmul.f32 1.442695, %v4452_v63  ;;  %v3944_v57 = vsub.f32 %v8903_v53, %v3936_v30  ;;  %v3210_v60 = vsel %vm81_vm0, %v9027_v52, 0.0  ;;  %v9036_v7 = vpop.eup %6650 }
 0xa51   :  { %6670 = vpow2.f32 %v3955_v37  ;;  %v4455_v39 = vsub.f32 0.0, %v4389_v6  ;;  %v4454_v26 = vsub.f32 0.0, %v4384_v40  ;;  %3211 = vadd.xlane.f32.xlu0 %v3210_v60  ;;  %v3961_v27 = vsel %vm81_vm0, %v9029_v0, 0.0 }
 0xa52   :  { %v9040_v28 = vpop.eup %6652  ;;  %6672 = vpow2.f32 %v4486_v43  ;;  %v3959_v35 = vmul.f32 1.442695, %v3944_v57  ;;  %3962 = vadd.xlane.f32.xlu1 %v3961_v27  ;;  %v4517_v4 = vadd.f32 1.0, %v9005_v22  ;;  %v4516_v37 = vadd.f32 1.0, %v9009_v23 }
 0xa53   :  { %v9042_v18 = vpop.eup %6654  ;;  %6674 = vpow2.f32 %v3957_v38  ;;  %v4492_v53 = vmul.f32 1.442695, %v4455_v39  ;;  %v4490_v54 = vmul.f32 1.442695, %v4454_v26  ;;  %v3964_v48 = vsel %vm81_vm0, %v9040_v28, 0.0 }
 0xa54   :  { %v9046_v2 = vpop.eup %6656  ;;  %6676 = vpow2.f32 %v3959_v35  ;;  %v3967_v13 = vsel %vm81_vm0, %v9042_v18, 0.0  ;;  %v4519_v22 = vadd.f32 1.0, %v6643_v31  ;;  %v4518_v60 = vadd.f32 1.0, %v6645_v59 }
 0xa55   :  { %v9051_v1 = vpop.eup %6658  ;;  %6678 = vpow2.f32 %v4492_v53  ;;  %3965 = vadd.xlane.f32.xlu0 %v3964_v48 }
 0xa56   :  { %v6661_v44 = vpop.eup %6660  ;;  %6680 = vpow2.f32 %v4490_v54  ;;  %3968 = vadd.xlane.f32.xlu1 %v3967_v13 }
 0xa57   :  { %v6663_v63 = vpop.eup %6662  ;;  %6682 = vpow2.f32 %v4478_v50  ;;  %v4523_v12 = vadd.f32 1.0, %v6661_v44 }
 0xa58   :  { %v9054_v38 = vpop.eup %6664  ;;  %6684 = vrcp.f32 %v4517_v4  ;;  %v4522_v6 = vadd.f32 1.0, %v6663_v63 }
 0xa59   :  { %v9056_v40 = vpop.eup %6666  ;;  %6686 = vrcp.f32 %v4523_v12  ;;  %v3970_v30 = vsel %vm81_vm0, %v9054_v38, 0.0  ;;  %v5878_v43 = vpop.f32.mrb[110].mxu1 }
 0xa5a   :  { %v6669_v57 = vpop.eup %6668  ;;  %6688 = vrcp.f32 %v4522_v6  ;;  %3971 = vadd.xlane.f32.xlu0 %v3970_v30  ;;  %v3973_v23 = vsel %vm81_vm0, %v9056_v40, 0.0  ;;  %v4399_v39 = vadd.f32 %v5878_v43, %v8925_v42  ;;  %v4393_v26 = vpop.f32.mrb[111].mxu1 }
 0xa5b   :  { %v9063_v27 = vpop.eup %6670  ;;  %6690 = vrcp.f32 %v4516_v37  ;;  %v4525_v31 = vadd.f32 1.0, %v6669_v57  ;;  %3974 = vadd.xlane.f32.xlu1 %v3973_v23  ;;  %v4394_v50 = vadd.f32 %v8925_v42, %v4393_v26  ;;  %v4587_v26 = vmul.f32 %v9046_v2, %v8697_v8 }
 0xa5c   :  { %v6673_v35 = vpop.eup %6672  ;;  %6692 = vrcp.f32 %v4519_v22  ;;  %v4457_v53 = vsub.f32 0.0, %v4399_v39  ;;  %v3976_v59 = vsel %vm81_vm0, %v9063_v27, 0.0 }
 0xa5d   :  { %v9068_v54 = vpop.eup %6674  ;;  %6694 = vrcp.f32 %v4525_v31  ;;  %v4524_v48 = vadd.f32 1.0, %v6673_v35  ;;  %v4456_v4 = vsub.f32 0.0, %v4394_v50  ;;  %v4586_v35 = vmul.f32 %v9051_v1, %v8688_v3 }
 0xa5e   :  { %v9070_v13 = vpop.eup %6676  ;;  %6696 = vrcp.f32 %v4518_v60  ;;  %v4496_v44 = vmul.f32 1.442695, %v4457_v53  ;;  %3977 = vadd.xlane.f32.xlu0 %v3976_v59  ;;  %v3979_v63 = vsel %vm81_vm0, %v9068_v54, 0.0 }
 0xa5f   :  { %v6679_v37 = vpop.eup %6678  ;;  %6698 = vrcp.f32 %v4524_v48  ;;  %v4494_v12 = vmul.f32 1.442695, %v4456_v4  ;;  %3980 = vadd.xlane.f32.xlu1 %v3979_v63  ;;  %v3982_v22 = vsel %vm81_vm0, %v9070_v13, 0.0 }
 0xa60   :  { %v6681_v6 = vpop.eup %6680  ;;  %v4527_v30 = vadd.f32 1.0, %v6679_v37  ;;  %6700 = vpow2.f32 %v4496_v44  ;;  %v4521_v44 = vadd.f32 1.0, %v9036_v7 }
 0xa61   :  { %v6683_v43 = vpop.eup %6682  ;;  %v4526_v57 = vadd.f32 1.0, %v6681_v6  ;;  %6702 = vpow2.f32 %v4494_v12 }
 0xa62   :  { %v6685_v23 = vpop.eup %6684  ;;  %6704 = vrcp.f32 %v4527_v30  ;;  %3983 = vadd.xlane.f32.xlu0 %v3982_v22  ;;  %v4520_v2 = vadd.f32 1.0, %v6683_v43 }
 0xa63   :  { %v6687_v60 = vpop.eup %6686  ;;  %6706 = vrcp.f32 %v4526_v57  ;;  %v4589_v12 = vmul.f32 %v6685_v23, %v8713_v41 }
 0xa64   :  { %v6689_v39 = vpop.eup %6688  ;;  %v4595_v31 = vmul.f32 %v6687_v60, %v8758_v16  ;;  %6708 = vrcp.f32 %v4521_v44 }
 0xa65   :  { %v6691_v50 = vpop.eup %6690  ;;  %v4594_v53 = vmul.f32 %v6689_v39, %v8753_v15  ;;  %6710 = vrcp.f32 %v4520_v2 }
 0xa66   :  { %v6693_v59 = vpop.eup %6692  ;;  %v9082_v48 = vadd.f32 %v4595_v31, %v4587_v26  ;;  %v4588_v1 = vmul.f32 %v6691_v50, %v8703_v33 }
 0xa67   :  { %v6695_v4 = vpop.eup %6694  ;;  %v9085_v63 = vadd.f32 %v4594_v53, %v4586_v35  ;;  %v4591_v43 = vmul.f32 %v6693_v59, %v8728_v62 }
 0xa68   :  { %v6697_v37 = vpop.eup %6696  ;;  %v4597_v22 = vmul.f32 %v6695_v4, %v8774_v36 }
 0xa69   :  { %v6699_v6 = vpop.eup %6698  ;;  %v4590_v50 = vmul.f32 %v6697_v37, %v8719_v10 }
 0xa6a   :  { %v6701_v30 = vpop.eup %6700  ;;  %v9090_v57 = vadd.f32 %v4597_v22, %v4589_v12  ;;  %v4596_v60 = vmul.f32 %v6699_v6, %v8769_v46 }
 0xa6b   :  { %v6703_v39 = vpop.eup %6702  ;;  %v4529_v26 = vadd.f32 1.0, %v6701_v30 }
 0xa6c   :  { %v6705_v7 = vpop.eup %6704  ;;  %v9093_v31 = vadd.f32 %v4596_v60, %v4588_v1  ;;  %v4528_v35 = vadd.f32 1.0, %v6703_v39 }
 0xa6d   :  { %v6707_v23 = vpop.eup %6706  ;;  %v4599_v53 = vmul.f32 %v6705_v7, %v8785_v11  ;;  %6712 = vrcp.f32 %v4529_v26 }
 0xa6e   :  { %v4598_v4 = vmul.f32 %v6707_v23, %v8783_v51  ;;  %6714 = vrcp.f32 %v4528_v35  ;;  %v6709_v22 = vpop.eup %6708 }
 0xa6f   :  { %v9099_v12 = vadd.f32 %v4599_v53, %v4591_v43  ;;  %v6711_v2 = vpop.eup %6710  ;;  %v4593_v1 = vmul.f32 %v6709_v22, %v8739_v21 }
 0xa70   :  { %v9101_v44 = vadd.f32 %v4598_v4, %v4590_v50  ;;  %v4592_v60 = vmul.f32 %v6711_v2, %v8733_v25 }
 0xa77   :  { %v6713_v6 = vpop.eup %6712 }
 0xa78   :  { %v6715_v30 = vpop.eup %6714  ;;  %v4601_v59 = vmul.f32 %v6713_v6, %v8801_v9 }
 0xa79   :  { %v4600_v39 = vmul.f32 %v6715_v30, %v8799_v5 }
 0xa7a   :  { %v9107_v37 = vadd.f32 %v4601_v59, %v4593_v1 }
 0xa7b   :  { %v9109_v26 = vadd.f32 %v4600_v39, %v4592_v60  ;;  %v9597_v39 = vld [vmem:[#allocation34_spill] sm:$0xff] }
 0xabc   :  { %v3459_v7 = vpop.xlane.xlu0 %3458 }
 0xabd   :  { %6716 = vrcp.f32 %v3459_v7  ;;  %v3456_v35 = vpop.xlane.xlu1 %3455 }
 0xabe   :  { %6718 = vrcp.f32 %v3456_v35  ;;  %v9598_v35 = vld [vmem:[#allocation33_spill] sm:$0xff] }
 0xac1   :  { %v3462_v23 = vpop.xlane.xlu1 %3461 }
 0xac2   :  { %6720 = vrcp.f32 %v3462_v23 }
 0xac5   :  { %v3465_v43 = vpop.xlane.xlu0 %3464 }
 0xac6   :  { %6722 = vrcp.f32 %v3465_v43  ;;  %v3468_v53 = vpop.xlane.xlu1 %3467 }
 0xac7   :  { %v6717_v50 = vpop.eup %6716  ;;  %6724 = vrcp.f32 %v3468_v53 }
 0xac8   :  { %v6719_v4 = vpop.eup %6718  ;;  %v3481_v6 = vmul.f32 %v6717_v50, %v8932_v14  ;;  %v9599_v50 = vld [vmem:[#allocation6_spill] sm:$0xff] }
 0xac9   :  { %v3471_v22 = vpop.xlane.xlu0 %3470  ;;  %v3479_v2 = vmul.f32 %v6719_v4, %v8934_v58 }
 0xaca   :  { %6726 = vrcp.f32 %v3471_v22  ;;  %v3474_v30 = vpop.xlane.xlu1 %3473 }
 0xacb   :  { %6728 = vrcp.f32 %v3474_v30  ;;  %5743 = vmatprep.mubr.msk.f32.mxu0 %vm81_vm0, %v3479_v2  ;;  %v9600_v30 = vld [vmem:[#allocation7_spill] sm:$0xff] }
 0xacc   :  { %v6721_v1 = vpop.eup %6720  ;;  %5744 = vmatmul.mubr.msk.f32.vlgmr.msra.gmra.mrb[96].mxu0 %vm81_vm0, %v3481_v6 }
 0xacd   :  { %v3477_v59 = vpop.xlane.xlu0 %3476  ;;  %v3483_v60 = vmul.f32 %v6721_v1, %v8944_v56  ;;  %6230 = vmatpush3.bf16.msra.mxu0 %v9597_v39 }
 0xace   :  { %6730 = vrcp.f32 %v3477_v59  ;;  %v3191_v7 = vpop.xlane.xlu1 %3190  ;;  %6232 = vmatprep.subr.bf16.mxu0 %v9598_v35 }
 0xacf   :  { %6732 = vrcp.f32 %v3191_v7  ;;  %5746 = vmatprep.mubr.msk.f32.mxu0 %vm81_vm0, %v3483_v60 }
 0xad0   :  { %v6723_v14 = vpop.eup %6722 }
 0xad1   :  { %v6725_v58 = vpop.eup %6724  ;;  %v3194_v23 = vpop.xlane.xlu0 %3193  ;;  %v3485_v43 = vmul.f32 %v6723_v14, %v8951_v32  ;;  %6234 = vmatpush3.bf16.msra.mxu0 %v9598_v35 }
 0xad2   :  { %6734 = vrcp.f32 %v3194_v23  ;;  %v3197_v53 = vpop.xlane.xlu1 %3196  ;;  %v3487_v56 = vmul.f32 %v6725_v58, %v8955_v49  ;;  %6236 = vmatprep.subr.bf16.mxu0 %v9599_v50 }
 0xad3   :  { %6736 = vrcp.f32 %v3197_v53  ;;  %5747 = vmatmul.mubr.msk.f32.gmra.mrb[98].mxu0 %vm81_vm0, %v3485_v43 }
 0xad4   :  { %v6727_v4 = vpop.eup %6726  ;;  %5749 = vmatprep.mubr.msk.f32.mxu0 %vm81_vm0, %v3487_v56 }
 0xad5   :  { %v6729_v22 = vpop.eup %6728  ;;  %v3200_v2 = vpop.xlane.xlu0 %3199  ;;  %v3489_v6 = vmul.f32 %v6727_v4, %v8965_v29  ;;  %6238 = vmatpush3.bf16.msra.mxu0 %v9599_v50 }
 0xad6   :  { %6738 = vrcp.f32 %v3200_v2  ;;  %v3491_v32 = vmul.f32 %v6729_v22, %v8967_v19  ;;  %6240 = vmatprep.subr.bf16.mxu0 %v9600_v30  ;;  %v3203_v49 = vpop.xlane.xlu1 %3202 }
 0xad7   :  { %5750 = vmatmul.mubr.msk.f32.gmra.mrb[100].mxu0 %vm81_vm0, %v3489_v6  ;;  %6740 = vrcp.f32 %v3203_v49 }
 0xad8   :  { %v6731_v1 = vpop.eup %6730  ;;  %5752 = vmatprep.mubr.msk.f32.mxu0 %vm81_vm0, %v3491_v32 }
 0xad9   :  { %v6733_v59 = vpop.eup %6732  ;;  %v3206_v60 = vpop.xlane.xlu0 %3205  ;;  %v3493_v7 = vmul.f32 %v6731_v1, %v8977_v55  ;;  %6242 = vmatpush3.bf16.msra.mxu0 %v9600_v30 }
 0xada   :  { %6742 = vrcp.f32 %v3206_v60  ;;  %v3214_v29 = vmul.f32 %v6733_v59, %v8979_v24  ;;  %6268 = vmatprep.subr.bf16.mxu0 %v9597_v39 }
 0xadb   :  { %v3209_v19 = vpop.xlane.xlu1 %3208  ;;  %5753 = vmatmul.mubr.msk.f32.gmra.mrb[102].mxu0 %vm81_vm0, %v3493_v7 }
 0xadc   :  { %v6735_v14 = vpop.eup %6734  ;;  %6744 = vrcp.f32 %v3209_v19  ;;  %5771 = vmatprep.mubr.msk.f32.mxu0 %vm81_vm0, %v3214_v29 }
 0xadd   :  { %v6737_v58 = vpop.eup %6736  ;;  %v3216_v23 = vmul.f32 %v6735_v14, %v8987_v20 }
 0xade   :  { %v3212_v43 = vpop.xlane.xlu0 %3211  ;;  %v3218_v55 = vmul.f32 %v6737_v58, %v8989_v17 }
 0xadf   :  { %6746 = vrcp.f32 %v3212_v43  ;;  %v3963_v53 = vpop.xlane.xlu1 %3962  ;;  %5772 = vmatmul.mubr.msk.f32.vlgmr.msra.gmra.mrb[96].mxu0 %vm81_vm0, %v3216_v23 }
 0xae0   :  { %v6739_v24 = vpop.eup %6738  ;;  %6748 = vrcp.f32 %v3963_v53  ;;  %5774 = vmatprep.mubr.msk.f32.mxu0 %vm81_vm0, %v3218_v55  ;;  %6270 = vmatpush3.bf16.msra.mxu0 %v9597_v39 }
 0xae1   :  { %v3220_v56 = vmul.f32 %v6739_v24, %v8997_v45  ;;  %6272 = vmatprep.subr.bf16.mxu0 %v9598_v35  ;;  %v6741_v4 = vpop.eup %6740 }
 0xae2   :  { %v3966_v22 = vpop.xlane.xlu0 %3965  ;;  %v3222_v17 = vmul.f32 %v6741_v4, %v9000_v61 }
 0xae3   :  { %6750 = vrcp.f32 %v3966_v22  ;;  %v3969_v20 = vpop.xlane.xlu1 %3968  ;;  %5775 = vmatmul.mubr.msk.f32.gmra.mrb[98].mxu0 %vm81_vm0, %v3220_v56  ;;  %v6820_v56 = vld [vmem:[%s9400_s0 + $0x80] sm:$0xff] }
 0xae4   :  { %v6743_v2 = vpop.eup %6742  ;;  %6752 = vrcp.f32 %v3969_v20  ;;  %6274 = vmatpush3.bf16.msra.mxu0 %v9598_v35  ;;  %5777 = vmatprep.mubr.msk.f32.mxu0 %vm81_vm0, %v3222_v17 }
 0xae5   :  { %v3224_v39 = vmul.f32 %v6743_v2, %v9015_v34  ;;  %6276 = vmatprep.subr.bf16.mxu0 %v9599_v50 }
 0xae6   :  { %v6745_v45 = vpop.eup %6744 }
 0xae7   :  { %v3972_v6 = vpop.xlane.xlu0 %3971  ;;  %5778 = vmatmul.mubr.msk.f32.gmra.mrb[100].mxu0 %vm81_vm0, %v3224_v39  ;;  %v3226_v32 = vmul.f32 %v6745_v45, %v9018_v47 }
 0xae8   :  { %6754 = vrcp.f32 %v3972_v6  ;;  %v3975_v49 = vpop.xlane.xlu1 %3974  ;;  %6278 = vmatpush3.bf16.msra.mxu0 %v9599_v50 }
 0xae9   :  { %v6747_v61 = vpop.eup %6746  ;;  %6756 = vrcp.f32 %v3975_v49  ;;  %5780 = vmatprep.mubr.msk.f32.mxu0 %vm81_vm0, %v3226_v32  ;;  %6280 = vmatprep.subr.bf16.mxu0 %v9600_v30  ;;  %v6822_v32 = vld [vmem:[%s9400_s0 + $0x90] sm:$0xff] }
 0xaea   :  { %v6749_v35 = vpop.eup %6748  ;;  %v3228_v34 = vmul.f32 %v6747_v61, %v9027_v52  ;;  %v4156_v49 = vmul.f32 0.6, %v6822_v32 }
 0xaeb   :  { %v3978_v1 = vpop.xlane.xlu0 %3977  ;;  %v3986_v59 = vmul.f32 %v6749_v35, %v9029_v0  ;;  %v6823_v35 = vld [vmem:[%s9400_s0 + $0x98] sm:$0xff] }
 0xaec   :  { %6758 = vrcp.f32 %v3978_v1  ;;  %v3981_v60 = vpop.xlane.xlu1 %3980  ;;  %5781 = vmatmul.mubr.msk.f32.gmra.mrb[102].mxu0 %vm81_vm0, %v3228_v34  ;;  %v4157_v34 = vmul.f32 0.6, %v6823_v35 }
 0xaed   :  { %v6751_v47 = vpop.eup %6750  ;;  %6760 = vrcp.f32 %v3981_v60  ;;  %6282 = vmatpush3.bf16.msra.mxu0 %v9600_v30  ;;  %5827 = vmatprep.mubr.msk.f32.mxu0 %vm81_vm0, %v3986_v59 }
 0xaee   :  { %v6753_v50 = vpop.eup %6752  ;;  %v3988_v7 = vmul.f32 %v6751_v47, %v9040_v28 }
 0xaef   :  { %v3984_v29 = vpop.xlane.xlu0 %3983  ;;  %v3990_v19 = vmul.f32 %v6753_v50, %v9042_v18 }
 0xaf0   :  { %6762 = vrcp.f32 %v3984_v29  ;;  %5828 = vmatmul.mubr.msk.f32.vlgmr.msra.gmra.mrb[96].mxu0 %vm81_vm0, %v3988_v7  ;;  %v6824_v29 = vld [vmem:[%s9400_s0 + $0xa0] sm:$0xff] }
 0xaf1   :  { %5830 = vmatprep.mubr.msk.f32.mxu0 %vm81_vm0, %v3990_v19  ;;  %v4158_v19 = vmul.f32 0.6, %v6824_v29 }
 0xaf2   :  { %v6755_v52 = vpop.eup %6754 }
 0xaf3   :  { %v6757_v0 = vpop.eup %6756  ;;  %v3992_v14 = vmul.f32 %v6755_v52, %v9054_v38 }
 0xaf4   :  { %v3994_v58 = vmul.f32 %v6757_v0, %v9056_v40 }
 0xaf5   :  { %5831 = vmatmul.mubr.msk.f32.gmra.mrb[98].mxu0 %vm81_vm0, %v3992_v14  ;;  %v6825_v14 = vld [vmem:[%s9400_s0 + $0xa8] sm:$0xff] }
 0xaf6   :  { %v6759_v30 = vpop.eup %6758  ;;  %5833 = vmatprep.mubr.msk.f32.mxu0 %vm81_vm0, %v3994_v58  ;;  %v4159_v58 = vmul.f32 0.6, %v6825_v14 }
 0xaf7   :  { %v6761_v28 = vpop.eup %6760  ;;  %v3996_v23 = vmul.f32 %v6759_v30, %v9063_v27  ;;  %v4154_v27 = vmul.f32 0.6, %v6820_v56  ;;  %v6827_v56 = vld [vmem:[%s9400_s0 + $0xb8] sm:$0xff] }
 0xaf8   :  { %v3998_v18 = vmul.f32 %v6761_v28, %v9068_v54  ;;  %v6821_v54 = vld [vmem:[%s9400_s0 + $0x88] sm:$0xff] }
 0xaf9   :  { %5834 = vmatmul.mubr.msk.f32.gmra.mrb[100].mxu0 %vm81_vm0, %v3996_v23  ;;  %v4155_v22 = vmul.f32 0.6, %v6821_v54 }
 0xafa   :  { %v6763_v43 = vpop.eup %6762  ;;  %5836 = vmatprep.mubr.msk.f32.mxu0 %vm81_vm0, %v3998_v18 }
 0xafb   :  { %v4000_v55 = vmul.f32 %v6763_v43, %v9070_v13 }
 0xafd   :  { %5837 = vmatmul.mubr.msk.f32.gmra.mrb[102].mxu0 %vm81_vm0, %v4000_v55 }
 0xbc3   :  { %v5829_v38 = vpop.f32.mrb[96].mxu0 }
 0xbc4   :  { %v4139_v40 = vmul.f32 0.33333334, %v5829_v38  ;;  %v4091_v53 = vpop.f32.mrb[97].mxu0  ;;  %v6826_v38 = vld [vmem:[%s9400_s0 + $0xb0] sm:$0xff] }
 0xbc5   :  { %v4138_v24 = vmul.f32 0.33333334, %v4091_v53 }
 0xbc6   :  { %v4147_v4 = vmul.f32 0.4, %v4139_v40  ;;  %v4160_v40 = vmul.f32 0.6, %v6826_v38 }
 0xbc7   :  { %v4146_v20 = vmul.f32 0.4, %v4138_v24 }
 0xbc8   :  { %v5832_v17 = vpop.f32.mrb[98].mxu0  ;;  %v9182_v45 = vadd.f32 %v4155_v22, %v4147_v4 }
 0xbc9   :  { %v9180_v13 = vadd.f32 %v4154_v27, %v4146_v20  ;;  %v4141_v2 = vmul.f32 0.33333334, %v5832_v17  ;;  %v4101_v39 = vpop.f32.mrb[99].mxu0  ;;  %v4161_v27 = vmul.f32 0.6, %v6827_v56 }
 0xbca   :  { %v4140_v6 = vmul.f32 0.33333334, %v4101_v39 }
 0xbcb   :  { %v4149_v61 = vmul.f32 0.4, %v4141_v2  ;;  %5879 = vmatprep.mubr.msk.f32.mxu1 %vm81_vm0, %v9180_v13 }
 0xbcc   :  { %v4148_v1 = vmul.f32 0.4, %v4140_v6  ;;  %v5835_v59 = vpop.f32.mrb[100].mxu0  ;;  %5880 = vmatmul.mubr.msk.f32.gmra.mrb[112].mxu1 %vm81_vm0, %v9182_v45 }
 0xbcd   :  { %v4143_v60 = vmul.f32 0.33333334, %v5835_v59  ;;  %v4111_v47 = vpop.f32.mrb[101].mxu0  ;;  %v9199_v52 = vadd.f32 %v4157_v34, %v4149_v61 }
 0xbce   :  { %v9194_v50 = vadd.f32 %v4156_v49, %v4148_v1  ;;  %v4142_v7 = vmul.f32 0.33333334, %v4111_v47 }
 0xbcf   :  { %v4151_v0 = vmul.f32 0.4, %v4143_v60 }
 0xbd0   :  { %v4150_v30 = vmul.f32 0.4, %v4142_v7  ;;  %v5838_v28 = vpop.f32.mrb[102].mxu0  ;;  %5882 = vmatprep.mubr.msk.f32.mxu1 %vm81_vm0, %v9194_v50 }
 0xbd1   :  { %v4145_v23 = vmul.f32 0.33333334, %v5838_v28  ;;  %v4121_v18 = vpop.f32.mrb[103].mxu0  ;;  %5883 = vmatmul.mubr.msk.f32.gmra.mrb[114].mxu1 %vm81_vm0, %v9199_v52  ;;  %v9213_v53 = vadd.f32 %v4159_v58, %v4151_v0 }
 0xbd2   :  { %v9208_v43 = vadd.f32 %v4158_v19, %v4150_v30  ;;  %v4144_v55 = vmul.f32 0.33333334, %v4121_v18  ;;  %v6828_v19 = vld [vmem:[%s9406_s6] ss:$0 sm:$0xff] }
 0xbd3   :  { %v4153_v24 = vmul.f32 0.4, %v4145_v23 }
 0xbd4   :  { %v4152_v4 = vmul.f32 0.4, %v4144_v55  ;;  %5885 = vmatprep.mubr.msk.f32.mxu1 %vm81_vm0, %v9208_v43 }
 0xbd5   :  { %5886 = vmatmul.mubr.msk.f32.gmra.mrb[116].mxu1 %vm81_vm0, %v9213_v53  ;;  %v9224_v22 = vadd.f32 %v4161_v27, %v4153_v24 }
 0xbd6   :  { %v9222_v54 = vadd.f32 %v4160_v40, %v4152_v4 }
 0xbd8   :  { %5888 = vmatprep.mubr.msk.f32.mxu1 %vm81_vm0, %v9222_v54 }
 0xbd9   :  { %5889 = vmatmul.mubr.msk.f32.gmra.mrb[118].mxu1 %vm81_vm0, %v9224_v22 }
 0xc9f   :  { %v5881_v20 = vpop.f32.mrb[112].mxu1 }
 0xca0   :  { %v4409_v17 = vadd.f32 %v5881_v20, %v8925_v42  ;;  %v4403_v2 = vpop.f32.mrb[113].mxu1 }
 0xca1   :  { %v4404_v39 = vadd.f32 %v8925_v42, %v4403_v2 }
 0xca2   :  { %v4459_v6 = vsub.f32 0.0, %v4409_v17 }
 0xca3   :  { %v4458_v32 = vsub.f32 0.0, %v4404_v39 }
 0xca4   :  { %v4500_v49 = vmul.f32 1.442695, %v4459_v6  ;;  %v5884_v61 = vpop.f32.mrb[114].mxu1 }
 0xca5   :  { %v4498_v35 = vmul.f32 1.442695, %v4458_v32  ;;  %v4419_v34 = vadd.f32 %v5884_v61, %v8925_v42  ;;  %v4413_v1 = vpop.f32.mrb[115].mxu1 }
 0xca6   :  { %6764 = vpow2.f32 %v4500_v49  ;;  %v4414_v59 = vadd.f32 %v8925_v42, %v4413_v1 }
 0xca7   :  { %6766 = vpow2.f32 %v4498_v35  ;;  %v4461_v60 = vsub.f32 0.0, %v4419_v34 }
 0xca8   :  { %v4460_v47 = vsub.f32 0.0, %v4414_v59  ;;  %v5887_v7 = vpop.f32.mrb[116].mxu1 }
 0xca9   :  { %v4504_v29 = vmul.f32 1.442695, %v4461_v60  ;;  %v4429_v0 = vadd.f32 %v6828_v19, %v5887_v7  ;;  %v4423_v14 = vpop.f32.mrb[117].mxu1 }
 0xcaa   :  { %v4502_v58 = vmul.f32 1.442695, %v4460_v47  ;;  %v4424_v30 = vadd.f32 %v6828_v19, %v4423_v14 }
 0xcab   :  { %6768 = vpow2.f32 %v4504_v29  ;;  %v4463_v28 = vsub.f32 0.0, %v4429_v0 }
 0xcac   :  { %6770 = vpow2.f32 %v4502_v58  ;;  %v4462_v23 = vsub.f32 0.0, %v4424_v30  ;;  %v5890_v18 = vpop.f32.mrb[118].mxu1 }
 0xcad   :  { %v4508_v55 = vmul.f32 1.442695, %v4463_v28  ;;  %v4439_v42 = vadd.f32 %v6828_v19, %v5890_v18  ;;  %v4433_v38 = vpop.f32.mrb[119].mxu1 }
 0xcae   :  { %v4506_v40 = vmul.f32 1.442695, %v4462_v23  ;;  %v4434_v24 = vadd.f32 %v6828_v19, %v4433_v38 }
 0xcaf   :  { %6772 = vpow2.f32 %v4508_v55  ;;  %v4465_v56 = vsub.f32 0.0, %v4439_v42 }
 0xcb0   :  { %v6765_v27 = vpop.eup %6764  ;;  %6774 = vpow2.f32 %v4506_v40  ;;  %v4464_v4 = vsub.f32 0.0, %v4434_v24 }
 0xcb1   :  { %v6767_v20 = vpop.eup %6766  ;;  %v4531_v17 = vadd.f32 1.0, %v6765_v27  ;;  %v4512_v2 = vmul.f32 1.442695, %v4465_v56 }
 0xcb2   :  { %v4530_v39 = vadd.f32 1.0, %v6767_v20  ;;  %v4510_v6 = vmul.f32 1.442695, %v4464_v4 }
 0xcb3   :  { %6776 = vrcp.f32 %v4531_v17 }
 0xcb4   :  { %6778 = vrcp.f32 %v4530_v39 }
 0xcb5   :  { %v6769_v32 = vpop.eup %6768  ;;  %6780 = vpow2.f32 %v4512_v2 }
 0xcb6   :  { %v6771_v49 = vpop.eup %6770  ;;  %v4533_v61 = vadd.f32 1.0, %v6769_v32  ;;  %6782 = vpow2.f32 %v4510_v6 }
 0xcb7   :  { %v4532_v35 = vadd.f32 1.0, %v6771_v49 }
 0xcb8   :  { %6784 = vrcp.f32 %v4533_v61 }
 0xcb9   :  { %v6773_v34 = vpop.eup %6772  ;;  %6786 = vrcp.f32 %v4532_v35 }
 0xcba   :  { %v6775_v1 = vpop.eup %6774  ;;  %v4535_v59 = vadd.f32 1.0, %v6773_v34 }
 0xcbb   :  { %v4534_v60 = vadd.f32 1.0, %v6775_v1 }
 0xcbc   :  { %6788 = vrcp.f32 %v4535_v59 }
 0xcbd   :  { %v6777_v47 = vpop.eup %6776  ;;  %6790 = vrcp.f32 %v4534_v60 }
 0xcbe   :  { %v6779_v7 = vpop.eup %6778  ;;  %v4603_v29 = vmul.f32 %v6777_v47, %v9182_v45 }
 0xcbf   :  { %v6781_v19 = vpop.eup %6780  ;;  %v4602_v0 = vmul.f32 %v6779_v7, %v9180_v13 }
 0xcc0   :  { %v6783_v14 = vpop.eup %6782  ;;  %v4619_v58 = vadd.f32 %v9082_v48, %v4603_v29  ;;  %v4537_v30 = vadd.f32 1.0, %v6781_v19 }
 0xcc1   :  { %v4618_v28 = vadd.f32 %v9085_v63, %v4602_v0  ;;  %v4536_v23 = vadd.f32 1.0, %v6783_v14 }
 0xcc2   :  { %v6785_v18 = vpop.eup %6784  ;;  %4627 = vst.msk [vmem:[#allocation2 + $0x8] sm:$0xff] %vm81_vm0, %v4619_v58  ;;  %v4635_v55 = vadd.f32 %v4619_v58, %v8697_v8  ;;  %v4643_v42 = vadd.f32 %v4619_v58, %v8758_v16  ;;  %v4651_v38 = vadd.f32 %v4619_v58, %v9182_v45  ;;  %6792 = vrcp.f32 %v4537_v30 }
 0xcc3   :  { %v6787_v40 = vpop.eup %6786  ;;  %4626 = vst.msk [vmem:[#allocation2] sm:$0xff] %vm81_vm0, %v4618_v28  ;;  %v4634_v24 = vadd.f32 %v4618_v28, %v8688_v3  ;;  %v4642_v48 = vadd.f32 %v4618_v28, %v8753_v15  ;;  %v4650_v63 = vadd.f32 %v4618_v28, %v9180_v13  ;;  %v4605_v56 = vmul.f32 %v6785_v18, %v9199_v52 }
 0xcc4   :  { %v4659_v27 = vmul.f32 0.5, %v4635_v55  ;;  %v4667_v4 = vmul.f32 0.5, %v4643_v42  ;;  %v4675_v20 = vmul.f32 0.5, %v4651_v38  ;;  %v4604_v8 = vmul.f32 %v6787_v40, %v9194_v50 }
 0xcc5   :  { %v4658_v16 = vmul.f32 0.5, %v4634_v24  ;;  %v4666_v17 = vmul.f32 0.5, %v4642_v48  ;;  %v4674_v45 = vmul.f32 0.5, %v4650_v63  ;;  %v4621_v2 = vadd.f32 %v9090_v57, %v4605_v56 }
 0xcc6   :  { %v6789_v39 = vpop.eup %6788  ;;  %4683 = vst.msk [vmem:[%s9408_s8 + $0x8] sm:$0xff] %vm81_vm0, %v4659_v27  ;;  %4691 = vst.msk [vmem:[%s9408_s8 + $0x48] sm:$0xff] %vm81_vm0, %v4667_v4  ;;  %v4620_v3 = vadd.f32 %v9093_v31, %v4604_v8  ;;  %6794 = vrcp.f32 %v4536_v23 }
 0xcc7   :  { %4699 = vst.msk [vmem:[%s9408_s8 + $0x88] sm:$0xff] %vm81_vm0, %v4675_v20  ;;  %v6791_v15 = vpop.eup %6790  ;;  %4682 = vst.msk [vmem:[%s9408_s8] sm:$0xff] %vm81_vm0, %v4658_v16  ;;  %v4637_v57 = vadd.f32 %v4621_v2, %v8713_v41  ;;  %v4645_v31 = vadd.f32 %v4621_v2, %v8774_v36  ;;  %v4653_v13 = vadd.f32 %v4621_v2, %v9199_v52 }
 0xcc8   :  { %4690 = vst.msk [vmem:[%s9408_s8 + $0x40] sm:$0xff] %vm81_vm0, %v4666_v17  ;;  %4698 = vst.msk [vmem:[%s9408_s8 + $0x80] sm:$0xff] %vm81_vm0, %v4674_v45  ;;  %v4607_v6 = vmul.f32 %v6789_v39, %v9213_v53  ;;  %v4636_v32 = vadd.f32 %v4620_v3, %v8703_v33  ;;  %v4644_v49 = vadd.f32 %v4620_v3, %v8769_v46 }
 0xcc9   :  { %4629 = vst.msk [vmem:[#allocation2 + $0x18] sm:$0xff] %vm81_vm0, %v4621_v2  ;;  %4628 = vst.msk [vmem:[#allocation2 + $0x10] sm:$0xff] %vm81_vm0, %v4620_v3  ;;  %v4652_v61 = vadd.f32 %v4620_v3, %v9194_v50  ;;  %v4606_v35 = vmul.f32 %v6791_v15, %v9208_v43  ;;  %v4661_v34 = vmul.f32 0.5, %v4637_v57  ;;  %v4669_v1 = vmul.f32 0.5, %v4645_v31 }
 0xcca   :  { %v4677_v59 = vmul.f32 0.5, %v4653_v13  ;;  %v4623_v41 = vadd.f32 %v9099_v12, %v4607_v6  ;;  %v4660_v36 = vmul.f32 0.5, %v4636_v32  ;;  %v4668_v60 = vmul.f32 0.5, %v4644_v49 }
 0xccb   :  { %v4676_v52 = vmul.f32 0.5, %v4652_v61  ;;  %v4622_v47 = vadd.f32 %v9101_v44, %v4606_v35  ;;  %4685 = vst.msk [vmem:[%s9408_s8 + $0x18] sm:$0xff] %vm81_vm0, %v4661_v34  ;;  %4693 = vst.msk [vmem:[%s9408_s8 + $0x58] sm:$0xff] %vm81_vm0, %v4669_v1 }
 0xccc   :  { %4701 = vst.msk [vmem:[%s9408_s8 + $0x98] sm:$0xff] %vm81_vm0, %v4677_v59  ;;  %4631 = vst.msk [vmem:[#allocation2 + $0x28] sm:$0xff] %vm81_vm0, %v4623_v41  ;;  %v4639_v33 = vadd.f32 %v4623_v41, %v8728_v62  ;;  %v4647_v46 = vadd.f32 %v4623_v41, %v8785_v11  ;;  %v4655_v12 = vadd.f32 %v4623_v41, %v9213_v53  ;;  %v6793_v44 = vpop.eup %6792 }
 0xccd   :  { %4684 = vst.msk [vmem:[%s9408_s8 + $0x10] sm:$0xff] %vm81_vm0, %v4660_v36  ;;  %4692 = vst.msk [vmem:[%s9408_s8 + $0x50] sm:$0xff] %vm81_vm0, %v4668_v60  ;;  %v4638_v62 = vadd.f32 %v4622_v47, %v8719_v10  ;;  %v4646_v11 = vadd.f32 %v4622_v47, %v8783_v51  ;;  %v4654_v50 = vadd.f32 %v4622_v47, %v9208_v43 }
 0xcce   :  { %4700 = vst.msk [vmem:[%s9408_s8 + $0x90] sm:$0xff] %vm81_vm0, %v4676_v52  ;;  %4630 = vst.msk [vmem:[#allocation2 + $0x20] sm:$0xff] %vm81_vm0, %v4622_v47  ;;  %v4663_v53 = vmul.f32 0.5, %v4639_v33  ;;  %v4671_v7 = vmul.f32 0.5, %v4647_v46  ;;  %v4679_v29 = vmul.f32 0.5, %v4655_v12  ;;  %v4609_v19 = vmul.f32 %v6793_v44, %v9224_v22 }
 0xccf   :  { %v4662_v0 = vmul.f32 0.5, %v4638_v62  ;;  %v4670_v14 = vmul.f32 0.5, %v4646_v11  ;;  %v4678_v58 = vmul.f32 0.5, %v4654_v50 }
 0xcd0   :  { %4687 = vst.msk [vmem:[%s9408_s8 + $0x28] sm:$0xff] %vm81_vm0, %v4663_v53  ;;  %4695 = vst.msk [vmem:[%s9408_s8 + $0x68] sm:$0xff] %vm81_vm0, %v4671_v7  ;;  %v4625_v10 = vadd.f32 %v9107_v37, %v4609_v19  ;;  %v6795_v51 = vpop.eup %6794 }
 0xcd1   :  { %4703 = vst.msk [vmem:[%s9408_s8 + $0xa8] sm:$0xff] %vm81_vm0, %v4679_v29  ;;  %4686 = vst.msk [vmem:[%s9408_s8 + $0x20] sm:$0xff] %vm81_vm0, %v4662_v0  ;;  %v4608_v28 = vmul.f32 %v6795_v51, %v9222_v54 }
 0xcd2   :  { %4694 = vst.msk [vmem:[%s9408_s8 + $0x60] sm:$0xff] %vm81_vm0, %v4670_v14  ;;  %4702 = vst.msk [vmem:[%s9408_s8 + $0xa0] sm:$0xff] %vm81_vm0, %v4678_v58  ;;  %v4641_v37 = vadd.f32 %v4625_v10, %v8739_v21  ;;  %v4649_v43 = vadd.f32 %v4625_v10, %v8801_v9  ;;  %v4657_v30 = vadd.f32 %v4625_v10, %v9224_v22 }
 0xcd3   :  { %4633 = vst.msk [vmem:[#allocation2 + $0x38] sm:$0xff] %vm81_vm0, %v4625_v10  ;;  %v4624_v42 = vadd.f32 %v9109_v26, %v4608_v28 }
 0xcd4   :  { %v4665_v23 = vmul.f32 0.5, %v4641_v37  ;;  %v4673_v18 = vmul.f32 0.5, %v4649_v43  ;;  %v4681_v55 = vmul.f32 0.5, %v4657_v30 }
 0xcd5   :  { %4632 = vst.msk [vmem:[#allocation2 + $0x30] sm:$0xff] %vm81_vm0, %v4624_v42  ;;  %v4640_v21 = vadd.f32 %v4624_v42, %v8733_v25  ;;  %v4648_v9 = vadd.f32 %v4624_v42, %v8799_v5  ;;  %v4656_v26 = vadd.f32 %v4624_v42, %v9222_v54 }
 0xcd6   :  { %4689 = vst.msk [vmem:[%s9408_s8 + $0x38] sm:$0xff] %vm81_vm0, %v4665_v23  ;;  %4697 = vst.msk [vmem:[%s9408_s8 + $0x78] sm:$0xff] %vm81_vm0, %v4673_v18 }
 0xcd7   :  { %4705 = vst.msk [vmem:[%s9408_s8 + $0xb8] sm:$0xff] %vm81_vm0, %v4681_v55 }
 0xcd8   :  { %6840 = shalt.err (!%p6837_p4)
}
 0xcd9   :  { %s6841_s22 = scalar_lea.hbm %s9407_s7, 1024 }
 0xcda   :  { %p6842_p5 = scmp.ne.s32.totalorder %s9407_s7, %s6841_s22  ;;  %p6845_p6 = scmp.lt.u32.totalorder %s6841_s22, %s9407_s7 }
 0xcdc   :  { %p6847_p7 = pnand %p6845_p6, %p6842_p5 }
 0xcde   :  { %6850 = shalt.err (!%p6847_p7)
}
 0xcdf   :  { %s6856_s27 = smov 128   ;;  %s6857_s2 = smov 8   ;;  %v4664_v25 = vmul.f32 0.5, %v4640_v21  ;;  %v4672_v5 = vmul.f32 0.5, %v4648_v9  ;;  %v4680_v54 = vmul.f32 0.5, %v4656_v26 }
 0xce0   :  { %4717 = dma.vmem_to_hbm [thread:$0]  %s9352_s30, 1024, %s9407_s7, [#allocation3], %s6856_s27, %s6856_s27, %s6857_s2  }
 0xce1   :  { %4688 = vst.msk [vmem:[%s9408_s8 + $0x30] sm:$0xff] %vm81_vm0, %v4664_v25  ;;  %4696 = vst.msk [vmem:[%s9408_s8 + $0x70] sm:$0xff] %vm81_vm0, %v4672_v5 }
 0xce2   :  { %4704 = vst.msk [vmem:[%s9408_s8 + $0xb0] sm:$0xff] %vm81_vm0, %v4680_v54 }
 0xce3   :  { %6851 = dma.done.wait [#allocation3], 1024  }
 0xce4   :  { %6852 = vsyncadd [#allocation3], 4294966272 }
 0xce5   :  { %4725 = vsyncpa [#allocation3], 1 }

</bundles_post_ra>
